<compile_context>
chip_gen: v6e
topology: v6e:2x2x1
jax: 0.10.0
libtpu: 0.0.40
codegen_flags: <defaults>
</compile_context>

<pallas_src>
import numpy as np
import jax
import jax.numpy as jnp
from jax.experimental import pallas as pl
from jax.experimental.pallas import tpu as pltpu

EPS = 1e-5          # nn.BatchNorm1d default eps
NEG_SLOPE = 0.01    # nn.LeakyReLU default negative_slope
KSIZE = 4           # every conv / conv-transpose in the model uses kernel_size=4


# ---------------------------------------------------------------------------
# Host-side structural 0/1 operators, block-diagonal over the folded batch axis.
# Built ONCE with numpy (static shapes), baked into the jitted forward.
# ---------------------------------------------------------------------------
def _conv_shift_folded(B, Lin, k, pad):
    """S[kk][b*Lin + j, b*Lout + t] = 1 iff j == t + kk - pad  (Conv1d, stride 1)."""
    Lout = Lin + 2 * pad - k + 1
    r, q = np.arange(B * Lin), np.arange(B * Lout)
    rb, rj = r // Lin, r % Lin
    qb, qt = q // Lout, q % Lout
    same_b = rb[:, None] == qb[None, :]
    mats = [(same_b & (rj[:, None] == qt[None, :] + kk - pad)).astype(np.float32)
            for kk in range(k)]
    return np.stack(mats), Lout


def _convT_scatter_folded(B, Lin, k, stride, pad):
    """T[kk][b*Lin + s, b*Lout + t] = 1 iff t == stride*s - pad + kk  (ConvTranspose1d)."""
    Lout = (Lin - 1) * stride - 2 * pad + k
    r, q = np.arange(B * Lin), np.arange(B * Lout)
    rb, rs = r // Lin, r % Lin
    qb, qt = q // Lout, q % Lout
    same_b = rb[:, None] == qb[None, :]
    mats = [(same_b & (qt[None, :] == stride * rs[:, None] - pad + kk)).astype(np.float32)
            for kk in range(k)]
    return np.stack(mats), Lout


def _pool_select_folded(B, Lin):
    """P[e][b*Lin + j, b*Lp + t] = 1 iff j == 2t + e  (MaxPool1d(2), floor mode)."""
    Lp = Lin // 2
    r, q = np.arange(B * Lin), np.arange(B * Lp)
    rb, rj = r // Lin, r % Lin
    qb, qt = q // Lp, q % Lp
    same_b = rb[:, None] == qb[None, :]
    mats = [(same_b & (rj[:, None] == 2 * qt[None, :] + e)).astype(np.float32)
            for e in (0, 1)]
    return np.stack(mats), Lp


# ---------------------------------------------------------------------------
# The fused kernel (gridless; everything resident in VMEM).
# ---------------------------------------------------------------------------
def denoise_kernel(x_ref, w1s_ref, w23_ref, w4f_ref, bnp_ref,
                   s1_ref, p1_ref, s2_ref, p2_ref, t3_ref, t4_ref,
                   out_ref):
    def mm(a, b):
        return jnp.dot(a, b, preferred_element_type=jnp.float32)

    def leaky(v):
        return jnp.where(v >= 0, v, NEG_SLOPE * v)

    bnp = bnp_ref[...]          # (64, 8): [g1, be1, g2, be2, g3, be3, b4(pad), 0]

    def bn_leaky(h, col):
        # Training-mode BatchNorm1d over the folded (batch*length) lane axis, biased
        # variance fused as E[x^2] - mean^2; affine folded to one scale/shift; LeakyReLU.
        g, be = bnp[:, col:col + 1], bnp[:, col + 1:col + 2]
        n = h.shape[1]
        mean = jnp.sum(h, axis=1, keepdims=True) * (1.0 / n)
        var = jnp.sum(h * h, axis=1, keepdims=True) * (1.0 / n) - mean * mean
        scale = g * jax.lax.rsqrt(var + EPS)           # (C, 1)
        shift = be - mean * scale                      # (C, 1)
        return leaky(h * scale + shift)

    def maxpool(h, p_ref):
        # Each column of P0/P1 selects exactly one input lane -> max of the two
        # selections is exactly MaxPool1d(2) (floor mode), batch-block-diagonal.
        return jnp.maximum(mm(h, p_ref[0]), mm(h, p_ref[1]))

    def im2col_conv(h, op_ref, wflat):
        # h: (Cin, Lin_f); op_ref[k]: (Lin_f, Lout_f); wflat: (Cout, K*Cin)
        # 4 independent shift matmuls -> sublane concat -> one 256-deep matmul.
        m = jnp.concatenate([mm(h, op_ref[kk]) for kk in range(KSIZE)], axis=0)
        return mm(wflat, m)

    # ---- conv1 (Cin=2): stacked-weight dual form ---------------------------------
    x = x_ref[...]                                     # (2, B*L)
    r = mm(w1s_ref[...], x)                            # (K*64, B*L)
    h = mm(r[0:64], s1_ref[0])
    for kk in range(1, KSIZE):
        h = h + mm(r[64 * kk:64 * (kk + 1)], s1_ref[kk])   # (64, B*L1)
    h = bn_leaky(h, 0)                                 # bn1 + leaky
    h = maxpool(h, p1_ref)                             # (64, B*Lp1)

    # ---- conv2 -> bn2 -> leaky -> maxpool -----------------------------------------
    h = im2col_conv(h, s2_ref, w23_ref[0])             # (64, B*L2)
    h = bn_leaky(h, 2)
    h = maxpool(h, p2_ref)                             # (64, B*Lp2)

    # ---- convTranspose3 -> bn3 -> leaky --------------------------------------------
    h = im2col_conv(h, t3_ref, w23_ref[1])             # (64, B*L3)
    h = bn_leaky(h, 4)

    # ---- convTranspose4 (+ bias) -> leaky; single lane-dense store ------------------
    y = im2col_conv(h, t4_ref, w4f_ref[...])           # (2, B*L4)
    out_ref[...] = leaky(y + bnp[0:2, 6:7])


# ---------------------------------------------------------------------------
# Host-side wrapper: all constant prep hoisted; jitted forward does only the
# batch-fold, the pallas_call, and the unfold.
# ---------------------------------------------------------------------------
def make_denoise_fn(params, B, L):
    # Structural operators (block-diagonal over batch), computed once.
    s1, L1 = _conv_shift_folded(B, L, KSIZE, 2)
    p1, Lp1 = _pool_select_folded(B, L1)
    s2, L2 = _conv_shift_folded(B, Lp1, KSIZE, 2)
    p2, Lp2 = _pool_select_folded(B, L2)
    t3, L3 = _convT_scatter_folded(B, Lp2, KSIZE, 2, 1)
    t4, L4 = _convT_scatter_folded(B, L3, KSIZE, 2, 1)

    # Weight flattening (PyTorch layouts: Conv1d (Cout,Cin,K); ConvTranspose1d (Cin,Cout,K)).
    w1s = jnp.transpose(params['w1'], (2, 0, 1)).reshape(KSIZE * 64, 2)    # (256, 2)
    w2f = jnp.transpose(params['w2'], (0, 2, 1)).reshape(64, KSIZE * 64)   # (64, 256)
    w3f = jnp.transpose(params['w3'], (1, 2, 0)).reshape(64, KSIZE * 64)   # (64, 256)
    w23 = jnp.stack([w2f, w3f])                                            # (2, 64, 256)
    w4f = jnp.transpose(params['w4'], (1, 2, 0)).reshape(2, KSIZE * 64)    # (2, 256)

    # Pack all BN affines + convT4 bias into one (64, 8) array (1 DMA instead of 7).
    b4pad = jnp.concatenate([params['b4'], jnp.zeros((62,), jnp.float32)])
    bnp = jnp.stack([params['g1'], params['be1'],
                     params['g2'], params['be2'],
                     params['g3'], params['be3'],
                     b4pad, jnp.zeros((64,), jnp.float32)], axis=1)        # (64, 8)
    # b1/b2/b3 are intentionally NOT passed: they precede training-mode BatchNorm,
    # which subtracts the batch mean, so they cancel exactly.
    # (If the model were deployed in eval() mode with running stats, they must be restored.)

    consts = tuple(jnp.asarray(a, jnp.float32) for a in
                   (w1s, w23, w4f, bnp, s1, p1, s2, p2, t3, t4))

    vmem = pl.BlockSpec(memory_space=pltpu.MemorySpace.VMEM)
    call = pl.pallas_call(
        denoise_kernel,
        out_shape=jax.ShapeDtypeStruct((2, B * L4), jnp.float32),
        in_specs=[vmem] * (1 + len(consts)),
        out_specs=vmem,
        compiler_params=pltpu.CompilerParams(
            # Modest, v7x-safe (64 MiB physical) limit; actual footprint < 1 MiB.
            vmem_limit_bytes=32 * 1024 * 1024),
    )

    @jax.jit
    def fwd(x):
        # mirrors x.reshape(x.shape[0], 2, -1) in forward(), then folds batch into lanes
        xf = jnp.transpose(x.reshape(B, 2, L), (1, 0, 2)).reshape(2, B * L)
        yf = call(xf, *consts)
        return jnp.transpose(yf.reshape(2, B, L4), (1, 0, 2))

    return fwd


# ---------------------------------------------------------------------------
# Parameters (PyTorch layouts, PyTorch-style uniform init) and pure-JAX reference.
# ---------------------------------------------------------------------------
def init_params(key):
    def unif(k, shape, fan_in):
        bound = 1.0 / (fan_in ** 0.5)
        return jax.random.uniform(k, shape, jnp.float32, -bound, bound)

    ks = jax.random.split(key, 8)
    p = {}
    p['w1'] = unif(ks[0], (64, 2, KSIZE), 2 * KSIZE)      # Conv1d(2, 64, 4)
    p['b1'] = unif(ks[1], (64,), 2 * KSIZE)
    p['g1'] = jnp.ones((64,), jnp.float32); p['be1'] = jnp.zeros((64,), jnp.float32)
    p['w2'] = unif(ks[2], (64, 64, KSIZE), 64 * KSIZE)    # Conv1d(64, 64, 4)
    p['b2'] = unif(ks[3], (64,), 64 * KSIZE)
    p['g2'] = jnp.ones((64,), jnp.float32); p['be2'] = jnp.zeros((64,), jnp.float32)
    p['w3'] = unif(ks[4], (64, 64, KSIZE), 64 * KSIZE)    # ConvTranspose1d(64, 64, 4)
    p['b3'] = unif(ks[5], (64,), 64 * KSIZE)
    p['g3'] = jnp.ones((64,), jnp.float32); p['be3'] = jnp.zeros((64,), jnp.float32)
    p['w4'] = unif(ks[6], (64, 2, KSIZE), 64 * KSIZE)     # ConvTranspose1d(64, 2, 4)
    p['b4'] = unif(ks[7], (2,), 64 * KSIZE)
    return p


def denoise_reference(x, params):
    """Pure-JAX reference mirroring the PyTorch forward (incl. the redundant biases)."""
    HI = jax.lax.Precision.HIGHEST
    B = x.shape[0]
    x = x.reshape(B, 2, -1)

    def leaky(v):
        return jnp.where(v >= 0, v, NEG_SLOPE * v)

    def bn(v, g, be):   # training-mode BatchNorm1d on (B, C, L)
        mean = jnp.mean(v, axis=(0, 2), keepdims=True)
        var = jnp.mean((v - mean) ** 2, axis=(0, 2), keepdims=True)
        return (v - mean) * jax.lax.rsqrt(var + EPS) * g[None, :, None] + be[None, :, None]

    def conv1d(v, w, b, pad):
        y = jax.lax.conv_general_dilated(
            v, w, (1,), [(pad, pad)],
            dimension_numbers=('NCH', 'OIH', 'NCH'), precision=HI)
        return y + b[None, :, None]

    def convT1d(v, w, b, stride, pad):
        k = w.shape[-1]
        y = jax.lax.conv_general_dilated(
            v, jnp.flip(w, -1), (1,), [(k - 1 - pad, k - 1 - pad)],
            lhs_dilation=(stride,),
            dimension_numbers=('NCH', 'IOH', 'NCH'), precision=HI)
        return y + b[None, :, None]

    def maxpool2(v):
        Lp = v.shape[-1] // 2
        return jnp.maximum(v[..., 0:2 * Lp:2], v[..., 1:2 * Lp:2])

    h = maxpool2(leaky(bn(conv1d(x, params['w1'], params['b1'], 2),
                          params['g1'], params['be1'])))
    h = maxpool2(leaky(bn(conv1d(h, params['w2'], params['b2'], 2),
                          params['g2'], params['be2'])))
    h = leaky(bn(convT1d(h, params['w3'], params['b3'], 2, 1),
                 params['g3'], params['be3']))
    h = leaky(convT1d(h, params['w4'], params['b4'], 2, 1))
    return h


if __name__ == "__main__":
    B, L = 2, 16
    key = jax.random.PRNGKey(0)
    key, kx = jax.random.split(key)
    x = jax.random.normal(kx, (B, 2, L), jnp.float32)
    params = init_params(key)

    fwd = make_denoise_fn(params, B, L)
    out = jax.block_until_ready(fwd(x))

    ref = denoise_reference(x, params)
    assert out.shape == (B, 2, L), f"bad output shape {out.shape}"
    # Loose-ish bound only to absorb MXU f32 pass-precision differences vs the
    # HIGHEST-precision XLA reference; structural errors would be O(0.1-1).
    err = float(jnp.max(jnp.abs(out - ref)))
    assert err < 2e-2, f"mismatch vs pure-JAX reference, max|diff|={err}"
    print("KERNEL_OK")
</pallas_src>

<mosaic_0001>
module attributes {stable_mosaic.version = 11 : i64} {
  func.func @denoise_kernel(%arg0: memref<2x32xf32, #tpu.memory_space<vmem>>, %arg1: memref<256x2xf32, #tpu.memory_space<vmem>>, %arg2: memref<2x64x256xf32, #tpu.memory_space<vmem>>, %arg3: memref<2x256xf32, #tpu.memory_space<vmem>>, %arg4: memref<64x8xf32, #tpu.memory_space<vmem>>, %arg5: memref<4x32x34xf32, #tpu.memory_space<vmem>>, %arg6: memref<2x34x16xf32, #tpu.memory_space<vmem>>, %arg7: memref<4x16x18xf32, #tpu.memory_space<vmem>>, %arg8: memref<2x18x8xf32, #tpu.memory_space<vmem>>, %arg9: memref<4x8x16xf32, #tpu.memory_space<vmem>>, %arg10: memref<4x16x32xf32, #tpu.memory_space<vmem>>, %arg11: memref<2x32xf32, #tpu.memory_space<vmem>>) attributes {dimension_semantics = [], scalar_prefetch = 0 : i64, scratch_operands = 0 : i64, tpu.core_type = #tpu.core_type<tc>} {
    %c0 = arith.constant 0 : index
    %c0_0 = arith.constant 0 : index
    %0 = vector.load %arg4[%c0, %c0_0] : memref<64x8xf32, #tpu.memory_space<vmem>>, vector<64x8xf32>
    %c0_1 = arith.constant 0 : index
    %c0_2 = arith.constant 0 : index
    %1 = vector.load %arg0[%c0_1, %c0_2] : memref<2x32xf32, #tpu.memory_space<vmem>>, vector<2x32xf32>
    %c0_3 = arith.constant 0 : index
    %c0_4 = arith.constant 0 : index
    %2 = vector.load %arg1[%c0_3, %c0_4] : memref<256x2xf32, #tpu.memory_space<vmem>>, vector<256x2xf32>
    %cst = arith.constant dense<0.000000e+00> : vector<256x32xf32>
    %3 = tpu.matmul %2, %1, %cst {dimension_numbers = #tpu.dot_dimension_numbers<[1], [0], [0], [1], [0, 0, 1, 1], [], []>} : vector<256x2xf32>, vector<2x32xf32>, vector<256x32xf32> -> vector<256x32xf32>
    %4 = vector.extract_strided_slice %3 {offsets = [0, 0], sizes = [64, 32], strides = [1, 1]} : vector<256x32xf32> to vector<64x32xf32>
    %c0_5 = arith.constant 0 : index
    %c0_6 = arith.constant 0 : index
    %c0_7 = arith.constant 0 : index
    %5 = vector.load %arg5[%c0_5, %c0_6, %c0_7] : memref<4x32x34xf32, #tpu.memory_space<vmem>>, vector<1x32x34xf32>
    %6 = vector.shape_cast %5 : vector<1x32x34xf32> to vector<32x34xf32>
    %cst_8 = arith.constant dense<0.000000e+00> : vector<64x34xf32>
    %7 = tpu.matmul %4, %6, %cst_8 {dimension_numbers = #tpu.dot_dimension_numbers<[1], [0], [0], [1], [0, 0, 1, 1], [], []>} : vector<64x32xf32>, vector<32x34xf32>, vector<64x34xf32> -> vector<64x34xf32>
    %8 = vector.extract_strided_slice %3 {offsets = [64, 0], sizes = [64, 32], strides = [1, 1]} : vector<256x32xf32> to vector<64x32xf32>
    %c1 = arith.constant 1 : index
    %c0_9 = arith.constant 0 : index
    %c0_10 = arith.constant 0 : index
    %9 = vector.load %arg5[%c1, %c0_9, %c0_10] : memref<4x32x34xf32, #tpu.memory_space<vmem>>, vector<1x32x34xf32>
    %10 = vector.shape_cast %9 : vector<1x32x34xf32> to vector<32x34xf32>
    %cst_11 = arith.constant dense<0.000000e+00> : vector<64x34xf32>
    %11 = tpu.matmul %8, %10, %cst_11 {dimension_numbers = #tpu.dot_dimension_numbers<[1], [0], [0], [1], [0, 0, 1, 1], [], []>} : vector<64x32xf32>, vector<32x34xf32>, vector<64x34xf32> -> vector<64x34xf32>
    %12 = arith.addf %7, %11 : vector<64x34xf32>
    %13 = vector.extract_strided_slice %3 {offsets = [128, 0], sizes = [64, 32], strides = [1, 1]} : vector<256x32xf32> to vector<64x32xf32>
    %c2 = arith.constant 2 : index
    %c0_12 = arith.constant 0 : index
    %c0_13 = arith.constant 0 : index
    %14 = vector.load %arg5[%c2, %c0_12, %c0_13] : memref<4x32x34xf32, #tpu.memory_space<vmem>>, vector<1x32x34xf32>
    %15 = vector.shape_cast %14 : vector<1x32x34xf32> to vector<32x34xf32>
    %cst_14 = arith.constant dense<0.000000e+00> : vector<64x34xf32>
    %16 = tpu.matmul %13, %15, %cst_14 {dimension_numbers = #tpu.dot_dimension_numbers<[1], [0], [0], [1], [0, 0, 1, 1], [], []>} : vector<64x32xf32>, vector<32x34xf32>, vector<64x34xf32> -> vector<64x34xf32>
    %17 = arith.addf %12, %16 : vector<64x34xf32>
    %18 = vector.extract_strided_slice %3 {offsets = [192, 0], sizes = [64, 32], strides = [1, 1]} : vector<256x32xf32> to vector<64x32xf32>
    %c3 = arith.constant 3 : index
    %c0_15 = arith.constant 0 : index
    %c0_16 = arith.constant 0 : index
    %19 = vector.load %arg5[%c3, %c0_15, %c0_16] : memref<4x32x34xf32, #tpu.memory_space<vmem>>, vector<1x32x34xf32>
    %20 = vector.shape_cast %19 : vector<1x32x34xf32> to vector<32x34xf32>
    %cst_17 = arith.constant dense<0.000000e+00> : vector<64x34xf32>
    %21 = tpu.matmul %18, %20, %cst_17 {dimension_numbers = #tpu.dot_dimension_numbers<[1], [0], [0], [1], [0, 0, 1, 1], [], []>} : vector<64x32xf32>, vector<32x34xf32>, vector<64x34xf32> -> vector<64x34xf32>
    %22 = arith.addf %17, %21 : vector<64x34xf32>
    %23 = vector.extract_strided_slice %0 {offsets = [0, 0], sizes = [64, 1], strides = [1, 1]} : vector<64x8xf32> to vector<64x1xf32>
    %24 = vector.extract_strided_slice %0 {offsets = [0, 1], sizes = [64, 1], strides = [1, 1]} : vector<64x8xf32> to vector<64x1xf32>
    %cst_18 = arith.constant dense<0.000000e+00> : vector<64xf32>
    %25 = vector.multi_reduction <add>, %22, %cst_18 [1] : vector<64x34xf32> to vector<64xf32>
    %26 = vector.shape_cast %25 : vector<64xf32> to vector<64x1xf32>
    %cst_19 = arith.constant 0.0294117648 : f32
    %27 = vector.broadcast %cst_19 : f32 to vector<64x1xf32>
    %28 = arith.mulf %26, %27 : vector<64x1xf32>
    %29 = arith.mulf %22, %22 : vector<64x34xf32>
    %cst_20 = arith.constant dense<0.000000e+00> : vector<64xf32>
    %30 = vector.multi_reduction <add>, %29, %cst_20 [1] : vector<64x34xf32> to vector<64xf32>
    %31 = vector.shape_cast %30 : vector<64xf32> to vector<64x1xf32>
    %cst_21 = arith.constant 0.0294117648 : f32
    %32 = vector.broadcast %cst_21 : f32 to vector<64x1xf32>
    %33 = arith.mulf %31, %32 : vector<64x1xf32>
    %34 = arith.mulf %28, %28 : vector<64x1xf32>
    %35 = arith.subf %33, %34 : vector<64x1xf32>
    %cst_22 = arith.constant 9.99999974E-6 : f32
    %36 = vector.broadcast %cst_22 : f32 to vector<64x1xf32>
    %37 = arith.addf %35, %36 : vector<64x1xf32>
    %38 = math.rsqrt %37 : vector<64x1xf32>
    %39 = arith.mulf %23, %38 : vector<64x1xf32>
    %40 = arith.mulf %28, %39 : vector<64x1xf32>
    %41 = arith.subf %24, %40 : vector<64x1xf32>
    %42 = vector.broadcast %39 : vector<64x1xf32> to vector<64x34xf32>
    %43 = arith.mulf %22, %42 : vector<64x34xf32>
    %44 = vector.broadcast %41 : vector<64x1xf32> to vector<64x34xf32>
    %45 = arith.addf %43, %44 : vector<64x34xf32>
    %cst_23 = arith.constant 0.000000e+00 : f32
    %46 = vector.broadcast %cst_23 : f32 to vector<64x34xf32>
    %47 = arith.cmpf oge, %45, %46 : vector<64x34xf32>
    %cst_24 = arith.constant 0.00999999977 : f32
    %48 = vector.broadcast %cst_24 : f32 to vector<64x34xf32>
    %49 = arith.mulf %48, %45 : vector<64x34xf32>
    %50 = arith.select %47, %45, %49 : vector<64x34xi1>, vector<64x34xf32>
    %c0_25 = arith.constant 0 : index
    %c0_26 = arith.constant 0 : index
    %c0_27 = arith.constant 0 : index
    %51 = vector.load %arg6[%c0_25, %c0_26, %c0_27] : memref<2x34x16xf32, #tpu.memory_space<vmem>>, vector<1x34x16xf32>
    %52 = vector.shape_cast %51 : vector<1x34x16xf32> to vector<34x16xf32>
    %cst_28 = arith.constant dense<0.000000e+00> : vector<64x16xf32>
    %53 = tpu.matmul %50, %52, %cst_28 {dimension_numbers = #tpu.dot_dimension_numbers<[1], [0], [0], [1], [0, 0, 1, 1], [], []>} : vector<64x34xf32>, vector<34x16xf32>, vector<64x16xf32> -> vector<64x16xf32>
    %c1_29 = arith.constant 1 : index
    %c0_30 = arith.constant 0 : index
    %c0_31 = arith.constant 0 : index
    %54 = vector.load %arg6[%c1_29, %c0_30, %c0_31] : memref<2x34x16xf32, #tpu.memory_space<vmem>>, vector<1x34x16xf32>
    %55 = vector.shape_cast %54 : vector<1x34x16xf32> to vector<34x16xf32>
    %cst_32 = arith.constant dense<0.000000e+00> : vector<64x16xf32>
    %56 = tpu.matmul %50, %55, %cst_32 {dimension_numbers = #tpu.dot_dimension_numbers<[1], [0], [0], [1], [0, 0, 1, 1], [], []>} : vector<64x34xf32>, vector<34x16xf32>, vector<64x16xf32> -> vector<64x16xf32>
    %57 = arith.maximumf %53, %56 : vector<64x16xf32>
    %c0_33 = arith.constant 0 : index
    %c0_34 = arith.constant 0 : index
    %c0_35 = arith.constant 0 : index
    %58 = vector.load %arg2[%c0_33, %c0_34, %c0_35] : memref<2x64x256xf32, #tpu.memory_space<vmem>>, vector<1x64x256xf32>
    %59 = vector.shape_cast %58 : vector<1x64x256xf32> to vector<64x256xf32>
    %c0_36 = arith.constant 0 : index
    %c0_37 = arith.constant 0 : index
    %c0_38 = arith.constant 0 : index
    %60 = vector.load %arg7[%c0_36, %c0_37, %c0_38] : memref<4x16x18xf32, #tpu.memory_space<vmem>>, vector<1x16x18xf32>
    %61 = vector.shape_cast %60 : vector<1x16x18xf32> to vector<16x18xf32>
    %cst_39 = arith.constant dense<0.000000e+00> : vector<64x18xf32>
    %62 = tpu.matmul %57, %61, %cst_39 {dimension_numbers = #tpu.dot_dimension_numbers<[1], [0], [0], [1], [0, 0, 1, 1], [], []>} : vector<64x16xf32>, vector<16x18xf32>, vector<64x18xf32> -> vector<64x18xf32>
    %c1_40 = arith.constant 1 : index
    %c0_41 = arith.constant 0 : index
    %c0_42 = arith.constant 0 : index
    %63 = vector.load %arg7[%c1_40, %c0_41, %c0_42] : memref<4x16x18xf32, #tpu.memory_space<vmem>>, vector<1x16x18xf32>
    %64 = vector.shape_cast %63 : vector<1x16x18xf32> to vector<16x18xf32>
    %cst_43 = arith.constant dense<0.000000e+00> : vector<64x18xf32>
    %65 = tpu.matmul %57, %64, %cst_43 {dimension_numbers = #tpu.dot_dimension_numbers<[1], [0], [0], [1], [0, 0, 1, 1], [], []>} : vector<64x16xf32>, vector<16x18xf32>, vector<64x18xf32> -> vector<64x18xf32>
    %c2_44 = arith.constant 2 : index
    %c0_45 = arith.constant 0 : index
    %c0_46 = arith.constant 0 : index
    %66 = vector.load %arg7[%c2_44, %c0_45, %c0_46] : memref<4x16x18xf32, #tpu.memory_space<vmem>>, vector<1x16x18xf32>
    %67 = vector.shape_cast %66 : vector<1x16x18xf32> to vector<16x18xf32>
    %cst_47 = arith.constant dense<0.000000e+00> : vector<64x18xf32>
    %68 = tpu.matmul %57, %67, %cst_47 {dimension_numbers = #tpu.dot_dimension_numbers<[1], [0], [0], [1], [0, 0, 1, 1], [], []>} : vector<64x16xf32>, vector<16x18xf32>, vector<64x18xf32> -> vector<64x18xf32>
    %c3_48 = arith.constant 3 : index
    %c0_49 = arith.constant 0 : index
    %c0_50 = arith.constant 0 : index
    %69 = vector.load %arg7[%c3_48, %c0_49, %c0_50] : memref<4x16x18xf32, #tpu.memory_space<vmem>>, vector<1x16x18xf32>
    %70 = vector.shape_cast %69 : vector<1x16x18xf32> to vector<16x18xf32>
    %cst_51 = arith.constant dense<0.000000e+00> : vector<64x18xf32>
    %71 = tpu.matmul %57, %70, %cst_51 {dimension_numbers = #tpu.dot_dimension_numbers<[1], [0], [0], [1], [0, 0, 1, 1], [], []>} : vector<64x16xf32>, vector<16x18xf32>, vector<64x18xf32> -> vector<64x18xf32>
    %72 = tpu.concatenate %62, %65, %68, %71 in 0 : vector<64x18xf32>, vector<64x18xf32>, vector<64x18xf32>, vector<64x18xf32> -> vector<256x18xf32>
    %cst_52 = arith.constant dense<0.000000e+00> : vector<64x18xf32>
    %73 = tpu.matmul %59, %72, %cst_52 {dimension_numbers = #tpu.dot_dimension_numbers<[1], [0], [0], [1], [0, 0, 1, 1], [], []>} : vector<64x256xf32>, vector<256x18xf32>, vector<64x18xf32> -> vector<64x18xf32>
    %74 = vector.extract_strided_slice %0 {offsets = [0, 2], sizes = [64, 1], strides = [1, 1]} : vector<64x8xf32> to vector<64x1xf32>
    %75 = vector.extract_strided_slice %0 {offsets = [0, 3], sizes = [64, 1], strides = [1, 1]} : vector<64x8xf32> to vector<64x1xf32>
    %cst_53 = arith.constant dense<0.000000e+00> : vector<64xf32>
    %76 = vector.multi_reduction <add>, %73, %cst_53 [1] : vector<64x18xf32> to vector<64xf32>
    %77 = vector.shape_cast %76 : vector<64xf32> to vector<64x1xf32>
    %cst_54 = arith.constant 0.055555556 : f32
    %78 = vector.broadcast %cst_54 : f32 to vector<64x1xf32>
    %79 = arith.mulf %77, %78 : vector<64x1xf32>
    %80 = arith.mulf %73, %73 : vector<64x18xf32>
    %cst_55 = arith.constant dense<0.000000e+00> : vector<64xf32>
    %81 = vector.multi_reduction <add>, %80, %cst_55 [1] : vector<64x18xf32> to vector<64xf32>
    %82 = vector.shape_cast %81 : vector<64xf32> to vector<64x1xf32>
    %cst_56 = arith.constant 0.055555556 : f32
    %83 = vector.broadcast %cst_56 : f32 to vector<64x1xf32>
    %84 = arith.mulf %82, %83 : vector<64x1xf32>
    %85 = arith.mulf %79, %79 : vector<64x1xf32>
    %86 = arith.subf %84, %85 : vector<64x1xf32>
    %cst_57 = arith.constant 9.99999974E-6 : f32
    %87 = vector.broadcast %cst_57 : f32 to vector<64x1xf32>
    %88 = arith.addf %86, %87 : vector<64x1xf32>
    %89 = math.rsqrt %88 : vector<64x1xf32>
    %90 = arith.mulf %74, %89 : vector<64x1xf32>
    %91 = arith.mulf %79, %90 : vector<64x1xf32>
    %92 = arith.subf %75, %91 : vector<64x1xf32>
    %93 = vector.broadcast %90 : vector<64x1xf32> to vector<64x18xf32>
    %94 = arith.mulf %73, %93 : vector<64x18xf32>
    %95 = vector.broadcast %92 : vector<64x1xf32> to vector<64x18xf32>
    %96 = arith.addf %94, %95 : vector<64x18xf32>
    %cst_58 = arith.constant 0.000000e+00 : f32
    %97 = vector.broadcast %cst_58 : f32 to vector<64x18xf32>
    %98 = arith.cmpf oge, %96, %97 : vector<64x18xf32>
    %cst_59 = arith.constant 0.00999999977 : f32
    %99 = vector.broadcast %cst_59 : f32 to vector<64x18xf32>
    %100 = arith.mulf %99, %96 : vector<64x18xf32>
    %101 = arith.select %98, %96, %100 : vector<64x18xi1>, vector<64x18xf32>
    %c0_60 = arith.constant 0 : index
    %c0_61 = arith.constant 0 : index
    %c0_62 = arith.constant 0 : index
    %102 = vector.load %arg8[%c0_60, %c0_61, %c0_62] : memref<2x18x8xf32, #tpu.memory_space<vmem>>, vector<1x18x8xf32>
    %103 = vector.shape_cast %102 : vector<1x18x8xf32> to vector<18x8xf32>
    %cst_63 = arith.constant dense<0.000000e+00> : vector<64x8xf32>
    %104 = tpu.matmul %101, %103, %cst_63 {dimension_numbers = #tpu.dot_dimension_numbers<[1], [0], [0], [1], [0, 0, 1, 1], [], []>} : vector<64x18xf32>, vector<18x8xf32>, vector<64x8xf32> -> vector<64x8xf32>
    %c1_64 = arith.constant 1 : index
    %c0_65 = arith.constant 0 : index
    %c0_66 = arith.constant 0 : index
    %105 = vector.load %arg8[%c1_64, %c0_65, %c0_66] : memref<2x18x8xf32, #tpu.memory_space<vmem>>, vector<1x18x8xf32>
    %106 = vector.shape_cast %105 : vector<1x18x8xf32> to vector<18x8xf32>
    %cst_67 = arith.constant dense<0.000000e+00> : vector<64x8xf32>
    %107 = tpu.matmul %101, %106, %cst_67 {dimension_numbers = #tpu.dot_dimension_numbers<[1], [0], [0], [1], [0, 0, 1, 1], [], []>} : vector<64x18xf32>, vector<18x8xf32>, vector<64x8xf32> -> vector<64x8xf32>
    %108 = arith.maximumf %104, %107 : vector<64x8xf32>
    %c1_68 = arith.constant 1 : index
    %c0_69 = arith.constant 0 : index
    %c0_70 = arith.constant 0 : index
    %109 = vector.load %arg2[%c1_68, %c0_69, %c0_70] : memref<2x64x256xf32, #tpu.memory_space<vmem>>, vector<1x64x256xf32>
    %110 = vector.shape_cast %109 : vector<1x64x256xf32> to vector<64x256xf32>
    %c0_71 = arith.constant 0 : index
    %c0_72 = arith.constant 0 : index
    %c0_73 = arith.constant 0 : index
    %111 = vector.load %arg9[%c0_71, %c0_72, %c0_73] : memref<4x8x16xf32, #tpu.memory_space<vmem>>, vector<1x8x16xf32>
    %112 = vector.shape_cast %111 : vector<1x8x16xf32> to vector<8x16xf32>
    %cst_74 = arith.constant dense<0.000000e+00> : vector<64x16xf32>
    %113 = tpu.matmul %108, %112, %cst_74 {dimension_numbers = #tpu.dot_dimension_numbers<[1], [0], [0], [1], [0, 0, 1, 1], [], []>} : vector<64x8xf32>, vector<8x16xf32>, vector<64x16xf32> -> vector<64x16xf32>
    %c1_75 = arith.constant 1 : index
    %c0_76 = arith.constant 0 : index
    %c0_77 = arith.constant 0 : index
    %114 = vector.load %arg9[%c1_75, %c0_76, %c0_77] : memref<4x8x16xf32, #tpu.memory_space<vmem>>, vector<1x8x16xf32>
    %115 = vector.shape_cast %114 : vector<1x8x16xf32> to vector<8x16xf32>
    %cst_78 = arith.constant dense<0.000000e+00> : vector<64x16xf32>
    %116 = tpu.matmul %108, %115, %cst_78 {dimension_numbers = #tpu.dot_dimension_numbers<[1], [0], [0], [1], [0, 0, 1, 1], [], []>} : vector<64x8xf32>, vector<8x16xf32>, vector<64x16xf32> -> vector<64x16xf32>
    %c2_79 = arith.constant 2 : index
    %c0_80 = arith.constant 0 : index
    %c0_81 = arith.constant 0 : index
    %117 = vector.load %arg9[%c2_79, %c0_80, %c0_81] : memref<4x8x16xf32, #tpu.memory_space<vmem>>, vector<1x8x16xf32>
    %118 = vector.shape_cast %117 : vector<1x8x16xf32> to vector<8x16xf32>
    %cst_82 = arith.constant dense<0.000000e+00> : vector<64x16xf32>
    %119 = tpu.matmul %108, %118, %cst_82 {dimension_numbers = #tpu.dot_dimension_numbers<[1], [0], [0], [1], [0, 0, 1, 1], [], []>} : vector<64x8xf32>, vector<8x16xf32>, vector<64x16xf32> -> vector<64x16xf32>
    %c3_83 = arith.constant 3 : index
    %c0_84 = arith.constant 0 : index
    %c0_85 = arith.constant 0 : index
    %120 = vector.load %arg9[%c3_83, %c0_84, %c0_85] : memref<4x8x16xf32, #tpu.memory_space<vmem>>, vector<1x8x16xf32>
    %121 = vector.shape_cast %120 : vector<1x8x16xf32> to vector<8x16xf32>
    %cst_86 = arith.constant dense<0.000000e+00> : vector<64x16xf32>
    %122 = tpu.matmul %108, %121, %cst_86 {dimension_numbers = #tpu.dot_dimension_numbers<[1], [0], [0], [1], [0, 0, 1, 1], [], []>} : vector<64x8xf32>, vector<8x16xf32>, vector<64x16xf32> -> vector<64x16xf32>
    %123 = tpu.concatenate %113, %116, %119, %122 in 0 : vector<64x16xf32>, vector<64x16xf32>, vector<64x16xf32>, vector<64x16xf32> -> vector<256x16xf32>
    %cst_87 = arith.constant dense<0.000000e+00> : vector<64x16xf32>
    %124 = tpu.matmul %110, %123, %cst_87 {dimension_numbers = #tpu.dot_dimension_numbers<[1], [0], [0], [1], [0, 0, 1, 1], [], []>} : vector<64x256xf32>, vector<256x16xf32>, vector<64x16xf32> -> vector<64x16xf32>
    %125 = vector.extract_strided_slice %0 {offsets = [0, 4], sizes = [64, 1], strides = [1, 1]} : vector<64x8xf32> to vector<64x1xf32>
    %126 = vector.extract_strided_slice %0 {offsets = [0, 5], sizes = [64, 1], strides = [1, 1]} : vector<64x8xf32> to vector<64x1xf32>
    %cst_88 = arith.constant dense<0.000000e+00> : vector<64xf32>
    %127 = vector.multi_reduction <add>, %124, %cst_88 [1] : vector<64x16xf32> to vector<64xf32>
    %128 = vector.shape_cast %127 : vector<64xf32> to vector<64x1xf32>
    %cst_89 = arith.constant 6.250000e-02 : f32
    %129 = vector.broadcast %cst_89 : f32 to vector<64x1xf32>
    %130 = arith.mulf %128, %129 : vector<64x1xf32>
    %131 = arith.mulf %124, %124 : vector<64x16xf32>
    %cst_90 = arith.constant dense<0.000000e+00> : vector<64xf32>
    %132 = vector.multi_reduction <add>, %131, %cst_90 [1] : vector<64x16xf32> to vector<64xf32>
    %133 = vector.shape_cast %132 : vector<64xf32> to vector<64x1xf32>
    %cst_91 = arith.constant 6.250000e-02 : f32
    %134 = vector.broadcast %cst_91 : f32 to vector<64x1xf32>
    %135 = arith.mulf %133, %134 : vector<64x1xf32>
    %136 = arith.mulf %130, %130 : vector<64x1xf32>
    %137 = arith.subf %135, %136 : vector<64x1xf32>
    %cst_92 = arith.constant 9.99999974E-6 : f32
    %138 = vector.broadcast %cst_92 : f32 to vector<64x1xf32>
    %139 = arith.addf %137, %138 : vector<64x1xf32>
    %140 = math.rsqrt %139 : vector<64x1xf32>
    %141 = arith.mulf %125, %140 : vector<64x1xf32>
    %142 = arith.mulf %130, %141 : vector<64x1xf32>
    %143 = arith.subf %126, %142 : vector<64x1xf32>
    %144 = vector.broadcast %141 : vector<64x1xf32> to vector<64x16xf32>
    %145 = arith.mulf %124, %144 : vector<64x16xf32>
    %146 = vector.broadcast %143 : vector<64x1xf32> to vector<64x16xf32>
    %147 = arith.addf %145, %146 : vector<64x16xf32>
    %cst_93 = arith.constant 0.000000e+00 : f32
    %148 = vector.broadcast %cst_93 : f32 to vector<64x16xf32>
    %149 = arith.cmpf oge, %147, %148 : vector<64x16xf32>
    %cst_94 = arith.constant 0.00999999977 : f32
    %150 = vector.broadcast %cst_94 : f32 to vector<64x16xf32>
    %151 = arith.mulf %150, %147 : vector<64x16xf32>
    %152 = arith.select %149, %147, %151 : vector<64x16xi1>, vector<64x16xf32>
    %c0_95 = arith.constant 0 : index
    %c0_96 = arith.constant 0 : index
    %153 = vector.load %arg3[%c0_95, %c0_96] : memref<2x256xf32, #tpu.memory_space<vmem>>, vector<2x256xf32>
    %c0_97 = arith.constant 0 : index
    %c0_98 = arith.constant 0 : index
    %c0_99 = arith.constant 0 : index
    %154 = vector.load %arg10[%c0_97, %c0_98, %c0_99] : memref<4x16x32xf32, #tpu.memory_space<vmem>>, vector<1x16x32xf32>
    %155 = vector.shape_cast %154 : vector<1x16x32xf32> to vector<16x32xf32>
    %cst_100 = arith.constant dense<0.000000e+00> : vector<64x32xf32>
    %156 = tpu.matmul %152, %155, %cst_100 {dimension_numbers = #tpu.dot_dimension_numbers<[1], [0], [0], [1], [0, 0, 1, 1], [], []>} : vector<64x16xf32>, vector<16x32xf32>, vector<64x32xf32> -> vector<64x32xf32>
    %c1_101 = arith.constant 1 : index
    %c0_102 = arith.constant 0 : index
    %c0_103 = arith.constant 0 : index
    %157 = vector.load %arg10[%c1_101, %c0_102, %c0_103] : memref<4x16x32xf32, #tpu.memory_space<vmem>>, vector<1x16x32xf32>
    %158 = vector.shape_cast %157 : vector<1x16x32xf32> to vector<16x32xf32>
    %cst_104 = arith.constant dense<0.000000e+00> : vector<64x32xf32>
    %159 = tpu.matmul %152, %158, %cst_104 {dimension_numbers = #tpu.dot_dimension_numbers<[1], [0], [0], [1], [0, 0, 1, 1], [], []>} : vector<64x16xf32>, vector<16x32xf32>, vector<64x32xf32> -> vector<64x32xf32>
    %c2_105 = arith.constant 2 : index
    %c0_106 = arith.constant 0 : index
    %c0_107 = arith.constant 0 : index
    %160 = vector.load %arg10[%c2_105, %c0_106, %c0_107] : memref<4x16x32xf32, #tpu.memory_space<vmem>>, vector<1x16x32xf32>
    %161 = vector.shape_cast %160 : vector<1x16x32xf32> to vector<16x32xf32>
    %cst_108 = arith.constant dense<0.000000e+00> : vector<64x32xf32>
    %162 = tpu.matmul %152, %161, %cst_108 {dimension_numbers = #tpu.dot_dimension_numbers<[1], [0], [0], [1], [0, 0, 1, 1], [], []>} : vector<64x16xf32>, vector<16x32xf32>, vector<64x32xf32> -> vector<64x32xf32>
    %c3_109 = arith.constant 3 : index
    %c0_110 = arith.constant 0 : index
    %c0_111 = arith.constant 0 : index
    %163 = vector.load %arg10[%c3_109, %c0_110, %c0_111] : memref<4x16x32xf32, #tpu.memory_space<vmem>>, vector<1x16x32xf32>
    %164 = vector.shape_cast %163 : vector<1x16x32xf32> to vector<16x32xf32>
    %cst_112 = arith.constant dense<0.000000e+00> : vector<64x32xf32>
    %165 = tpu.matmul %152, %164, %cst_112 {dimension_numbers = #tpu.dot_dimension_numbers<[1], [0], [0], [1], [0, 0, 1, 1], [], []>} : vector<64x16xf32>, vector<16x32xf32>, vector<64x32xf32> -> vector<64x32xf32>
    %166 = tpu.concatenate %156, %159, %162, %165 in 0 : vector<64x32xf32>, vector<64x32xf32>, vector<64x32xf32>, vector<64x32xf32> -> vector<256x32xf32>
    %cst_113 = arith.constant dense<0.000000e+00> : vector<2x32xf32>
    %167 = tpu.matmul %153, %166, %cst_113 {dimension_numbers = #tpu.dot_dimension_numbers<[1], [0], [0], [1], [0, 0, 1, 1], [], []>} : vector<2x256xf32>, vector<256x32xf32>, vector<2x32xf32> -> vector<2x32xf32>
    %168 = vector.extract_strided_slice %0 {offsets = [0, 6], sizes = [2, 1], strides = [1, 1]} : vector<64x8xf32> to vector<2x1xf32>
    %169 = vector.broadcast %168 : vector<2x1xf32> to vector<2x32xf32>
    %170 = arith.addf %167, %169 : vector<2x32xf32>
    %cst_114 = arith.constant 0.000000e+00 : f32
    %171 = vector.broadcast %cst_114 : f32 to vector<2x32xf32>
    %172 = arith.cmpf oge, %170, %171 : vector<2x32xf32>
    %cst_115 = arith.constant 0.00999999977 : f32
    %173 = vector.broadcast %cst_115 : f32 to vector<2x32xf32>
    %174 = arith.mulf %173, %170 : vector<2x32xf32>
    %175 = arith.select %172, %170, %174 : vector<2x32xi1>, vector<2x32xf32>
    %c0_116 = arith.constant 0 : index
    %c0_117 = arith.constant 0 : index
    %176 = vector.load %arg11[%c0_116, %c0_117] : memref<2x32xf32, #tpu.memory_space<vmem>>, vector<2x32xf32>
    tpu.vector_store %arg11[%c0_116, %c0_117], %175 {strides = array<i32>} : memref<2x32xf32, #tpu.memory_space<vmem>>, vector<2x32xf32>,
    return
  }
}

</mosaic_0001>

<bundles_post_ra>
// kernel: fwd.1
= control target key start
LH: loop header
LB: loop body
LE: loop exit
PB: predicated region body
PF: predicated region fallthrough
CT: control target
= control target key end

     0   :  { %16 = vsyncpa [#allocation3], 0  ;;  %s6105_s0 = inlined_call_operand.vmem [shape: f32[2,32], index: 0, kind: input, shape index: {}]   ;;  %s6106_s1 = inlined_call_operand.hbm [shape: f32[256,2], index: 1, kind: input, shape index: {}]   ;;  %s6107_s2 = inlined_call_operand.hbm [shape: f32[2,64,256], index: 2, kind: input, shape index: {}]   ;;  %s6108_s3 = inlined_call_operand.hbm [shape: f32[2,256], index: 3, kind: input, shape index: {}]   ;;  %s6109_s4 = inlined_call_operand.hbm [shape: f32[64,8], index: 4, kind: input, shape index: {}]   ;;  %s6110_s5 = inlined_call_operand.hbm [shape: f32[4,32,34], index: 5, kind: input, shape index: {}]   ;;  %s6111_s6 = inlined_call_operand.hbm [shape: f32[2,34,16], index: 6, kind: input, shape index: {}]   ;;  %s6112_s7 = inlined_call_operand.hbm [shape: f32[4,16,18], index: 7, kind: input, shape index: {}]   ;;  %s6113_s8 = inlined_call_operand.hbm [shape: f32[2,18,8], index: 8, kind: input, shape index: {}]   ;;  %s6114_s9 = inlined_call_operand.vmem [shape: f32[4,8,16], index: 9, kind: input, shape index: {}]   ;;  %s6115_s10 = inlined_call_operand.hbm [shape: f32[4,16,32], index: 10, kind: input, shape index: {}]   ;;  %s6116_s11 = inlined_call_operand.vmem [shape: f32[2,32], index: 11, kind: output, shape index: {}]  }
   0x1   :  { %17 = vsyncpa [#allocation5], 0 }
   0x2   :  { %18 = vsyncpa [#allocation8], 0 }
   0x3   :  { %19 = vsyncpa [#allocation11], 0 }
   0x4   :  { %20 = vsyncpa [#allocation14], 0  ;;  %s5416_s17 = smov [#allocation4]  }
   0x5   :  { %s40_s18 = sshll.u32 %s5416_s17, 4  ;;  %s41_s18 = int_to_ptr.vmem [resolvable:$true] %s40_s18 }
   0x6   :  { %s5234_s19 = scalar_lea.vmem %s41_s18, 4096  ;;  %p5239_p1 = scmp.lt.s32.totalorder %s41_s18, %s41_s18 }
   0x7   :  { %p5235_p0 = scmp.ne.s32.totalorder %s41_s18, %s5234_s19  ;;  %p5240_p2 = scmp.lt.s32.totalorder %s5234_s19, %s5234_s19 }
   0x9   :  { %p5241_p3 = por %p5240_p2, %p5239_p1 }
   0xb   :  { %p5242_p4 = pnand %p5241_p3, %p5235_p0 }
   0xd   :  { %5245 = shalt.err (!%p5242_p4)
}
   0xe   :  { %s5417_s20 = smov 256   ;;  %s5418_s21 = smov 16  }
   0xf   :  { %46 = dma.hbm_to_vmem [thread:$0]  %s6107_s2, 4096, %s41_s18, [#allocation5], %s5417_s20, %s5417_s20, %s5418_s21  }
  0x10   :  { %s5419_s24 = smov [#allocation7]   ;;  %s5420_s26 = smov [#allocation10]  }
  0x11   :  { %s62_s25 = sshll.u32 %s5419_s24, 4  ;;  %s86_s27 = sshll.u32 %s5420_s26, 4  ;;  %s63_s25 = int_to_ptr.vmem [resolvable:$true] %s62_s25  ;;  %s87_s27 = int_to_ptr.vmem [resolvable:$true] %s86_s27 }
  0x12   :  { %s5254_s28 = scalar_lea.vmem %s63_s25, 1024  ;;  %p5259_p6 = scmp.lt.s32.totalorder %s63_s25, %s63_s25 }
  0x13   :  { %p5255_p5 = scmp.ne.s32.totalorder %s63_s25, %s5254_s28  ;;  %p5260_p7 = scmp.lt.s32.totalorder %s5254_s28, %s5254_s28 }
  0x15   :  { %p5261_p8 = por %p5260_p7, %p5259_p6 }
  0x17   :  { %p5262_p9 = pnand %p5261_p8, %p5255_p5 }
  0x19   :  { %5265 = shalt.err (!%p5262_p9)
}
  0x1a   :  { %s5421_s29 = smov 128   ;;  %s5422_s30 = smov 8  }
  0x1b   :  { %68 = dma.hbm_to_vmem [thread:$0]  %s6109_s4, 1024, %s63_s25, [#allocation8], %s5421_s29, %s5421_s29, %s5422_s30  }
  0x1c   :  { %s5274_s2 = scalar_lea.vmem %s87_s27, 1280  ;;  %p5279_p11 = scmp.lt.s32.totalorder %s87_s27, %s87_s27 }
  0x1d   :  { %p5275_p10 = scmp.ne.s32.totalorder %s87_s27, %s5274_s2  ;;  %p5280_p12 = scmp.lt.s32.totalorder %s5274_s2, %s5274_s2 }
  0x1f   :  { %p5281_p13 = por %p5280_p12, %p5279_p11 }
  0x21   :  { %p5282_p0 = pnand %p5281_p13, %p5275_p10 }
  0x23   :  { %5285 = shalt.err (!%p5282_p0)
}
  0x24   :  { %92 = dma.hbm_to_vmem [thread:$0]  %s6111_s6, 1280, %s87_s27, [#allocation11], %s5421_s29, %s5421_s29, %s5422_s30  }
  0x25   :  { %s5423_s16 = smov [#allocation13]   ;;  %s5424_s18 = smov [#allocation2]  }
  0x26   :  { %s110_s17 = sshll.u32 %s5423_s16, 4  ;;  %s28_s4 = sshll.u32 %s5424_s18, 4  ;;  %s111_s17 = int_to_ptr.vmem [resolvable:$true] %s110_s17  ;;  %s29_s4 = int_to_ptr.vmem [resolvable:$true] %s28_s4 }
  0x27   :  { %s5294_s19 = scalar_lea.vmem %s111_s17, 768  ;;  %p5299_p2 = scmp.lt.s32.totalorder %s111_s17, %s111_s17 }
  0x28   :  { %p5295_p1 = scmp.ne.s32.totalorder %s111_s17, %s5294_s19  ;;  %p5300_p3 = scmp.lt.s32.totalorder %s5294_s19, %s5294_s19 }
  0x2a   :  { %p5301_p4 = por %p5300_p3, %p5299_p2 }
  0x2c   :  { %p5302_p5 = pnand %p5301_p4, %p5295_p1 }
  0x2e   :  { %5305 = shalt.err (!%p5302_p5)
}
  0x2f   :  { %116 = dma.hbm_to_vmem [thread:$0]  %s6113_s8, 768, %s111_s17, [#allocation14], %s5421_s29, %s5421_s29, %s5422_s30  }
  0x30   :  { %s5314_s6 = scalar_lea.vmem %s29_s4, 4096  ;;  %p5319_p7 = scmp.lt.s32.totalorder %s29_s4, %s29_s4 }
  0x31   :  { %p5315_p6 = scmp.ne.s32.totalorder %s29_s4, %s5314_s6  ;;  %p5320_p8 = scmp.lt.s32.totalorder %s5314_s6, %s5314_s6 }
  0x33   :  { %p5321_p9 = por %p5320_p8, %p5319_p7 }
  0x35   :  { %p5322_p10 = pnand %p5321_p9, %p5315_p6 }
  0x37   :  { %5325 = shalt.err (!%p5322_p10)
}
  0x38   :  { %34 = dma.hbm_to_vmem [thread:$0]  %s6106_s1, 4096, %s29_s4, [#allocation3], %s5421_s29, %s5421_s29, %s5422_s30  }
  0x39   :  { %s5425_s24 = smov [#allocation6]   ;;  %s5426_s26 = smov [#allocation9]  }
  0x3a   :  { %s53_s25 = sshll.u32 %s5425_s24, 4  ;;  %s74_s8 = sshll.u32 %s5426_s26, 4  ;;  %s54_s25 = int_to_ptr.vmem [resolvable:$true] %s53_s25  ;;  %s75_s8 = int_to_ptr.vmem [resolvable:$true] %s74_s8 }
  0x3b   :  { %s5334_s27 = scalar_lea.vmem %s54_s25, 64  ;;  %p5339_p12 = scmp.lt.s32.totalorder %s54_s25, %s54_s25 }
  0x3c   :  { %p5335_p11 = scmp.ne.s32.totalorder %s54_s25, %s5334_s27  ;;  %p5340_p13 = scmp.lt.s32.totalorder %s5334_s27, %s5334_s27 }
  0x3e   :  { %p5341_p0 = por %p5340_p13, %p5339_p12 }
  0x40   :  { %p5342_p1 = pnand %p5341_p0, %p5335_p11 }
  0x42   :  { %5345 = shalt.err (!%p5342_p1)
}
  0x43   :  { %56 = dma.hbm_to_vmem [thread:$0]  %s6108_s3, 64, %s54_s25, [#allocation5]  }
  0x44   :  { %s5354_s13 = scalar_lea.vmem %s75_s8, 2048  ;;  %p5359_p3 = scmp.lt.s32.totalorder %s75_s8, %s75_s8 }
  0x45   :  { %p5355_p2 = scmp.ne.s32.totalorder %s75_s8, %s5354_s13  ;;  %p5360_p4 = scmp.lt.s32.totalorder %s5354_s13, %s5354_s13 }
  0x47   :  { %p5361_p5 = por %p5360_p4, %p5359_p3 }
  0x49   :  { %p5362_p6 = pnand %p5361_p5, %p5355_p2 }
  0x4b   :  { %5365 = shalt.err (!%p5362_p6)
}
  0x4c   :  { %80 = dma.hbm_to_vmem [thread:$0]  %s6110_s5, 2048, %s75_s8, [#allocation8], %s5421_s29, %s5421_s29, %s5422_s30  }
  0x4d   :  { %s5427_s14 = smov [#allocation12]   ;;  %s5428_s16 = smov [#allocation15]  }
  0x4e   :  { %s98_s15 = sshll.u32 %s5427_s14, 4  ;;  %s124_s3 = sshll.u32 %s5428_s16, 4  ;;  %s99_s15 = int_to_ptr.vmem [resolvable:$true] %s98_s15  ;;  %s125_s3 = int_to_ptr.vmem [resolvable:$true] %s124_s3 }
  0x4f   :  { %s5374_s17 = scalar_lea.vmem %s99_s15, 1024  ;;  %p5379_p8 = scmp.lt.s32.totalorder %s99_s15, %s99_s15 }
  0x50   :  { %p5375_p7 = scmp.ne.s32.totalorder %s99_s15, %s5374_s17  ;;  %p5380_p9 = scmp.lt.s32.totalorder %s5374_s17, %s5374_s17 }
  0x52   :  { %p5381_p10 = por %p5380_p9, %p5379_p8 }
  0x54   :  { %p5382_p11 = pnand %p5381_p10, %p5375_p7 }
  0x56   :  { %5385 = shalt.err (!%p5382_p11)
}
  0x57   :  { %104 = dma.hbm_to_vmem [thread:$0]  %s6112_s7, 1024, %s99_s15, [#allocation11], %s5421_s29, %s5421_s29, %s5422_s30  }
  0x58   :  { %s5394_s5 = scalar_lea.vmem %s125_s3, 1024  ;;  %p5399_p13 = scmp.lt.s32.totalorder %s125_s3, %s125_s3 }
  0x59   :  { %p5395_p12 = scmp.ne.s32.totalorder %s125_s3, %s5394_s5  ;;  %p5400_p0 = scmp.lt.s32.totalorder %s5394_s5, %s5394_s5 }
  0x5b   :  { %p5401_p1 = por %p5400_p0, %p5399_p13 }
  0x5d   :  { %p5402_p2 = pnand %p5401_p1, %p5395_p12 }
  0x5f   :  { %5405 = shalt.err (!%p5402_p2)
}
  0x60   :  { %130 = dma.hbm_to_vmem [thread:$0]  %s6115_s10, 1024, %s125_s3, [#allocation14], %s5421_s29, %s5421_s29, %s5422_s30  }
  0x61   :  { %5406 = dma.done.wait [#allocation3], 4096  }
  0x62   :  { %5407 = vsyncadd [#allocation3], 4294963200 }
  0x63   :  { %5408 = dma.done.wait [#allocation5], 4160  }
  0x64   :  { %5409 = vsyncadd [#allocation5], 4294963136 }
  0x65   :  { %5410 = dma.done.wait [#allocation8], 3072  }
  0x66   :  { %5411 = vsyncadd [#allocation8], 4294964224 }
  0x67   :  { %5412 = dma.done.wait [#allocation11], 2304  }
  0x68   :  { %5413 = vsyncadd [#allocation11], 4294964992 }
  0x69   :  { %5414 = dma.done.wait [#allocation14], 1792  }
  0x6a   :  { %5415 = vsyncadd [#allocation14], 4294965504  ;;  %vm296_vm0 = vcmask 1041408   ;;  %vm199_vm1 = vcmask 15360   ;;  %v166_v0 = vld [vmem:[%s6105_s0] sm:$0x3] }
  0x6b   :  { %v167_v1 = vld [vmem:[#allocation2] sm:$0xff]  ;;  %v168_v2 = vld [vmem:[#allocation2 + $0x8] sm:$0xff]  ;;  %4733 = vmatprep.subr.msk.mxu0 %vm296_vm0, %v166_v0  ;;  %v169_v3 = vld [vmem:[#allocation2 + $0x10] sm:$0xff]  ;;  %5127 = vmatprep.subr.msk.mxu1 %vm296_vm0, %v166_v0  ;;  %vm534_vm2 = vcmask 261120   ;;  %vm1077_vm3 = vcmask 277504   ;;  %s5430_s0 = smov 1  }
  0x6c   :  { %4735 = vmatprep.mubr.msk.f32.mxu0 %vm199_vm1, %v167_v1  ;;  %4734 = vmatpush3.msk.msra.mxu0 %vm296_vm0, %v166_v0  ;;  %v170_v4 = vld [vmem:[#allocation2 + $0x18] sm:$0xff]  ;;  %v171_v5 = vld [vmem:[#allocation2 + $0x20] sm:$0xff]  ;;  %v172_v6 = vld [vmem:[#allocation2 + $0x28] sm:$0xff]  ;;  %vm1635_vm12 = vcmask 130048   ;;  %vm2194_vm13 = vcmask 146432  }
  0x6d   :  { %4736 = vmatmul.mubr.msk.f32.vlgmr.msra.gmra.mxu0 %vm199_vm1, %v168_v2  ;;  %5128 = vmatpush3.msk.msra.mxu1 %vm296_vm0, %v166_v0  ;;  %v173_v7 = vld [vmem:[#allocation2 + $0x30] sm:$0xff]  ;;  %v195_v8 = vld [vmem:[#allocation2 + $0xe0] sm:$0xff]  ;;  %v196_v9 = vld [vmem:[#allocation2 + $0xe8] sm:$0xff] }
  0x6e   :  { %4738 = vmatprep.mubr.msk.f32.mxu0 %vm199_vm1, %v169_v3  ;;  %4777 = vmatprep.mubr.msk.f32.mxu1 %vm199_vm1, %v195_v8  ;;  %v197_v10 = vld [vmem:[#allocation2 + $0xf0] sm:$0xff]  ;;  %v174_v11 = vld [vmem:[#allocation2 + $0x38] sm:$0xff]  ;;  %v175_v13 = vld [vmem:[#allocation2 + $0x40] sm:$0xff] }
  0x6f   :  { %4778 = vmatmul.mubr.msk.f32.vlgmr.msra.gmra.mxu1 %vm199_vm1, %v196_v9  ;;  %v198_v12 = vld [vmem:[#allocation2 + $0xf8] sm:$0xff]  ;;  %v176_v14 = vld [vmem:[#allocation2 + $0x48] sm:$0xff]  ;;  %v177_v15 = vld [vmem:[#allocation2 + $0x50] sm:$0xff] }
  0x70   :  { %4780 = vmatprep.mubr.msk.f32.mxu1 %vm199_vm1, %v197_v10  ;;  %v178_v16 = vld [vmem:[#allocation2 + $0x58] sm:$0xff]  ;;  %v179_v17 = vld [vmem:[#allocation2 + $0x60] sm:$0xff]  ;;  %v180_v18 = vld [vmem:[#allocation2 + $0x68] sm:$0xff] }
  0x71   :  { %4739 = vmatmul.mubr.msk.f32.gmra.mxu0 %vm199_vm1, %v170_v4  ;;  %v181_v19 = vld [vmem:[#allocation2 + $0x70] sm:$0xff]  ;;  %v182_v20 = vld [vmem:[#allocation2 + $0x78] sm:$0xff]  ;;  %v183_v21 = vld [vmem:[#allocation2 + $0x80] sm:$0xff] }
  0x72   :  { %4741 = vmatprep.mubr.msk.f32.mxu0 %vm199_vm1, %v171_v5  ;;  %v184_v22 = vld [vmem:[#allocation2 + $0x88] sm:$0xff]  ;;  %v185_v23 = vld [vmem:[#allocation2 + $0x90] sm:$0xff]  ;;  %v186_v24 = vld [vmem:[#allocation2 + $0x98] sm:$0xff] }
  0x73   :  { %4781 = vmatmul.mubr.msk.f32.gmra.mxu1 %vm199_vm1, %v198_v12  ;;  %v187_v25 = vld [vmem:[#allocation2 + $0xa0] sm:$0xff]  ;;  %v188_v26 = vld [vmem:[#allocation2 + $0xa8] sm:$0xff]  ;;  %v189_v27 = vld [vmem:[#allocation2 + $0xb0] sm:$0xff] }
  0x74   :  { %v190_v28 = vld [vmem:[#allocation2 + $0xb8] sm:$0xff]  ;;  %v191_v29 = vld [vmem:[#allocation2 + $0xc0] sm:$0xff]  ;;  %v192_v30 = vld [vmem:[#allocation2 + $0xc8] sm:$0xff] }
  0x75   :  { %4742 = vmatmul.mubr.msk.f32.gmra.mxu0 %vm199_vm1, %v172_v6  ;;  %v193_v31 = vld [vmem:[#allocation2 + $0xd0] sm:$0xff]  ;;  %v194_v32 = vld [vmem:[#allocation2 + $0xd8] sm:$0xff]  ;;  %v530_v36 = vld [vmem:[#allocation9 + $0x20] sm:$0xff] }
  0x76   :  { %4744 = vmatprep.mubr.msk.f32.mxu0 %vm199_vm1, %v173_v7  ;;  %v533_v33 = vld [vmem:[#allocation9 + $0x38] sm:$0xff]  ;;  %v532_v34 = vld [vmem:[#allocation9 + $0x30] sm:$0xff]  ;;  %v531_v35 = vld [vmem:[#allocation9 + $0x28] sm:$0xff] }
  0x77   :  { %4783 = vmatprep.subr.mxu1 %v533_v33  ;;  %v528_v37 = vld [vmem:[#allocation9 + $0x18] sm:$0xff]  ;;  %v527_v48 = vld [vmem:[#allocation9 + $0x10] sm:$0xff]  ;;  %v526_v50 = vld [vmem:[#allocation9 + $0x8] sm:$0xff] }
  0x78   :  { %4784 = vmatpush3.msra.mxu1 %v533_v33  ;;  %v525_v52 = vld [vmem:[#allocation9] sm:$0xff]  ;;  %v797_v54 = vld [vmem:[#allocation9 + $0x58] sm:$0xff]  ;;  %v796_v60 = vld [vmem:[#allocation9 + $0x50] sm:$0xff] }
  0x79   :  { %4745 = vmatmul.mubr.msk.f32.gmra.mxu0 %vm199_vm1, %v174_v11  ;;  %4785 = vmatprep.subr.mxu1 %v532_v34  ;;  %v795_v62 = vld [vmem:[#allocation9 + $0x48] sm:$0xff]  ;;  %v794_v0 = vld [vmem:[#allocation9 + $0x40] sm:$0xff]  ;;  %v939_v2 = vld [vmem:[#allocation9 + $0x78] sm:$0xff] }
  0x7a   :  { %4747 = vmatprep.mubr.msk.f32.mxu0 %vm199_vm1, %v175_v13  ;;  %4786 = vmatpush3.msra.mxu1 %v532_v34  ;;  %v938_v5 = vld [vmem:[#allocation9 + $0x70] sm:$0xff]  ;;  %v937_v7 = vld [vmem:[#allocation9 + $0x68] sm:$0xff]  ;;  %v936_v8 = vld [vmem:[#allocation9 + $0x60] sm:$0xff] }
  0x7b   :  { %4787 = vmatprep.subr.mxu1 %v531_v35 }
  0x7c   :  { %4788 = vmatpush3.msra.mxu1 %v531_v35 }
  0x7d   :  { %4748 = vmatmul.mubr.msk.f32.gmra.mxu0 %vm199_vm1, %v176_v14  ;;  %4789 = vmatprep.subr.mxu1 %v530_v36 }
  0x7e   :  { %4750 = vmatprep.mubr.msk.f32.mxu0 %vm199_vm1, %v177_v15  ;;  %4790 = vmatpush3.msra.mxu1 %v530_v36 }
  0x7f   :  { %4803 = vmatprep.subr.mxu1 %v528_v37 }
  0x81   :  { %4751 = vmatmul.mubr.msk.f32.gmra.mxu0 %vm199_vm1, %v178_v16 }
  0x82   :  { %4753 = vmatprep.mubr.msk.f32.mxu0 %vm199_vm1, %v179_v17 }
  0x85   :  { %4754 = vmatmul.mubr.msk.f32.gmra.mxu0 %vm199_vm1, %v180_v18 }
  0x86   :  { %4756 = vmatprep.mubr.msk.f32.mxu0 %vm199_vm1, %v181_v19 }
  0x89   :  { %4757 = vmatmul.mubr.msk.f32.gmra.mxu0 %vm199_vm1, %v182_v20 }
  0x8a   :  { %4759 = vmatprep.mubr.msk.f32.mxu0 %vm199_vm1, %v183_v21 }
  0x8d   :  { %4760 = vmatmul.mubr.msk.f32.gmra.mxu0 %vm199_vm1, %v184_v22 }
  0x8e   :  { %4762 = vmatprep.mubr.msk.f32.mxu0 %vm199_vm1, %v185_v23 }
  0x91   :  { %4763 = vmatmul.mubr.msk.f32.gmra.mxu0 %vm199_vm1, %v186_v24 }
  0x92   :  { %4765 = vmatprep.mubr.msk.f32.mxu0 %vm199_vm1, %v187_v25 }
  0x95   :  { %4766 = vmatmul.mubr.msk.f32.gmra.mxu0 %vm199_vm1, %v188_v26 }
  0x96   :  { %4768 = vmatprep.mubr.msk.f32.mxu0 %vm199_vm1, %v189_v27 }
  0x99   :  { %4769 = vmatmul.mubr.msk.f32.gmra.mxu0 %vm199_vm1, %v190_v28 }
  0x9a   :  { %4771 = vmatprep.mubr.msk.f32.mxu0 %vm199_vm1, %v191_v29 }
  0x9d   :  { %4772 = vmatmul.mubr.msk.f32.gmra.mxu0 %vm199_vm1, %v192_v30 }
  0x9e   :  { %4774 = vmatprep.mubr.msk.f32.mxu0 %vm199_vm1, %v193_v31 }
  0xa1   :  { %4775 = vmatmul.mubr.msk.f32.gmra.mxu0 %vm199_vm1, %v194_v32 }
 0x12d   :  { %v4737_v38 = vpop.f32.mrf.mxu0 }
 0x12f   :  { %v366_v39 = vpop.f32.mrf.mxu0  ;;  %v4779_v12 = vpop.f32.mrf.mxu1 }
 0x131   :  { %v4740_v40 = vpop.f32.mrf.mxu0  ;;  %v506_v14 = vpop.f32.mrf.mxu1 }
 0x133   :  { %v376_v41 = vpop.f32.mrf.mxu0  ;;  %v4782_v15 = vpop.f32.mrf.mxu1 }
 0x135   :  { %v4743_v42 = vpop.f32.mrf.mxu0  ;;  %v516_v16 = vpop.f32.mrf.mxu1 }
 0x137   :  { %v386_v43 = vpop.f32.mrf.mxu0 }
 0x139   :  { %v4746_v44 = vpop.f32.mrf.mxu0 }
 0x13b   :  { %v396_v45 = vpop.f32.mrf.mxu0 }
 0x13d   :  { %v4749_v46 = vpop.f32.mrf.mxu0 }
 0x13f   :  { %v406_v47 = vpop.f32.mrf.mxu0 }
 0x140   :  { %4791 = vmatprep.mubr.msk.f32.mxu1 %vm534_vm2, %v406_v47 }
 0x141   :  { %v4752_v49 = vpop.f32.mrf.mxu0  ;;  %4792 = vmatmul.mubr.msk.f32.vlgmr.msra.gmra.mxu1 %vm534_vm2, %v4749_v46 }
 0x142   :  { %4804 = vmatpush3.msra.mxu1 %v528_v37 }
 0x143   :  { %v416_v51 = vpop.f32.mrf.mxu0  ;;  %4805 = vmatprep.subr.mxu1 %v527_v48 }
 0x144   :  { %4794 = vmatprep.mubr.msk.f32.mxu1 %vm534_vm2, %v416_v51  ;;  %4806 = vmatpush3.msra.mxu1 %v527_v48 }
 0x145   :  { %v4755_v53 = vpop.f32.mrf.mxu0  ;;  %4795 = vmatmul.mubr.msk.f32.gmra.mxu1 %vm534_vm2, %v4752_v49  ;;  %4807 = vmatprep.subr.mxu1 %v526_v50 }
 0x146   :  { %4808 = vmatpush3.msra.mxu1 %v526_v50 }
 0x147   :  { %v426_v55 = vpop.f32.mrf.mxu0  ;;  %4809 = vmatprep.subr.mxu1 %v525_v52 }
 0x148   :  { %4797 = vmatprep.mubr.msk.f32.mxu1 %vm534_vm2, %v426_v55  ;;  %4810 = vmatpush3.msra.mxu1 %v525_v52 }
 0x149   :  { %v4758_v56 = vpop.f32.mrf.mxu0  ;;  %4798 = vmatmul.mubr.msk.f32.gmra.mxu1 %vm534_vm2, %v4755_v53  ;;  %4823 = vmatprep.subr.mxu1 %v797_v54 }
 0x14b   :  { %v436_v57 = vpop.f32.mrf.mxu0 }
 0x14c   :  { %4800 = vmatprep.mubr.msk.f32.mxu1 %vm534_vm2, %v436_v57 }
 0x14d   :  { %4801 = vmatmul.mubr.msk.f32.gmra.mxu1 %vm534_vm2, %v4758_v56  ;;  %v4761_v58 = vpop.f32.mrf.mxu0 }
 0x14e   :  { %4811 = vmatprep.mubr.msk.f32.mxu1 %vm534_vm2, %v366_v39 }
 0x14f   :  { %v446_v59 = vpop.f32.mrf.mxu0 }
 0x151   :  { %4812 = vmatmul.mubr.msk.f32.vlgmr.msra.gmra.mxu1 %vm534_vm2, %v4737_v38  ;;  %v4764_v61 = vpop.f32.mrf.mxu0 }
 0x152   :  { %4824 = vmatpush3.msra.mxu1 %v797_v54  ;;  %4814 = vmatprep.mubr.msk.f32.mxu1 %vm534_vm2, %v376_v41 }
 0x153   :  { %4825 = vmatprep.subr.mxu1 %v796_v60  ;;  %v456_v63 = vpop.f32.mrf.mxu0 }
 0x154   :  { %4826 = vmatpush3.msra.mxu1 %v796_v60 }
 0x155   :  { %4815 = vmatmul.mubr.msk.f32.gmra.mxu1 %vm534_vm2, %v4740_v40  ;;  %4827 = vmatprep.subr.mxu1 %v795_v62  ;;  %v4767_v1 = vpop.f32.mrf.mxu0 }
 0x156   :  { %4817 = vmatprep.mubr.msk.f32.mxu1 %vm534_vm2, %v386_v43  ;;  %4828 = vmatpush3.msra.mxu1 %v795_v62 }
 0x157   :  { %4829 = vmatprep.subr.mxu1 %v794_v0  ;;  %v466_v3 = vpop.f32.mrf.mxu0 }
 0x158   :  { %4830 = vmatpush3.msra.mxu1 %v794_v0 }
 0x159   :  { %4818 = vmatmul.mubr.msk.f32.gmra.mxu1 %vm534_vm2, %v4743_v42  ;;  %4843 = vmatprep.subr.mxu1 %v939_v2  ;;  %v4770_v4 = vpop.f32.mrf.mxu0 }
 0x15a   :  { %4820 = vmatprep.mubr.msk.f32.mxu1 %vm534_vm2, %v396_v45 }
 0x15b   :  { %v476_v6 = vpop.f32.mrf.mxu0 }
 0x15d   :  { %4821 = vmatmul.mubr.msk.f32.gmra.mxu1 %vm534_vm2, %v4746_v44  ;;  %v4773_v9 = vpop.f32.mrf.mxu0 }
 0x15e   :  { %4831 = vmatprep.mubr.msk.f32.mxu1 %vm534_vm2, %v446_v59 }
 0x15f   :  { %v486_v10 = vpop.f32.mrf.mxu0 }
 0x161   :  { %4832 = vmatmul.mubr.msk.f32.vlgmr.msra.gmra.mxu1 %vm534_vm2, %v4761_v58  ;;  %v4776_v11 = vpop.f32.mrf.mxu0 }
 0x162   :  { %4844 = vmatpush3.msra.mxu1 %v939_v2  ;;  %4834 = vmatprep.mubr.msk.f32.mxu1 %vm534_vm2, %v456_v63 }
 0x163   :  { %4845 = vmatprep.subr.mxu1 %v938_v5  ;;  %v496_v13 = vpop.f32.mrf.mxu0 }
 0x164   :  { %4846 = vmatpush3.msra.mxu1 %v938_v5 }
 0x165   :  { %4835 = vmatmul.mubr.msk.f32.gmra.mxu1 %vm534_vm2, %v4764_v61  ;;  %4847 = vmatprep.subr.mxu1 %v937_v7 }
 0x166   :  { %4837 = vmatprep.mubr.msk.f32.mxu1 %vm534_vm2, %v466_v3  ;;  %4848 = vmatpush3.msra.mxu1 %v937_v7 }
 0x167   :  { %4849 = vmatprep.subr.mxu1 %v936_v8 }
 0x168   :  { %4850 = vmatpush3.msra.mxu1 %v936_v8 }
 0x169   :  { %4838 = vmatmul.mubr.msk.f32.gmra.mxu1 %vm534_vm2, %v4767_v1 }
 0x16a   :  { %4840 = vmatprep.mubr.msk.f32.mxu1 %vm534_vm2, %v476_v6 }
 0x16d   :  { %4841 = vmatmul.mubr.msk.f32.gmra.mxu1 %vm534_vm2, %v4770_v4 }
 0x16e   :  { %4851 = vmatprep.mubr.msk.f32.mxu1 %vm534_vm2, %v486_v10 }
 0x171   :  { %4852 = vmatmul.mubr.msk.f32.vlgmr.msra.gmra.mxu1 %vm534_vm2, %v4773_v9 }
 0x172   :  { %4854 = vmatprep.mubr.msk.f32.mxu1 %vm534_vm2, %v496_v13 }
 0x175   :  { %4855 = vmatmul.mubr.msk.f32.gmra.mxu1 %vm534_vm2, %v4776_v11 }
 0x176   :  { %4857 = vmatprep.mubr.msk.f32.mxu1 %vm534_vm2, %v506_v14 }
 0x179   :  { %4858 = vmatmul.mubr.msk.f32.gmra.mxu1 %vm534_vm2, %v4779_v12 }
 0x17a   :  { %4860 = vmatprep.mubr.msk.f32.mxu1 %vm534_vm2, %v516_v16 }
 0x17d   :  { %4861 = vmatmul.mubr.msk.f32.gmra.mxu1 %vm534_vm2, %v4782_v15 }
 0x201   :  { %v4793_v17 = vpop.f32.mrf.mxu1 }
 0x203   :  { %v625_v18 = vpop.f32.mrf.mxu1 }
 0x205   :  { %v4796_v19 = vpop.f32.mrf.mxu1 }
 0x207   :  { %v635_v20 = vpop.f32.mrf.mxu1 }
 0x209   :  { %v4799_v21 = vpop.f32.mrf.mxu1 }
 0x20b   :  { %v645_v22 = vpop.f32.mrf.mxu1 }
 0x20d   :  { %v5616_v23 = vpop.f32.mrf.mxu1 }
 0x20f   :  { %v5618_v24 = vpop.f32.mrf.mxu1 }
 0x211   :  { %v4813_v25 = vpop.f32.mrf.mxu1 }
 0x212   :  { %v760_v40 = vadd.f32 %v4813_v25, %v4793_v17 }
 0x213   :  { %v754_v26 = vpop.f32.mrf.mxu1 }
 0x214   :  { %v755_v42 = vadd.f32 %v754_v26, %v625_v18 }
 0x215   :  { %v4816_v27 = vpop.f32.mrf.mxu1 }
 0x216   :  { %v770_v53 = vadd.f32 %v4816_v27, %v4796_v19 }
 0x217   :  { %v764_v28 = vpop.f32.mrf.mxu1 }
 0x218   :  { %v765_v48 = vadd.f32 %v764_v28, %v635_v20 }
 0x219   :  { %v4819_v29 = vpop.f32.mrf.mxu1 }
 0x21a   :  { %v780_v4 = vadd.f32 %v4819_v29, %v4799_v21 }
 0x21b   :  { %v774_v30 = vpop.f32.mrf.mxu1 }
 0x21c   :  { %v775_v0 = vadd.f32 %v774_v30, %v645_v22 }
 0x21d   :  { %v4822_v31 = vpop.f32.mrf.mxu1 }
 0x21e   :  { %v790_v18 = vadd.f32 %v4822_v31, %v5616_v23 }
 0x21f   :  { %v784_v32 = vpop.f32.mrf.mxu1 }
 0x220   :  { %v785_v14 = vadd.f32 %v784_v32, %v5618_v24 }
 0x221   :  { %v4833_v33 = vpop.f32.mrf.mxu1 }
 0x222   :  { %v928_v43 = vadd.f32 %v4833_v33, %v760_v40  ;;  %v5429_v33 = vmov 0  }
 0x223   :  { %v888_v34 = vpop.f32.mrf.mxu1  ;;  %5150 = vset.pattern.permute.xlu0 %v5429_v33  ;;  %5151 = vset.pattern.permute.xlu1 %v5429_v33 }
 0x224   :  { %v927_v45 = vadd.f32 %v888_v34, %v755_v42 }
 0x225   :  { %v4836_v35 = vpop.f32.mrf.mxu1 }
 0x226   :  { %v930_v58 = vadd.f32 %v4836_v35, %v770_v53 }
 0x227   :  { %v898_v36 = vpop.f32.mrf.mxu1 }
 0x228   :  { %v929_v54 = vadd.f32 %v898_v36, %v765_v48 }
 0x229   :  { %v4839_v37 = vpop.f32.mrf.mxu1 }
 0x22a   :  { %v932_v8 = vadd.f32 %v4839_v37, %v780_v4 }
 0x22b   :  { %v908_v38 = vpop.f32.mrf.mxu1 }
 0x22c   :  { %v931_v5 = vadd.f32 %v908_v38, %v775_v0 }
 0x22d   :  { %v4842_v39 = vpop.f32.mrf.mxu1 }
 0x22e   :  { %v934_v22 = vadd.f32 %v4842_v39, %v790_v18 }
 0x22f   :  { %v918_v41 = vpop.f32.mrf.mxu1 }
 0x230   :  { %v933_v19 = vadd.f32 %v918_v41, %v785_v14 }
 0x231   :  { %v4853_v44 = vpop.f32.mrf.mxu1 }
 0x232   :  { %v5620_v46 = vadd.f32 %v4853_v44, %v928_v43 }
 0x233   :  { %v1030_v47 = vpop.f32.mrf.mxu1 }
 0x234   :  { %v5622_v49 = vadd.f32 %v1030_v47, %v927_v45  ;;  %v1081_v50 = vsel %vm1077_vm3, %v5620_v46, 0.0  ;;  %v1111_v51 = vmul.f32 %v5620_v46, %v5620_v46 }
 0x235   :  { %1082 = vadd.xlane.f32.xlu0 %v1081_v50  ;;  %v4856_v52 = vpop.f32.mrf.mxu1 }
 0x236   :  { %v1121_v55 = vsel %vm1077_vm3, %v1111_v51, 0.0  ;;  %v1110_v56 = vmul.f32 %v5622_v49, %v5622_v49  ;;  %v1078_v60 = vsel %vm1077_vm3, %v5622_v49, 0.0  ;;  %v5635_v62 = vadd.f32 %v4856_v52, %v930_v58 }
 0x237   :  { %1122 = vadd.xlane.f32.xlu1 %v1121_v55  ;;  %v1040_v57 = vpop.f32.mrf.mxu1 }
 0x238   :  { %v5631_v59 = vadd.f32 %v1040_v57, %v929_v54  ;;  %v1118_v63 = vsel %vm1077_vm3, %v1110_v56, 0.0  ;;  %v1087_v6 = vsel %vm1077_vm3, %v5635_v62, 0.0  ;;  %v1113_v7 = vmul.f32 %v5635_v62, %v5635_v62 }
 0x239   :  { %1079 = vadd.xlane.f32.xlu0 %v1078_v60  ;;  %v4859_v61 = vpop.f32.mrf.mxu1 }
 0x23a   :  { %v1084_v1 = vsel %vm1077_vm3, %v5631_v59, 0.0  ;;  %v1112_v2 = vmul.f32 %v5631_v59, %v5631_v59  ;;  %v5649_v12 = vadd.f32 %v4859_v61, %v932_v8  ;;  %v1127_v13 = vsel %vm1077_vm3, %v1113_v7, 0.0  ;;  %v5688_v7 = vld [vmem:[#allocation7 + $0x8] sm:$0xff] }
 0x23b   :  { %1119 = vadd.xlane.f32.xlu1 %v1118_v63  ;;  %v1050_v3 = vpop.f32.mrf.mxu1 }
 0x23c   :  { %v5646_v9 = vadd.f32 %v1050_v3, %v931_v5  ;;  %v1124_v10 = vsel %vm1077_vm3, %v1112_v2, 0.0  ;;  %v1093_v20 = vsel %vm1077_vm3, %v5649_v12, 0.0  ;;  %v1115_v21 = vmul.f32 %v5649_v12, %v5649_v12 }
 0x23d   :  { %1085 = vadd.xlane.f32.xlu0 %v1084_v1  ;;  %v4862_v11 = vpop.f32.mrf.mxu1 }
 0x23e   :  { %v1090_v15 = vsel %vm1077_vm3, %v5646_v9, 0.0  ;;  %v1114_v16 = vmul.f32 %v5646_v9, %v5646_v9  ;;  %v5665_v26 = vadd.f32 %v4862_v11, %v934_v22  ;;  %v1133_v27 = vsel %vm1077_vm3, %v1115_v21, 0.0 }
 0x23f   :  { %1088 = vadd.xlane.f32.xlu1 %v1087_v6  ;;  %v1060_v17 = vpop.f32.mrf.mxu1 }
 0x240   :  { %v5662_v24 = vadd.f32 %v1060_v17, %v933_v19  ;;  %v1130_v25 = vsel %vm1077_vm3, %v1114_v16, 0.0  ;;  %v1099_v29 = vsel %vm1077_vm3, %v5665_v26, 0.0  ;;  %v1117_v30 = vmul.f32 %v5665_v26, %v5665_v26 }
 0x241   :  { %1125 = vadd.xlane.f32.xlu0 %v1124_v10 }
 0x242   :  { %v1096_v23 = vsel %vm1077_vm3, %v5662_v24, 0.0  ;;  %v1116_v28 = vmul.f32 %v5662_v24, %v5662_v24  ;;  %v1139_v32 = vsel %vm1077_vm3, %v1117_v30, 0.0 }
 0x243   :  { %1128 = vadd.xlane.f32.xlu1 %v1127_v13 }
 0x244   :  { %v1136_v31 = vsel %vm1077_vm3, %v1116_v28, 0.0 }
 0x245   :  { %1091 = vadd.xlane.f32.xlu0 %v1090_v15 }
 0x247   :  { %1094 = vadd.xlane.f32.xlu1 %v1093_v20 }
 0x249   :  { %1131 = vadd.xlane.f32.xlu0 %v1130_v25  ;;  %v5691_v25 = vld [vmem:[#allocation7] sm:$0xff] }
 0x24b   :  { %1134 = vadd.xlane.f32.xlu1 %v1133_v27 }
 0x24d   :  { %1097 = vadd.xlane.f32.xlu0 %v1096_v23 }
 0x24f   :  { %1100 = vadd.xlane.f32.xlu1 %v1099_v29 }
 0x251   :  { %1137 = vadd.xlane.f32.xlu0 %v1136_v31 }
 0x253   :  { %1140 = vadd.xlane.f32.xlu1 %v1139_v32 }
 0x2be   :  { %v1083_v34 = vpop.xlane.xlu0 %1082 }
 0x2bf   :  { %v1103_v35 = vmul.f32 0.029411765, %v1083_v34 }
 0x2c0   :  { %v1123_v36 = vpop.xlane.xlu1 %1122 }
 0x2c1   :  { %v1151_v37 = vmul.f32 %v1103_v35, %v1103_v35  ;;  %v1143_v38 = vmul.f32 0.029411765, %v1123_v36 }
 0x2c2   :  { %v1080_v39 = vpop.xlane.xlu0 %1079 }
 0x2c3   :  { %v1159_v40 = vsub.f32 %v1143_v38, %v1151_v37  ;;  %v1102_v41 = vmul.f32 0.029411765, %v1080_v39  ;;  %v5695_v38 = vld [vmem:[#allocation7 + $0x10] sm:$0xff] }
 0x2c4   :  { %v1120_v42 = vpop.xlane.xlu1 %1119 }
 0x2c5   :  { %v1167_v43 = vadd.f32 1e-05, %v1159_v40  ;;  %v1150_v44 = vmul.f32 %v1102_v41, %v1102_v41  ;;  %v1142_v45 = vmul.f32 0.029411765, %v1120_v42 }
 0x2c6   :  { %v1086_v47 = vpop.xlane.xlu0 %1085 }
 0x2c7   :  { %5169 = vrsqrt.f32 %v1167_v43  ;;  %v1158_v48 = vsub.f32 %v1142_v45, %v1150_v44  ;;  %v5680_v50 = vmul.f32 0.029411765, %v1086_v47  ;;  %v5698_v43 = vld [vmem:[#allocation7 + $0x18] sm:$0xff] }
 0x2c8   :  { %v1089_v51 = vpop.xlane.xlu1 %1088 }
 0x2c9   :  { %v1166_v52 = vadd.f32 1e-05, %v1158_v48  ;;  %v5682_v53 = vmul.f32 0.029411765, %v1089_v51  ;;  %v1152_v55 = vmul.f32 %v5680_v50, %v5680_v50 }
 0x2ca   :  { %v1126_v54 = vpop.xlane.xlu0 %1125 }
 0x2cb   :  { %5171 = vrsqrt.f32 %v1166_v52  ;;  %v1144_v56 = vmul.f32 0.029411765, %v1126_v54  ;;  %v1153_v58 = vmul.f32 %v5682_v53, %v5682_v53  ;;  %v5704_v54 = vld [vmem:[#allocation7 + $0x20] sm:$0xff] }
 0x2cc   :  { %v1129_v57 = vpop.xlane.xlu1 %1128 }
 0x2cd   :  { %v1160_v60 = vsub.f32 %v1144_v56, %v1152_v55  ;;  %v1145_v61 = vmul.f32 0.029411765, %v1129_v57  ;;  %v5707_v57 = vld [vmem:[#allocation7 + $0x28] sm:$0xff] }
 0x2ce   :  { %v1092_v63 = vpop.xlane.xlu0 %1091 }
 0x2cf   :  { %v1168_v0 = vadd.f32 1e-05, %v1160_v60  ;;  %v1161_v1 = vsub.f32 %v1145_v61, %v1153_v58  ;;  %v1106_v2 = vmul.f32 0.029411765, %v1092_v63 }
 0x2d0   :  { %v1095_v3 = vpop.xlane.xlu1 %1094 }
 0x2d1   :  { %5173 = vrsqrt.f32 %v1168_v0  ;;  %v1169_v4 = vadd.f32 1e-05, %v1161_v1  ;;  %v1107_v5 = vmul.f32 0.029411765, %v1095_v3  ;;  %v1154_v8 = vmul.f32 %v1106_v2, %v1106_v2  ;;  %v5713_v0 = vld [vmem:[#allocation7 + $0x30] sm:$0xff] }
 0x2d2   :  { %v1132_v6 = vpop.xlane.xlu0 %1131 }
 0x2d3   :  { %5175 = vrsqrt.f32 %v1169_v4  ;;  %v1146_v10 = vmul.f32 0.029411765, %v1132_v6  ;;  %v1155_v14 = vmul.f32 %v1107_v5, %v1107_v5 }
 0x2d4   :  { %v5170_v11 = vpop.eup %5169  ;;  %v1135_v13 = vpop.xlane.xlu1 %1134 }
 0x2d5   :  { %v1162_v15 = vsub.f32 %v1146_v10, %v1154_v8  ;;  %v1147_v16 = vmul.f32 0.029411765, %v1135_v13  ;;  %v1183_v17 = vmul.f32 %v5170_v11, %v5688_v7  ;;  %v1362_v10 = vld [vmem:[#allocation10 + $0x20] sm:$0x3]  ;;  %v1361_v11 = vld [vmem:[#allocation10 + $0x18] sm:$0xff]  ;;  %v1360_v13 = vld [vmem:[#allocation10 + $0x10] sm:$0xff] }
 0x2d6   :  { %v1098_v18 = vpop.xlane.xlu0 %1097  ;;  %4863 = vmatprep.subr.msk.mxu0 %vm296_vm0, %v1362_v10 }
 0x2d7   :  { %v1170_v19 = vadd.f32 1e-05, %v1162_v15  ;;  %v1163_v20 = vsub.f32 %v1147_v16, %v1155_v14  ;;  %v1108_v21 = vmul.f32 0.029411765, %v1098_v18  ;;  %v1191_v22 = vmul.f32 %v1183_v17, %v1103_v35  ;;  %4864 = vmatpush3.msk.msra.mxu0 %vm296_vm0, %v1362_v10  ;;  %v1359_v14 = vld [vmem:[#allocation10 + $0x8] sm:$0xff]  ;;  %v1499_v18 = vld [vmem:[#allocation10 + $0x40] sm:$0xff] }
 0x2d8   :  { %v5172_v27 = vpop.eup %5171  ;;  %v1101_v23 = vpop.xlane.xlu1 %1100  ;;  %4865 = vmatprep.subr.mxu0 %v1361_v11  ;;  %v1500_v15 = vld [vmem:[#allocation10 + $0x48] sm:$0x3] }
 0x2d9   :  { %5177 = vrsqrt.f32 %v1170_v19  ;;  %v1171_v28 = vadd.f32 1e-05, %v1163_v20  ;;  %v1109_v29 = vmul.f32 0.029411765, %v1101_v23  ;;  %1208 = vrot.lane.b32.xlu1 %v1191_v22, %s5430_s0  ;;  %v1182_v31 = vmul.f32 %v5172_v27, %v5691_v25  ;;  %4866 = vmatpush3.msra.mxu0 %v1361_v11  ;;  %v1498_v19 = vld [vmem:[#allocation10 + $0x38] sm:$0xff]  ;;  %v1358_v27 = vld [vmem:[#allocation10] sm:$0xff] }
 0x2da   :  { %v1138_v30 = vpop.xlane.xlu0 %1137  ;;  %v1156_v32 = vmul.f32 %v1108_v21, %v1108_v21  ;;  %4867 = vmatprep.subr.mxu0 %v1360_v13  ;;  %4885 = vmatprep.subr.msk.mxu1 %vm296_vm0, %v1500_v15  ;;  %v1496_v23 = vld [vmem:[#allocation10 + $0x28] sm:$0xff] }
 0x2db   :  { %5179 = vrsqrt.f32 %v1171_v28  ;;  %v1148_v34 = vmul.f32 0.029411765, %v1138_v30  ;;  %v1190_v37 = vmul.f32 %v1182_v31, %v1102_v41  ;;  %v1157_v35 = vmul.f32 %v1109_v29, %v1109_v29  ;;  %4868 = vmatpush3.msra.mxu0 %v1360_v13  ;;  %4886 = vmatpush3.msk.msra.mxu1 %vm296_vm0, %v1500_v15 }
 0x2dc   :  { %v1141_v36 = vpop.xlane.xlu1 %1140  ;;  %4869 = vmatprep.subr.mxu0 %v1359_v14  ;;  %4887 = vmatprep.subr.mxu1 %v1499_v18 }
 0x2dd   :  { %v1164_v39 = vsub.f32 %v1148_v34, %v1156_v32  ;;  %v1149_v40 = vmul.f32 0.029411765, %v1141_v36  ;;  %1206 = vrot.lane.b32.xlu0 %v1190_v37, %s5430_s0  ;;  %4870 = vmatpush3.msra.mxu0 %v1359_v14 }
 0x2de   :  { %v5174_v42 = vpop.eup %5173  ;;  %4888 = vmatpush3.msra.mxu1 %v1499_v18  ;;  %4871 = vmatprep.subr.mxu0 %v1358_v27 }
 0x2df   :  { %v1172_v44 = vadd.f32 1e-05, %v1164_v39  ;;  %v1165_v45 = vsub.f32 %v1149_v40, %v1157_v35  ;;  %v1184_v47 = vmul.f32 %v5174_v42, %v5695_v38  ;;  %4889 = vmatprep.subr.mxu1 %v1498_v19  ;;  %4872 = vmatpush3.msra.mxu0 %v1358_v27 }
 0x2e0   :  { %v5176_v48 = vpop.eup %5175  ;;  %4890 = vmatpush3.msra.mxu1 %v1498_v19 }
 0x2e1   :  { %5181 = vrsqrt.f32 %v1172_v44  ;;  %v1173_v51 = vadd.f32 1e-05, %v1165_v45  ;;  %v1192_v52 = vmul.f32 %v1184_v47, %v5680_v50  ;;  %v1185_v41 = vmul.f32 %v5176_v48, %v5698_v43 }
 0x2e3   :  { %5183 = vrsqrt.f32 %v1173_v51  ;;  %1210 = vrot.lane.b32.xlu1 %v1192_v52, %s5430_s0  ;;  %v1193_v55 = vmul.f32 %v1185_v41, %v5682_v53  ;;  %v5716_v53 = vld [vmem:[#allocation7 + $0x38] sm:$0xff] }
 0x2e6   :  { %v5178_v56 = vpop.eup %5177 }
 0x2e7   :  { %1212 = vrot.lane.b32.xlu1 %v1193_v55, %s5430_s0  ;;  %v1186_v58 = vmul.f32 %v5178_v56, %v5704_v54 }
 0x2e8   :  { %v5180_v60 = vpop.eup %5179 }
 0x2e9   :  { %v1194_v61 = vmul.f32 %v1186_v58, %v1106_v2  ;;  %v1187_v50 = vmul.f32 %v5180_v60, %v5707_v57 }
 0x2eb   :  { %1214 = vrot.lane.b32.xlu0 %v1194_v61, %s5430_s0  ;;  %v1195_v63 = vmul.f32 %v1187_v50, %v1107_v5  ;;  %v5431_v5 = vmov 1  }
 0x2ed   :  { %1216 = vrot.lane.b32.xlu1 %v1195_v63, %s5430_s0 }
 0x2ee   :  { %v5182_v1 = vpop.eup %5181 }
 0x2ef   :  { %v1188_v3 = vmul.f32 %v5182_v1, %v5713_v0 }
 0x2f0   :  { %v5184_v4 = vpop.eup %5183 }
 0x2f1   :  { %v1196_v6 = vmul.f32 %v1188_v3, %v1108_v21  ;;  %v1189_v8 = vmul.f32 %v5184_v4, %v5716_v53  ;;  %v1497_v21 = vld [vmem:[#allocation10 + $0x30] sm:$0xff] }
 0x2f2   :  { %4891 = vmatprep.subr.mxu1 %v1497_v21 }
 0x2f3   :  { %1218 = vrot.lane.b32.xlu0 %v1196_v6, %s5430_s0  ;;  %v1197_v2 = vmul.f32 %v1189_v8, %v1109_v29  ;;  %4892 = vmatpush3.msra.mxu1 %v1497_v21 }
 0x2f4   :  { %4893 = vmatprep.subr.mxu1 %v1496_v23 }
 0x2f5   :  { %1220 = vrot.lane.b32.xlu1 %v1197_v2, %s5430_s0  ;;  %4894 = vmatpush3.msra.mxu1 %v1496_v23 }
 0x2f7   :  { %1240 = vperm.xlu0 %5150, %v1182_v31  }
 0x2f9   :  { %1245 = vperm.xlu1 %5151, %v1183_v17  }
 0x2fb   :  { %1260 = vperm.xlu0 %5150, %v1186_v58  }
 0x2fd   :  { %1250 = vperm.xlu1 %5151, %v1184_v47  }
 0x2ff   :  { %5152 = vset.pattern.permute.xlu0 %v5431_v5 }
 0x301   :  { %1255 = vperm.xlu1 %5151, %v1185_v41  }
 0x305   :  { %1265 = vperm.xlu1 %5151, %v1187_v50  }
 0x309   :  { %1270 = vperm.xlu1 %5151, %v1188_v3  }
 0x30d   :  { %5153 = vset.pattern.permute.xlu1 %v5431_v5 }
 0x34b   :  { %v1209_v16 = vpop.permute.xlu1 %1208 }
 0x34c   :  { %v1231_v17 = vsub.f32 %v5688_v7, %v1209_v16 }
 0x34e   :  { %1293 = vperm.xlu0 %5152, %v1231_v17  }
 0x34f   :  { %v1207_v20 = vpop.permute.xlu0 %1206 }
 0x350   :  { %v1230_v22 = vsub.f32 %v5691_v25, %v1207_v20 }
 0x352   :  { %1288 = vperm.xlu1 %5153, %v1230_v22  }
 0x355   :  { %v1211_v28 = vpop.permute.xlu1 %1210 }
 0x356   :  { %v1232_v29 = vsub.f32 %v5695_v38, %v1211_v28 }
 0x358   :  { %1298 = vperm.xlu0 %5152, %v1232_v29  }
 0x359   :  { %v1213_v30 = vpop.permute.xlu1 %1212 }
 0x35a   :  { %v1233_v31 = vsub.f32 %v5698_v43, %v1213_v30 }
 0x35c   :  { %1303 = vperm.xlu1 %5153, %v1233_v31  }
 0x35d   :  { %v1215_v32 = vpop.permute.xlu0 %1214 }
 0x35e   :  { %v1234_v34 = vsub.f32 %v5704_v54, %v1215_v32 }
 0x35f   :  { %v1217_v36 = vpop.permute.xlu1 %1216 }
 0x360   :  { %v1235_v37 = vsub.f32 %v5707_v57, %v1217_v36  ;;  %1308 = vperm.xlu1 %5153, %v1234_v34   ;;  %v1767_v34 = vld [vmem:[#allocation12 + $0x18] sm:$0xff]  ;;  %v1634_v36 = vld [vmem:[#allocation12 + $0x8] sm:$0xff] }
 0x361   :  { %4923 = vmatprep.subr.mxu1 %v1767_v34  ;;  %4907 = vmatprep.subr.mxu0 %v1634_v36 }
 0x362   :  { %1313 = vperm.xlu0 %5152, %v1235_v37   ;;  %v1766_v37 = vld [vmem:[#allocation12 + $0x10] sm:$0xff] }
 0x364   :  { %5154 = vset.pattern.permute.xlu1 %v5429_v33 }
 0x365   :  { %1275 = vperm.xlu1 %5154, %v1189_v8   ;;  %v1219_v35 = vpop.permute.xlu0 %1218 }
 0x366   :  { %v1236_v39 = vsub.f32 %v5713_v0, %v1219_v35  ;;  %v1983_v35 = vld [vmem:[#allocation12 + $0x38] sm:$0xff] }
 0x367   :  { %v1221_v40 = vpop.permute.xlu1 %1220 }
 0x368   :  { %v1237_v42 = vsub.f32 %v5716_v53, %v1221_v40  ;;  %1318 = vperm.xlu0 %5152, %v1236_v39   ;;  %v1875_v39 = vld [vmem:[#allocation12 + $0x28] sm:$0xff] }
 0x369   :  { %5155 = vset.pattern.permute.xlu1 %v5431_v5 }
 0x36a   :  { %1323 = vperm.xlu1 %5155, %v1237_v42  }
 0x372   :  { %v1241_v48 = vpop.permute.xlu0 %1240 }
 0x373   :  { %v1278_v58 = vmul.f32 %v1241_v48, %v5622_v49 }
 0x374   :  { %v1246_v44 = vpop.permute.xlu1 %1245 }
 0x375   :  { %v1279_v55 = vmul.f32 %v1246_v44, %v5620_v46 }
 0x376   :  { %v1261_v52 = vpop.permute.xlu0 %1260 }
 0x378   :  { %v1251_v45 = vpop.permute.xlu1 %1250 }
 0x379   :  { %v1280_v1 = vmul.f32 %v1251_v45, %v5631_v59  ;;  %v1282_v59 = vmul.f32 %v1261_v52, %v5646_v9  ;;  %v1874_v52 = vld [vmem:[#allocation12 + $0x20] sm:$0xff] }
 0x37c   :  { %v1256_v47 = vpop.permute.xlu1 %1255 }
 0x37d   :  { %v1281_v49 = vmul.f32 %v1256_v47, %v5635_v62 }
 0x380   :  { %v1266_v51 = vpop.permute.xlu1 %1265 }
 0x381   :  { %v1283_v14 = vmul.f32 %v1266_v51, %v5649_v12  ;;  %v1982_v51 = vld [vmem:[#allocation12 + $0x30] sm:$0xff] }
 0x384   :  { %v1271_v33 = vpop.permute.xlu1 %1270 }
 0x385   :  { %v1284_v9 = vmul.f32 %v1271_v33, %v5662_v24 }
 0x3c9   :  { %v1294_v41 = vpop.permute.xlu0 %1293 }
 0x3ca   :  { %v1327_v56 = vadd.f32 %v1294_v41, %v1279_v55 }
 0x3cc   :  { %v1343_v50 = vmul.f32 0.01, %v1327_v56  ;;  %vm1335_vm4 = vcmp.ge.f32.partialorder %v1327_v56, 0.0 }
 0x3cd   :  { %v1289_v60 = vpop.permute.xlu1 %1288 }
 0x3ce   :  { %v1326_v61 = vadd.f32 %v1289_v60, %v1278_v58  ;;  %v1351_v6 = vsel %vm1335_vm4, %v1327_v56, %v1343_v50 }
 0x3d0   :  { %vm1334_vm5 = vcmp.ge.f32.partialorder %v1326_v61, 0.0  ;;  %v1342_v63 = vmul.f32 0.01, %v1326_v61 }
 0x3d2   :  { %v1350_v3 = vsel %vm1334_vm5, %v1326_v61, %v1342_v63 }
 0x3d3   :  { %v1299_v4 = vpop.permute.xlu0 %1298  ;;  %4873 = vmatprep.mubr.msk.f32.mxu0 %vm1077_vm3, %v1350_v3  ;;  %4895 = vmatprep.mubr.msk.f32.mxu1 %vm1077_vm3, %v1350_v3 }
 0x3d4   :  { %v1328_v46 = vadd.f32 %v1299_v4, %v1280_v1  ;;  %4874 = vmatmul.mubr.msk.f32.vlgmr.msra.gmra.mxu0 %vm1077_vm3, %v1351_v6  ;;  %4896 = vmatmul.mubr.msk.f32.vlgmr.msra.gmra.mxu1 %vm1077_vm3, %v1351_v6 }
 0x3d5   :  { %4924 = vmatpush3.msra.mxu1 %v1767_v34  ;;  %4908 = vmatpush3.msra.mxu0 %v1634_v36 }
 0x3d6   :  { %vm1336_vm6 = vcmp.ge.f32.partialorder %v1328_v46, 0.0  ;;  %v1344_v8 = vmul.f32 0.01, %v1328_v46  ;;  %4925 = vmatprep.subr.mxu1 %v1766_v37 }
 0x3d7   :  { %v1304_v2 = vpop.permute.xlu1 %1303  ;;  %4926 = vmatpush3.msra.mxu1 %v1766_v37 }
 0x3d8   :  { %v1329_v5 = vadd.f32 %v1304_v2, %v1281_v49  ;;  %v1352_v10 = vsel %vm1336_vm6, %v1328_v46, %v1344_v8  ;;  %4955 = vmatprep.subr.mxu1 %v1983_v35  ;;  %vm2748_vm6 = vcmask 64512  }
 0x3d9   :  { %4876 = vmatprep.mubr.msk.f32.mxu0 %vm1077_vm3, %v1352_v10  ;;  %4898 = vmatprep.mubr.msk.f32.mxu1 %vm1077_vm3, %v1352_v10  ;;  %v1618_v10 = vld [vmem:[#allocation4 + $0x8] sm:$0xff] }
 0x3da   :  { %vm1337_vm7 = vcmp.ge.f32.partialorder %v1329_v5, 0.0  ;;  %v1345_v11 = vmul.f32 0.01, %v1329_v5 }
 0x3db   :  { %v1309_v13 = vpop.permute.xlu1 %1308 }
 0x3dc   :  { %v1330_v15 = vadd.f32 %v1309_v13, %v1282_v59  ;;  %v1353_v16 = vsel %vm1337_vm7, %v1329_v5, %v1345_v11 }
 0x3dd   :  { %4877 = vmatmul.mubr.msk.f32.gmra.mxu0 %vm1077_vm3, %v1353_v16  ;;  %4899 = vmatmul.mubr.msk.f32.gmra.mxu1 %vm1077_vm3, %v1353_v16  ;;  %v1314_v62 = vpop.permute.xlu0 %1313 }
 0x3de   :  { %vm1338_vm8 = vcmp.ge.f32.partialorder %v1330_v15, 0.0  ;;  %v1346_v17 = vmul.f32 0.01, %v1330_v15  ;;  %v1331_v18 = vadd.f32 %v1314_v62, %v1283_v14 }
 0x3e0   :  { %vm1339_vm9 = vcmp.ge.f32.partialorder %v1331_v18, 0.0  ;;  %v1347_v19 = vmul.f32 0.01, %v1331_v18  ;;  %v1276_v20 = vpop.permute.xlu1 %1275  ;;  %v1354_v21 = vsel %vm1338_vm8, %v1330_v15, %v1346_v17 }
 0x3e1   :  { %4879 = vmatprep.mubr.msk.f32.mxu0 %vm1077_vm3, %v1354_v21  ;;  %4901 = vmatprep.mubr.msk.f32.mxu1 %vm1077_vm3, %v1354_v21  ;;  %v1285_v27 = vmul.f32 %v1276_v20, %v5665_v26  ;;  %v1633_v26 = vld [vmem:[#allocation12] sm:$0xff] }
 0x3e2   :  { %v1355_v12 = vsel %vm1339_vm9, %v1331_v18, %v1347_v19  ;;  %4909 = vmatprep.subr.mxu0 %v1633_v26 }
 0x3e3   :  { %4880 = vmatmul.mubr.msk.f32.gmra.mxu0 %vm1077_vm3, %v1355_v12  ;;  %4902 = vmatmul.mubr.msk.f32.gmra.mxu1 %vm1077_vm3, %v1355_v12  ;;  %v1319_v22 = vpop.permute.xlu0 %1318 }
 0x3e4   :  { %v1332_v23 = vadd.f32 %v1319_v22, %v1284_v9  ;;  %4910 = vmatpush3.msra.mxu0 %v1633_v26 }
 0x3e5   :  { %v1324_v28 = vpop.permute.xlu1 %1323  ;;  %4939 = vmatprep.subr.mxu0 %v1875_v39 }
 0x3e6   :  { %vm1340_vm10 = vcmp.ge.f32.partialorder %v1332_v23, 0.0  ;;  %v1348_v29 = vmul.f32 0.01, %v1332_v23  ;;  %v1333_v30 = vadd.f32 %v1324_v28, %v1285_v27 }
 0x3e8   :  { %vm1341_vm11 = vcmp.ge.f32.partialorder %v1333_v30, 0.0  ;;  %v1349_v31 = vmul.f32 0.01, %v1333_v30  ;;  %v1356_v32 = vsel %vm1340_vm10, %v1332_v23, %v1348_v29 }
 0x3e9   :  { %4882 = vmatprep.mubr.msk.f32.mxu0 %vm1077_vm3, %v1356_v32  ;;  %4904 = vmatprep.mubr.msk.f32.mxu1 %vm1077_vm3, %v1356_v32 }
 0x3ea   :  { %v1357_v24 = vsel %vm1341_vm11, %v1333_v30, %v1349_v31 }
 0x3eb   :  { %4883 = vmatmul.mubr.msk.f32.gmra.mxu0 %vm1077_vm3, %v1357_v24  ;;  %4905 = vmatmul.mubr.msk.f32.gmra.mxu1 %vm1077_vm3, %v1357_v24 }
 0x494   :  { %v4875_v40 = vpop.f32.mrf.mxu0  ;;  %v4897_v42 = vpop.f32.mrf.mxu1 }
 0x495   :  { %v1610_v48 = vmax.f32 %v4875_v40, %v4897_v42 }
 0x496   :  { %v1456_v44 = vpop.f32.mrf.mxu0  ;;  %v1570_v45 = vpop.f32.mrf.mxu1 }
 0x497   :  { %v1609_v47 = vmax.f32 %v1456_v44, %v1570_v45  ;;  %v1617_v45 = vld [vmem:[#allocation4] sm:$0xff] }
 0x499   :  { %4911 = vmatprep.mubr.msk.f32.mxu0 %vm1635_vm12, %v1609_v47  ;;  %4927 = vmatprep.mubr.msk.f32.mxu1 %vm1635_vm12, %v1609_v47 }
 0x49a   :  { %4912 = vmatmul.mubr.msk.f32.vlgmr.msra.gmra.mxu0 %vm1635_vm12, %v1610_v48  ;;  %4928 = vmatmul.mubr.msk.f32.vlgmr.msra.gmra.mxu1 %vm1635_vm12, %v1610_v48 }
 0x49b   :  { %4956 = vmatpush3.msra.mxu1 %v1983_v35  ;;  %4940 = vmatpush3.msra.mxu0 %v1875_v39 }
 0x49c   :  { %4957 = vmatprep.subr.mxu1 %v1982_v51  ;;  %4941 = vmatprep.subr.mxu0 %v1874_v52 }
 0x49d   :  { %v4878_v41 = vpop.f32.mrf.mxu0  ;;  %v4900_v55 = vpop.f32.mrf.mxu1  ;;  %4958 = vmatpush3.msra.mxu1 %v1982_v51  ;;  %4942 = vmatpush3.msra.mxu0 %v1874_v52  ;;  %v1622_v51 = vld [vmem:[#allocation4 + $0x28] sm:$0xff]  ;;  %v1621_v52 = vld [vmem:[#allocation4 + $0x20] sm:$0xff] }
 0x49e   :  { %v1612_v60 = vmax.f32 %v4878_v41, %v4900_v55  ;;  %v1624_v41 = vld [vmem:[#allocation4 + $0x38] sm:$0xff]  ;;  %v1623_v55 = vld [vmem:[#allocation4 + $0x30] sm:$0xff] }
 0x49f   :  { %v1466_v33 = vpop.f32.mrf.mxu0  ;;  %v1580_v56 = vpop.f32.mrf.mxu1 }
 0x4a0   :  { %v1611_v58 = vmax.f32 %v1466_v33, %v1580_v56  ;;  %v1626_v33 = vld [vmem:[#allocation4 + $0x48] sm:$0xff]  ;;  %v1625_v56 = vld [vmem:[#allocation4 + $0x40] sm:$0xff] }
 0x4a2   :  { %4914 = vmatprep.mubr.msk.f32.mxu0 %vm1635_vm12, %v1611_v58  ;;  %4930 = vmatprep.mubr.msk.f32.mxu1 %vm1635_vm12, %v1611_v58 }
 0x4a3   :  { %v4881_v61 = vpop.f32.mrf.mxu0  ;;  %v4903_v50 = vpop.f32.mrf.mxu1  ;;  %4915 = vmatmul.mubr.msk.f32.gmra.mxu0 %vm1635_vm12, %v1612_v60  ;;  %4931 = vmatmul.mubr.msk.f32.gmra.mxu1 %vm1635_vm12, %v1612_v60 }
 0x4a4   :  { %v1614_v4 = vmax.f32 %v4881_v61, %v4903_v50  ;;  %v1630_v61 = vld [vmem:[#allocation4 + $0x68] sm:$0xff]  ;;  %v1629_v50 = vld [vmem:[#allocation4 + $0x60] sm:$0xff] }
 0x4a5   :  { %v1476_v63 = vpop.f32.mrf.mxu0  ;;  %v1590_v1 = vpop.f32.mrf.mxu1 }
 0x4a6   :  { %v1613_v3 = vmax.f32 %v1476_v63, %v1590_v1  ;;  %v1632_v63 = vld [vmem:[#allocation4 + $0x78] sm:$0xff]  ;;  %v1631_v1 = vld [vmem:[#allocation4 + $0x70] sm:$0xff] }
 0x4a8   :  { %4917 = vmatprep.mubr.msk.f32.mxu0 %vm1635_vm12, %v1613_v3  ;;  %4933 = vmatprep.mubr.msk.f32.mxu1 %vm1635_vm12, %v1613_v3 }
 0x4a9   :  { %4918 = vmatmul.mubr.msk.f32.gmra.mxu0 %vm1635_vm12, %v1614_v4  ;;  %4934 = vmatmul.mubr.msk.f32.gmra.mxu1 %vm1635_vm12, %v1614_v4 }
 0x4ab   :  { %v4884_v6 = vpop.f32.mrf.mxu0  ;;  %v4906_v46 = vpop.f32.mrf.mxu1 }
 0x4ac   :  { %v1616_v5 = vmax.f32 %v4884_v6, %v4906_v46 }
 0x4ad   :  { %v1486_v49 = vpop.f32.mrf.mxu0  ;;  %v1600_v8 = vpop.f32.mrf.mxu1 }
 0x4ae   :  { %v1615_v2 = vmax.f32 %v1486_v49, %v1600_v8 }
 0x4b0   :  { %4920 = vmatprep.mubr.msk.f32.mxu0 %vm1635_vm12, %v1615_v2  ;;  %4936 = vmatprep.mubr.msk.f32.mxu1 %vm1635_vm12, %v1615_v2 }
 0x4b1   :  { %4921 = vmatmul.mubr.msk.f32.gmra.mxu0 %vm1635_vm12, %v1616_v5  ;;  %4937 = vmatmul.mubr.msk.f32.gmra.mxu1 %vm1635_vm12, %v1616_v5 }
 0x4b2   :  { %4943 = vmatprep.mubr.msk.f32.mxu0 %vm1635_vm12, %v1609_v47  ;;  %4959 = vmatprep.mubr.msk.f32.mxu1 %vm1635_vm12, %v1609_v47  ;;  %v1620_v47 = vld [vmem:[#allocation4 + $0x18] sm:$0xff] }
 0x4b5   :  { %4944 = vmatmul.mubr.msk.f32.vlgmr.msra.gmra.mxu0 %vm1635_vm12, %v1610_v48  ;;  %4960 = vmatmul.mubr.msk.f32.vlgmr.msra.gmra.mxu1 %vm1635_vm12, %v1610_v48  ;;  %v1619_v48 = vld [vmem:[#allocation4 + $0x10] sm:$0xff] }
 0x4b6   :  { %4946 = vmatprep.mubr.msk.f32.mxu0 %vm1635_vm12, %v1611_v58  ;;  %4962 = vmatprep.mubr.msk.f32.mxu1 %vm1635_vm12, %v1611_v58  ;;  %v1628_v58 = vld [vmem:[#allocation4 + $0x58] sm:$0xff] }
 0x4b9   :  { %4947 = vmatmul.mubr.msk.f32.gmra.mxu0 %vm1635_vm12, %v1612_v60  ;;  %4963 = vmatmul.mubr.msk.f32.gmra.mxu1 %vm1635_vm12, %v1612_v60  ;;  %v1627_v60 = vld [vmem:[#allocation4 + $0x50] sm:$0xff] }
 0x4ba   :  { %4949 = vmatprep.mubr.msk.f32.mxu0 %vm1635_vm12, %v1613_v3  ;;  %4965 = vmatprep.mubr.msk.f32.mxu1 %vm1635_vm12, %v1613_v3 }
 0x4bd   :  { %4950 = vmatmul.mubr.msk.f32.gmra.mxu0 %vm1635_vm12, %v1614_v4  ;;  %4966 = vmatmul.mubr.msk.f32.gmra.mxu1 %vm1635_vm12, %v1614_v4 }
 0x4be   :  { %4952 = vmatprep.mubr.msk.f32.mxu0 %vm1635_vm12, %v1615_v2  ;;  %4968 = vmatprep.mubr.msk.f32.mxu1 %vm1635_vm12, %v1615_v2 }
 0x4c1   :  { %4953 = vmatmul.mubr.msk.f32.gmra.mxu0 %vm1635_vm12, %v1616_v5  ;;  %4969 = vmatmul.mubr.msk.f32.gmra.mxu1 %vm1635_vm12, %v1616_v5 }
 0x4c2   :  { %2153 = vmatprep.mubr.f32.mxu0 %v1618_v10 }
 0x55a   :  { %v4913_v59 = vpop.f32.mrf.mxu0  ;;  %v4929_v11 = vpop.f32.mrf.mxu1 }
 0x55c   :  { %v1726_v13 = vpop.f32.mrf.mxu0  ;;  %v1834_v14 = vpop.f32.mrf.mxu1 }
 0x563   :  { %v4916_v15 = vpop.f32.mrf.mxu0  ;;  %v4932_v16 = vpop.f32.mrf.mxu1 }
 0x565   :  { %v1736_v62 = vpop.f32.mrf.mxu0  ;;  %v1844_v17 = vpop.f32.mrf.mxu1 }
 0x569   :  { %v4919_v18 = vpop.f32.mrf.mxu0  ;;  %v4935_v19 = vpop.f32.mrf.mxu1 }
 0x56b   :  { %v1746_v20 = vpop.f32.mrf.mxu0  ;;  %v1854_v21 = vpop.f32.mrf.mxu1 }
 0x571   :  { %v4922_v9 = vpop.f32.mrf.mxu0  ;;  %v4938_v12 = vpop.f32.mrf.mxu1 }
 0x573   :  { %v1756_v22 = vpop.f32.mrf.mxu0  ;;  %v1864_v27 = vpop.f32.mrf.mxu1 }
 0x575   :  { %v4961_v23 = vpop.f32.mrf.mxu1  ;;  %v4945_v28 = vpop.f32.mrf.mxu0 }
 0x577   :  { %v2050_v29 = vpop.f32.mrf.mxu1  ;;  %v1942_v31 = vpop.f32.mrf.mxu0 }
 0x579   :  { %v4964_v30 = vpop.f32.mrf.mxu1  ;;  %v4948_v34 = vpop.f32.mrf.mxu0 }
 0x57b   :  { %v2060_v32 = vpop.f32.mrf.mxu1  ;;  %v1952_v37 = vpop.f32.mrf.mxu0 }
 0x57d   :  { %v4967_v24 = vpop.f32.mrf.mxu1  ;;  %v4951_v39 = vpop.f32.mrf.mxu0 }
 0x57f   :  { %v2070_v36 = vpop.f32.mrf.mxu1  ;;  %v1962_v40 = vpop.f32.mrf.mxu0 }
 0x581   :  { %v4970_v26 = vpop.f32.mrf.mxu1  ;;  %v4954_v42 = vpop.f32.mrf.mxu0 }
 0x582   :  { %4488 = vmatprep.subr.mxu0 %v4970_v26 }
 0x583   :  { %v2080_v35 = vpop.f32.mrf.mxu1  ;;  %4489 = vmatpush3.msra.mxu0 %v4938_v12  ;;  %v1972_v44 = vpop.f32.mrf.mxu0 }
 0x584   :  { %4490 = vmatprep.subr.mxu0 %v2080_v35 }
 0x585   :  { %4491 = vmatpush3.msra.mxu0 %v1864_v27 }
 0x586   :  { %4492 = vmatprep.subr.mxu0 %v4967_v24 }
 0x587   :  { %4493 = vmatpush3.msra.mxu0 %v4935_v19 }
 0x588   :  { %4494 = vmatprep.subr.mxu0 %v2070_v36 }
 0x589   :  { %4495 = vmatpush3.msra.mxu0 %v1854_v21 }
 0x58a   :  { %4496 = vmatprep.subr.mxu0 %v4964_v30 }
 0x58b   :  { %4497 = vmatpush3.msra.mxu0 %v4932_v16 }
 0x58c   :  { %4498 = vmatprep.subr.mxu0 %v2060_v32 }
 0x58d   :  { %4499 = vmatpush3.msra.mxu0 %v1844_v17 }
 0x58e   :  { %4500 = vmatprep.subr.mxu0 %v4961_v23 }
 0x58f   :  { %4501 = vmatpush3.msra.mxu0 %v4929_v11 }
 0x590   :  { %4502 = vmatprep.subr.mxu0 %v2050_v29 }
 0x591   :  { %4503 = vmatpush3.msra.mxu0 %v1834_v14 }
 0x592   :  { %4504 = vmatprep.subr.mxu0 %v4954_v42 }
 0x593   :  { %4505 = vmatpush3.msra.mxu0 %v4922_v9 }
 0x594   :  { %4506 = vmatprep.subr.mxu0 %v1972_v44 }
 0x595   :  { %4507 = vmatpush3.msra.mxu0 %v1756_v22 }
 0x596   :  { %4508 = vmatprep.subr.mxu0 %v4951_v39 }
 0x597   :  { %4509 = vmatpush3.msra.mxu0 %v4919_v18 }
 0x598   :  { %4510 = vmatprep.subr.mxu0 %v1962_v40 }
 0x599   :  { %4511 = vmatpush3.msra.mxu0 %v1746_v20 }
 0x59a   :  { %4512 = vmatprep.subr.mxu0 %v4948_v34 }
 0x59b   :  { %4513 = vmatpush3.msra.mxu0 %v4916_v15 }
 0x59c   :  { %4514 = vmatprep.subr.mxu0 %v1952_v37 }
 0x59d   :  { %4515 = vmatpush3.msra.mxu0 %v1736_v62 }
 0x59e   :  { %4516 = vmatprep.subr.mxu0 %v4945_v28 }
 0x59f   :  { %4517 = vmatpush3.msra.mxu0 %v4913_v59 }
 0x5a0   :  { %4518 = vmatprep.subr.mxu0 %v1942_v31 }
 0x5a1   :  { %4519 = vmatpush3.msra.mxu0 %v1726_v13 }
 0x5a2   :  { %2154 = vmatmul.mubr.f32.vlgmr.msra.gmra.mxu0 %v1617_v45 }
 0x5a3   :  { %2158 = vmatprep.mubr.f32.mxu0 %v1620_v47 }
 0x5a6   :  { %2159 = vmatmul.mubr.f32.gmra.mxu0 %v1619_v48 }
 0x5a7   :  { %2163 = vmatprep.mubr.f32.mxu0 %v1622_v51 }
 0x5aa   :  { %2164 = vmatmul.mubr.f32.gmra.mxu0 %v1621_v52 }
 0x5ab   :  { %2168 = vmatprep.mubr.f32.mxu0 %v1624_v41 }
 0x5ae   :  { %2169 = vmatmul.mubr.f32.gmra.mxu0 %v1623_v55 }
 0x5af   :  { %2173 = vmatprep.mubr.f32.mxu0 %v1626_v33  ;;  %v5432_v33 = vmov 2  }
 0x5b0   :  { %5157 = vset.pattern.permute.xlu1 %v5432_v33  ;;  %5156 = vset.pattern.permute.xlu0 %v5432_v33 }
 0x5b2   :  { %2174 = vmatmul.mubr.f32.gmra.mxu0 %v1625_v56 }
 0x5b3   :  { %2178 = vmatprep.mubr.f32.mxu0 %v1628_v58 }
 0x5b6   :  { %2179 = vmatmul.mubr.f32.gmra.mxu0 %v1627_v60 }
 0x5b7   :  { %2183 = vmatprep.mubr.f32.mxu0 %v1630_v61 }
 0x5ba   :  { %2184 = vmatmul.mubr.f32.gmra.mxu0 %v1629_v50 }
 0x5bb   :  { %2188 = vmatprep.mubr.f32.mxu0 %v1632_v63 }
 0x5be   :  { %2189 = vmatmul.mubr.f32.gmra.mxu0 %v1631_v1 }
 0x662   :  { %v4520_v3 = vpop.f32.mrf.mxu0 }
 0x664   :  { %v4521_v4 = vpop.f32.mrf.mxu0 }
 0x665   :  { %v5791_v6 = vadd.f32 %v4521_v4, %v4520_v3 }
 0x666   :  { %v4523_v46 = vpop.f32.mrf.mxu0 }
 0x667   :  { %v2195_v49 = vsel %vm2194_vm13, %v5791_v6, 0.0  ;;  %v2227_v8 = vmul.f32 %v5791_v6, %v5791_v6 }
 0x668   :  { %v4524_v2 = vpop.f32.mrf.mxu0  ;;  %2196 = vadd.xlane.f32.xlu0 %v2195_v49 }
 0x669   :  { %v5797_v5 = vadd.f32 %v4524_v2, %v4523_v46  ;;  %v2235_v11 = vsel %vm2194_vm13, %v2227_v8, 0.0 }
 0x66a   :  { %v4526_v10 = vpop.f32.mrf.mxu0 }
 0x66b   :  { %v2198_v59 = vsel %vm2194_vm13, %v5797_v5, 0.0  ;;  %v2228_v13 = vmul.f32 %v5797_v5, %v5797_v5 }
 0x66c   :  { %v4527_v14 = vpop.f32.mrf.mxu0  ;;  %2199 = vadd.xlane.f32.xlu1 %v2198_v59  ;;  %2236 = vadd.xlane.f32.xlu0 %v2235_v11 }
 0x66d   :  { %v5804_v16 = vadd.f32 %v4527_v14, %v4526_v10  ;;  %v2238_v62 = vsel %vm2194_vm13, %v2228_v13, 0.0 }
 0x66e   :  { %v4529_v15 = vpop.f32.mrf.mxu0 }
 0x66f   :  { %v2201_v21 = vsel %vm2194_vm13, %v5804_v16, 0.0  ;;  %v2229_v12 = vmul.f32 %v5804_v16, %v5804_v16 }
 0x670   :  { %v4530_v17 = vpop.f32.mrf.mxu0  ;;  %2239 = vadd.xlane.f32.xlu0 %v2238_v62 }
 0x671   :  { %v5807_v18 = vadd.f32 %v4530_v17, %v4529_v15  ;;  %v2241_v29 = vsel %vm2194_vm13, %v2229_v12, 0.0 }
 0x672   :  { %v4532_v19 = vpop.f32.mrf.mxu0 }
 0x673   :  { %v2204_v20 = vsel %vm2194_vm13, %v5807_v18, 0.0  ;;  %v2230_v9 = vmul.f32 %v5807_v18, %v5807_v18 }
 0x674   :  { %v4533_v22 = vpop.f32.mrf.mxu0  ;;  %2205 = vadd.xlane.f32.xlu1 %v2204_v20  ;;  %2202 = vadd.xlane.f32.xlu0 %v2201_v21 }
 0x675   :  { %v5817_v23 = vadd.f32 %v4533_v22, %v4532_v19  ;;  %v2244_v28 = vsel %vm2194_vm13, %v2230_v9, 0.0 }
 0x676   :  { %v4535_v27 = vpop.f32.mrf.mxu0 }
 0x677   :  { %v2207_v34 = vsel %vm2194_vm13, %v5817_v23, 0.0  ;;  %v2231_v26 = vmul.f32 %v5817_v23, %v5817_v23 }
 0x678   :  { %v4536_v30 = vpop.f32.mrf.mxu0  ;;  %2245 = vadd.xlane.f32.xlu1 %v2244_v28  ;;  %2242 = vadd.xlane.f32.xlu0 %v2241_v29 }
 0x679   :  { %v5821_v31 = vadd.f32 %v4536_v30, %v4535_v27  ;;  %v2247_v42 = vsel %vm2194_vm13, %v2231_v26, 0.0 }
 0x67a   :  { %v4538_v32 = vpop.f32.mrf.mxu0 }
 0x67b   :  { %v2210_v24 = vsel %vm2194_vm13, %v5821_v31, 0.0  ;;  %v2232_v36 = vmul.f32 %v5821_v31, %v5821_v31 }
 0x67c   :  { %v4539_v37 = vpop.f32.mrf.mxu0  ;;  %2211 = vadd.xlane.f32.xlu1 %v2210_v24  ;;  %2208 = vadd.xlane.f32.xlu0 %v2207_v34 }
 0x67d   :  { %v5831_v39 = vadd.f32 %v4539_v37, %v4538_v32  ;;  %v2250_v40 = vsel %vm2194_vm13, %v2232_v36, 0.0 }
 0x67e   :  { %v4541_v35 = vpop.f32.mrf.mxu0 }
 0x67f   :  { %v2213_v48 = vsel %vm2194_vm13, %v5831_v39, 0.0  ;;  %v2233_v52 = vmul.f32 %v5831_v39, %v5831_v39 }
 0x680   :  { %v4542_v44 = vpop.f32.mrf.mxu0  ;;  %2251 = vadd.xlane.f32.xlu1 %v2250_v40  ;;  %2248 = vadd.xlane.f32.xlu0 %v2247_v42 }
 0x681   :  { %v5835_v45 = vadd.f32 %v4542_v44, %v4541_v35  ;;  %v2253_v55 = vsel %vm2194_vm13, %v2233_v52, 0.0 }
 0x683   :  { %v2216_v47 = vsel %vm2194_vm13, %v5835_v45, 0.0  ;;  %v2234_v51 = vmul.f32 %v5835_v45, %v5835_v45 }
 0x684   :  { %2217 = vadd.xlane.f32.xlu1 %v2216_v47  ;;  %2214 = vadd.xlane.f32.xlu0 %v2213_v48 }
 0x685   :  { %v2256_v41 = vsel %vm2194_vm13, %v2234_v51, 0.0 }
 0x688   :  { %2257 = vadd.xlane.f32.xlu1 %v2256_v41  ;;  %2254 = vadd.xlane.f32.xlu0 %v2253_v55 }
 0x6f1   :  { %v2197_v56 = vpop.xlane.xlu0 %2196 }
 0x6f2   :  { %v2219_v58 = vmul.f32 0.055555556, %v2197_v56 }
 0x6f4   :  { %v2267_v50 = vmul.f32 %v2219_v58, %v2219_v58 }
 0x6f5   :  { %v2200_v60 = vpop.xlane.xlu1 %2199  ;;  %v2237_v61 = vpop.xlane.xlu0 %2236 }
 0x6f6   :  { %v2220_v63 = vmul.f32 0.055555556, %v2200_v60  ;;  %v2259_v1 = vmul.f32 0.055555556, %v2237_v61 }
 0x6f8   :  { %v2275_v3 = vsub.f32 %v2259_v1, %v2267_v50  ;;  %v2268_v46 = vmul.f32 %v2220_v63, %v2220_v63 }
 0x6f9   :  { %v2240_v4 = vpop.xlane.xlu0 %2239 }
 0x6fa   :  { %v2283_v49 = vadd.f32 1e-05, %v2275_v3  ;;  %v2260_v8 = vmul.f32 0.055555556, %v2240_v4 }
 0x6fc   :  { %5185 = vrsqrt.f32 %v2283_v49  ;;  %v2276_v2 = vsub.f32 %v2260_v8, %v2268_v46 }
 0x6fd   :  { %v2206_v10 = vpop.xlane.xlu1 %2205  ;;  %v2203_v59 = vpop.xlane.xlu0 %2202 }
 0x6fe   :  { %v2284_v11 = vadd.f32 1e-05, %v2276_v2  ;;  %v2222_v13 = vmul.f32 0.055555556, %v2206_v10  ;;  %v2221_v14 = vmul.f32 0.055555556, %v2203_v59 }
 0x700   :  { %5187 = vrsqrt.f32 %v2284_v11  ;;  %v2270_v17 = vmul.f32 %v2222_v13, %v2222_v13  ;;  %v2269_v19 = vmul.f32 %v2221_v14, %v2221_v14 }
 0x701   :  { %v2246_v15 = vpop.xlane.xlu1 %2245  ;;  %v2243_v62 = vpop.xlane.xlu0 %2242 }
 0x702   :  { %v2262_v20 = vmul.f32 0.055555556, %v2246_v15  ;;  %v2261_v21 = vmul.f32 0.055555556, %v2243_v62 }
 0x704   :  { %v2278_v9 = vsub.f32 %v2262_v20, %v2270_v17  ;;  %v2277_v12 = vsub.f32 %v2261_v21, %v2269_v19 }
 0x705   :  { %v2212_v22 = vpop.xlane.xlu1 %2211  ;;  %v2209_v27 = vpop.xlane.xlu0 %2208 }
 0x706   :  { %v2286_v28 = vadd.f32 1e-05, %v2278_v9  ;;  %v2285_v29 = vadd.f32 1e-05, %v2277_v12  ;;  %v2224_v30 = vmul.f32 0.055555556, %v2212_v22 }
 0x707   :  { %v2223_v32 = vmul.f32 0.055555556, %v2209_v27 }
 0x708   :  { %5189 = vrsqrt.f32 %v2286_v28  ;;  %v2272_v34 = vmul.f32 %v2224_v30, %v2224_v30 }
 0x709   :  { %v5186_v24 = vpop.eup %5185  ;;  %5191 = vrsqrt.f32 %v2285_v29  ;;  %v2252_v36 = vpop.xlane.xlu1 %2251  ;;  %v2271_v37 = vmul.f32 %v2223_v32, %v2223_v32  ;;  %v2477_v29 = vld [vmem:[#allocation13 + $0x10] sm:$0x3] }
 0x70a   :  { %v2249_v26 = vpop.xlane.xlu0 %2248  ;;  %v2264_v35 = vmul.f32 0.055555556, %v2252_v36  ;;  %v2299_v42 = vmul.f32 %v5186_v24, %v5691_v25  ;;  %4971 = vmatprep.subr.msk.mxu1 %vm296_vm0, %v2477_v29  ;;  %v5870_v24 = vld [vmem:[#allocation7 + $0x8] sm:$0xff]  ;;  %v2475_v36 = vld [vmem:[#allocation13] sm:$0xff] }
 0x70b   :  { %v2263_v40 = vmul.f32 0.055555556, %v2249_v26  ;;  %4972 = vmatpush3.msk.msra.mxu1 %vm296_vm0, %v2477_v29 }
 0x70c   :  { %v2280_v44 = vsub.f32 %v2264_v35, %v2272_v34  ;;  %v2307_v48 = vmul.f32 %v2299_v42, %v2219_v58 }
 0x70d   :  { %v2279_v47 = vsub.f32 %v2263_v40, %v2271_v37  ;;  %v5188_v51 = vpop.eup %5187  ;;  %v2218_v52 = vpop.xlane.xlu1 %2217  ;;  %v5873_v37 = vld [vmem:[#allocation7 + $0x10] sm:$0xff] }
 0x70e   :  { %v2215_v41 = vpop.xlane.xlu0 %2214  ;;  %v2288_v55 = vadd.f32 1e-05, %v2280_v44  ;;  %v2226_v60 = vmul.f32 0.055555556, %v2218_v52  ;;  %2323 = vrot.lane.b32.xlu0 %v2307_v48, %s5430_s0  ;;  %v2300_v61 = vmul.f32 %v5188_v51, %v5688_v7  ;;  %v5879_v51 = vld [vmem:[#allocation7 + $0x28] sm:$0xff] }
 0x70f   :  { %v2287_v56 = vadd.f32 1e-05, %v2279_v47  ;;  %v2225_v50 = vmul.f32 0.055555556, %v2215_v41  ;;  %v5882_v41 = vld [vmem:[#allocation7 + $0x20] sm:$0xff] }
 0x710   :  { %5193 = vrsqrt.f32 %v2288_v55  ;;  %v2308_v1 = vmul.f32 %v2300_v61, %v2220_v63  ;;  %v2274_v25 = vmul.f32 %v2226_v60, %v2226_v60 }
 0x711   :  { %5195 = vrsqrt.f32 %v2287_v56  ;;  %v2258_v3 = vpop.xlane.xlu1 %2257  ;;  %v2273_v46 = vmul.f32 %v2225_v50, %v2225_v50  ;;  %v2613_v56 = vld [vmem:[#allocation13 + $0x28] sm:$0x3] }
 0x712   :  { %v2255_v4 = vpop.xlane.xlu0 %2254  ;;  %v2266_v49 = vmul.f32 0.055555556, %v2258_v3  ;;  %2325 = vrot.lane.b32.xlu1 %v2308_v1, %s5430_s0  ;;  %v5890_v3 = vld [vmem:[#allocation7 + $0x38] sm:$0xff] }
 0x713   :  { %v2265_v58 = vmul.f32 0.055555556, %v2255_v4 }
 0x714   :  { %v2282_v8 = vsub.f32 %v2266_v49, %v2274_v25 }
 0x715   :  { %v2281_v2 = vsub.f32 %v2265_v58, %v2273_v46  ;;  %v5190_v10 = vpop.eup %5189 }
 0x716   :  { %v5192_v59 = vpop.eup %5191  ;;  %v2290_v11 = vadd.f32 1e-05, %v2282_v8  ;;  %v2302_v62 = vmul.f32 %v5190_v10, %v5698_v43 }
 0x717   :  { %v2289_v15 = vadd.f32 1e-05, %v2281_v2  ;;  %v2301_v7 = vmul.f32 %v5192_v59, %v5695_v38 }
 0x718   :  { %5197 = vrsqrt.f32 %v2290_v11  ;;  %v2310_v19 = vmul.f32 %v2302_v62, %v2222_v13 }
 0x719   :  { %5199 = vrsqrt.f32 %v2289_v15  ;;  %v2309_v63 = vmul.f32 %v2301_v7, %v2221_v14 }
 0x71b   :  { %2327 = vrot.lane.b32.xlu1 %v2309_v63, %s5430_s0 }
 0x71d   :  { %v5194_v17 = vpop.eup %5193 }
 0x71e   :  { %v5196_v20 = vpop.eup %5195  ;;  %v2304_v21 = vmul.f32 %v5194_v17, %v5707_v57 }
 0x71f   :  { %2329 = vrot.lane.b32.xlu1 %v2310_v19, %s5430_s0  ;;  %v2303_v9 = vmul.f32 %v5196_v20, %v5704_v54  ;;  %v5433_v54 = vmov 3  }
 0x720   :  { %v2312_v12 = vmul.f32 %v2304_v21, %v2224_v30 }
 0x721   :  { %v2311_v22 = vmul.f32 %v2303_v9, %v2223_v32  ;;  %v2476_v32 = vld [vmem:[#allocation13 + $0x8] sm:$0xff] }
 0x722   :  { %4973 = vmatprep.subr.mxu1 %v2476_v32 }
 0x723   :  { %2333 = vrot.lane.b32.xlu1 %v2312_v12, %s5430_s0  ;;  %2331 = vrot.lane.b32.xlu0 %v2311_v22, %s5430_s0 }
 0x724   :  { %4974 = vmatpush3.msra.mxu1 %v2476_v32 }
 0x725   :  { %v5198_v38 = vpop.eup %5197  ;;  %4975 = vmatprep.subr.mxu1 %v2475_v36 }
 0x726   :  { %v5200_v14 = vpop.eup %5199  ;;  %v2306_v43 = vmul.f32 %v5198_v38, %v5716_v53  ;;  %v5865_v53 = vld [vmem:[#allocation7] sm:$0xff]  ;;  %4976 = vmatpush3.msra.mxu1 %v2475_v36 }
 0x727   :  { %v2305_v27 = vmul.f32 %v5200_v14, %v5713_v0  ;;  %4989 = vmatprep.subr.msk.mxu1 %vm296_vm0, %v2613_v56 }
 0x728   :  { %v2314_v13 = vmul.f32 %v2306_v43, %v2226_v60 }
 0x729   :  { %v2313_v28 = vmul.f32 %v2305_v27, %v2225_v50  ;;  %v5887_v50 = vld [vmem:[#allocation7 + $0x30] sm:$0xff] }
 0x72a   :  { %2337 = vrot.lane.b32.xlu1 %v2314_v13, %s5430_s0 }
 0x72b   :  { %2335 = vrot.lane.b32.xlu0 %v2313_v28, %s5430_s0 }
 0x72e   :  { %2362 = vperm.xlu1 %5157, %v2300_v61  }
 0x72f   :  { %2357 = vperm.xlu0 %5156, %v2299_v42   ;;  %v5876_v42 = vld [vmem:[#allocation7 + $0x18] sm:$0xff] }
 0x732   :  { %2367 = vperm.xlu1 %5157, %v2301_v7  }
 0x733   :  { %2377 = vperm.xlu0 %5156, %v2303_v9  }
 0x736   :  { %2372 = vperm.xlu1 %5157, %v2302_v62  }
 0x737   :  { %5159 = vset.pattern.permute.xlu0 %v5433_v54 }
 0x73a   :  { %2382 = vperm.xlu1 %5157, %v2304_v21   ;;  %v2612_v21 = vld [vmem:[#allocation13 + $0x20] sm:$0xff] }
 0x73e   :  { %2387 = vperm.xlu1 %5157, %v2305_v27  }
 0x742   :  { %5158 = vset.pattern.permute.xlu1 %v5433_v54 }
 0x780   :  { %v2324_v57 = vpop.permute.xlu0 %2323 }
 0x781   :  { %v2347_v0 = vsub.f32 %v5865_v53, %v2324_v57 }
 0x783   :  { %2405 = vperm.xlu1 %5158, %v2347_v0  }
 0x784   :  { %v2326_v30 = vpop.permute.xlu1 %2325 }
 0x785   :  { %v2348_v34 = vsub.f32 %v5870_v24, %v2326_v30 }
 0x787   :  { %2410 = vperm.xlu0 %5159, %v2348_v34  }
 0x78d   :  { %v2328_v26 = vpop.permute.xlu1 %2327 }
 0x78e   :  { %v2349_v35 = vsub.f32 %v5873_v37, %v2328_v26 }
 0x790   :  { %2415 = vperm.xlu0 %5159, %v2349_v35  }
 0x791   :  { %v2330_v40 = vpop.permute.xlu1 %2329 }
 0x792   :  { %v2350_v44 = vsub.f32 %v5876_v42, %v2330_v40 }
 0x794   :  { %2420 = vperm.xlu1 %5158, %v2350_v44  }
 0x795   :  { %v2334_v47 = vpop.permute.xlu1 %2333  ;;  %v2332_v48 = vpop.permute.xlu0 %2331 }
 0x796   :  { %v2352_v52 = vsub.f32 %v5879_v51, %v2334_v47  ;;  %v2351_v55 = vsub.f32 %v5882_v41, %v2332_v48 }
 0x798   :  { %2430 = vperm.xlu0 %5159, %v2352_v52   ;;  %2425 = vperm.xlu1 %5158, %v2351_v55  }
 0x79c   :  { %5160 = vset.pattern.permute.xlu1 %v5432_v33  ;;  %v2338_v60 = vpop.permute.xlu1 %2337 }
 0x79d   :  { %2392 = vperm.xlu1 %5160, %v2306_v43   ;;  %v2336_v61 = vpop.permute.xlu0 %2335  ;;  %v2354_v4 = vsub.f32 %v5890_v3, %v2338_v60  ;;  %v4299_v60 = vld [vmem:[%s6114_s9 + $0x18] sm:$0xff] }
 0x79e   :  { %v2353_v1 = vsub.f32 %v5887_v50, %v2336_v61  ;;  %v4290_v61 = vld [vmem:[%s6114_s9 + $0x10] sm:$0xff] }
 0x7a0   :  { %2435 = vperm.xlu0 %5159, %v2353_v1  }
 0x7a1   :  { %5161 = vset.pattern.permute.xlu1 %v5433_v54 }
 0x7a2   :  { %2440 = vperm.xlu1 %5161, %v2354_v4  }
 0x7a9   :  { %v2363_v25 = vpop.permute.xlu1 %2362 }
 0x7aa   :  { %v2358_v8 = vpop.permute.xlu0 %2357  ;;  %v2396_v15 = vmul.f32 %v5797_v5, %v2363_v25 }
 0x7ab   :  { %v2395_v2 = vmul.f32 %v5791_v6, %v2358_v8  ;;  %v2611_v6 = vld [vmem:[#allocation13 + $0x18] sm:$0xff] }
 0x7ad   :  { %v2368_v46 = vpop.permute.xlu1 %2367 }
 0x7ae   :  { %v2378_v10 = vpop.permute.xlu0 %2377  ;;  %v2397_v9 = vmul.f32 %v5804_v16, %v2368_v46 }
 0x7af   :  { %v2399_v13 = vmul.f32 %v5817_v23, %v2378_v10 }
 0x7b1   :  { %v2373_v49 = vpop.permute.xlu1 %2372 }
 0x7b2   :  { %v2398_v22 = vmul.f32 %v5807_v18, %v2373_v49 }
 0x7b5   :  { %v2383_v58 = vpop.permute.xlu1 %2382 }
 0x7b6   :  { %v2400_v28 = vmul.f32 %v5821_v31, %v2383_v58 }
 0x7b9   :  { %v2388_v33 = vpop.permute.xlu1 %2387 }
 0x7ba   :  { %v2401_v23 = vmul.f32 %v5831_v39, %v2388_v33  ;;  %v4281_v39 = vld [vmem:[%s6114_s9 + $0x8] sm:$0xff] }
 0x7bb   :  { %5021 = vmatprep.subr.mxu0 %v4281_v39 }
 0x7bc   :  { %5022 = vmatpush3.msra.mxu0 %v4281_v39 }
 0x7bd   :  { %5049 = vmatprep.subr.mxu0 %v4299_v60 }
 0x7fe   :  { %v2406_v59 = vpop.permute.xlu1 %2405 }
 0x7ff   :  { %v2443_v11 = vadd.f32 %v2406_v59, %v2395_v2 }
 0x801   :  { %vm2451_vm14 = vcmp.ge.f32.partialorder %v2443_v11, 0.0  ;;  %v2459_v7 = vmul.f32 0.01, %v2443_v11 }
 0x802   :  { %v2411_v63 = vpop.permute.xlu0 %2410 }
 0x803   :  { %v2444_v62 = vadd.f32 %v2411_v63, %v2396_v15  ;;  %v2467_v17 = vsel %vm2451_vm14, %v2443_v11, %v2459_v7 }
 0x804   :  { %4977 = vmatprep.mubr.msk.f32.mxu1 %vm2194_vm13, %v2467_v17 }
 0x805   :  { %vm2452_vm15 = vcmp.ge.f32.partialorder %v2444_v62, 0.0  ;;  %v2460_v19 = vmul.f32 0.01, %v2444_v62 }
 0x807   :  { %v2468_v20 = vsel %vm2452_vm15, %v2444_v62, %v2460_v19 }
 0x808   :  { %4978 = vmatmul.mubr.msk.f32.vlgmr.msra.gmra.mxu1 %vm2194_vm13, %v2468_v20 }
 0x809   :  { %4990 = vmatpush3.msk.msra.mxu1 %vm296_vm0, %v2613_v56 }
 0x80a   :  { %4991 = vmatprep.subr.mxu1 %v2612_v21 }
 0x80b   :  { %v2416_v5 = vpop.permute.xlu0 %2415  ;;  %4992 = vmatpush3.msra.mxu1 %v2612_v21 }
 0x80c   :  { %v2445_v12 = vadd.f32 %v2416_v5, %v2397_v9  ;;  %4993 = vmatprep.subr.mxu1 %v2611_v6 }
 0x80d   :  { %4994 = vmatpush3.msra.mxu1 %v2611_v6 }
 0x80e   :  { %vm2453_vm1 = vcmp.ge.f32.partialorder %v2445_v12, 0.0  ;;  %v2461_v38 = vmul.f32 0.01, %v2445_v12 }
 0x80f   :  { %v2421_v14 = vpop.permute.xlu1 %2420 }
 0x810   :  { %v2446_v43 = vadd.f32 %v2421_v14, %v2398_v22  ;;  %v2469_v27 = vsel %vm2453_vm1, %v2445_v12, %v2461_v38  ;;  %v2732_v22 = vld [vmem:[#allocation4 + $0x88] sm:$0xff] }
 0x811   :  { %4980 = vmatprep.mubr.msk.f32.mxu1 %vm2194_vm13, %v2469_v27 }
 0x812   :  { %vm2454_vm0 = vcmp.ge.f32.partialorder %v2446_v43, 0.0  ;;  %v2462_v16 = vmul.f32 0.01, %v2446_v43 }
 0x813   :  { %v2426_v54 = vpop.permute.xlu1 %2425  ;;  %v2431_v57 = vpop.permute.xlu0 %2430 }
 0x814   :  { %v2447_v0 = vadd.f32 %v2426_v54, %v2399_v13  ;;  %v2448_v29 = vadd.f32 %v2431_v57, %v2400_v28  ;;  %v2470_v30 = vsel %vm2454_vm0, %v2446_v43, %v2462_v16 }
 0x815   :  { %4981 = vmatmul.mubr.msk.f32.gmra.mxu1 %vm2194_vm13, %v2470_v30 }
 0x816   :  { %vm2455_vm2 = vcmp.ge.f32.partialorder %v2447_v0, 0.0  ;;  %v2463_v18 = vmul.f32 0.01, %v2447_v0  ;;  %vm2456_vm3 = vcmp.ge.f32.partialorder %v2448_v29, 0.0  ;;  %v2464_v32 = vmul.f32 0.01, %v2448_v29 }
 0x818   :  { %v2393_v34 = vpop.permute.xlu1 %2392  ;;  %v2471_v36 = vsel %vm2455_vm2, %v2447_v0, %v2463_v18  ;;  %v2472_v26 = vsel %vm2456_vm3, %v2448_v29, %v2464_v32 }
 0x819   :  { %4983 = vmatprep.mubr.msk.f32.mxu1 %vm2194_vm13, %v2471_v36  ;;  %v2402_v35 = vmul.f32 %v5835_v45, %v2393_v34  ;;  %v2747_v45 = vld [vmem:[%s6114_s9] sm:$0xff] }
 0x81a   :  { %4984 = vmatmul.mubr.msk.f32.gmra.mxu1 %vm2194_vm13, %v2472_v26  ;;  %5007 = vmatprep.subr.mxu1 %v2747_v45 }
 0x81b   :  { %v2436_v31 = vpop.permute.xlu0 %2435 }
 0x81c   :  { %v2449_v40 = vadd.f32 %v2436_v31, %v2401_v23 }
 0x81d   :  { %v2441_v44 = vpop.permute.xlu1 %2440 }
 0x81e   :  { %vm2457_vm4 = vcmp.ge.f32.partialorder %v2449_v40, 0.0  ;;  %v2465_v47 = vmul.f32 0.01, %v2449_v40  ;;  %v2450_v48 = vadd.f32 %v2441_v44, %v2402_v35 }
 0x820   :  { %vm2458_vm5 = vcmp.ge.f32.partialorder %v2450_v48, 0.0  ;;  %v2466_v52 = vmul.f32 0.01, %v2450_v48  ;;  %v2473_v55 = vsel %vm2457_vm4, %v2449_v40, %v2465_v47 }
 0x821   :  { %4986 = vmatprep.mubr.msk.f32.mxu1 %vm2194_vm13, %v2473_v55 }
 0x822   :  { %v2474_v56 = vsel %vm2458_vm5, %v2450_v48, %v2466_v52 }
 0x823   :  { %4987 = vmatmul.mubr.msk.f32.gmra.mxu1 %vm2194_vm13, %v2474_v56 }
 0x824   :  { %4995 = vmatprep.mubr.msk.f32.mxu1 %vm2194_vm13, %v2467_v17 }
 0x827   :  { %4996 = vmatmul.mubr.msk.f32.vlgmr.msra.gmra.mxu1 %vm2194_vm13, %v2468_v20 }
 0x828   :  { %4998 = vmatprep.mubr.msk.f32.mxu1 %vm2194_vm13, %v2469_v27  ;;  %5008 = vmatpush3.msra.mxu1 %v2747_v45 }
 0x829   :  { %5035 = vmatprep.subr.mxu1 %v4290_v61 }
 0x82b   :  { %4999 = vmatmul.mubr.msk.f32.gmra.mxu1 %vm2194_vm13, %v2470_v30 }
 0x82c   :  { %5001 = vmatprep.mubr.msk.f32.mxu1 %vm2194_vm13, %v2471_v36 }
 0x82f   :  { %5002 = vmatmul.mubr.msk.f32.gmra.mxu1 %vm2194_vm13, %v2472_v26 }
 0x830   :  { %5004 = vmatprep.mubr.msk.f32.mxu1 %vm2194_vm13, %v2473_v55 }
 0x833   :  { %5005 = vmatmul.mubr.msk.f32.gmra.mxu1 %vm2194_vm13, %v2474_v56 }
 0x8c8   :  { %v4979_v1 = vpop.f32.mrf.mxu1 }
 0x8ca   :  { %v2571_v4 = vpop.f32.mrf.mxu1 }
 0x8d5   :  { %v4982_v25 = vpop.f32.mrf.mxu1 }
 0x8d7   :  { %v2581_v46 = vpop.f32.mrf.mxu1 }
 0x8da   :  { %v4985_v49 = vpop.f32.mrf.mxu1 }
 0x8dc   :  { %v2591_v58 = vpop.f32.mrf.mxu1 }
 0x8e3   :  { %v4988_v8 = vpop.f32.mrf.mxu1 }
 0x8e5   :  { %v2601_v33 = vpop.f32.mrf.mxu1 }
 0x8e7   :  { %v4997_v2 = vpop.f32.mrf.mxu1 }
 0x8e8   :  { %v2723_v11 = vmax.f32 %v4979_v1, %v4997_v2  ;;  %v2740_v2 = vld [vmem:[#allocation4 + $0xc8] sm:$0xff] }
 0x8e9   :  { %v2683_v10 = vpop.f32.mrf.mxu1 }
 0x8ea   :  { %v2722_v59 = vmax.f32 %v2571_v4, %v2683_v10  ;;  %v2731_v4 = vld [vmem:[#allocation4 + $0x80] sm:$0xff] }
 0x8eb   :  { %v5000_v15 = vpop.f32.mrf.mxu1  ;;  %v2739_v10 = vld [vmem:[#allocation4 + $0xc0] sm:$0xff] }
 0x8ec   :  { %5009 = vmatprep.mubr.msk.f32.mxu1 %vm2748_vm6, %v2722_v59  ;;  %5023 = vmatprep.mubr.msk.f32.mxu0 %vm2748_vm6, %v2722_v59  ;;  %v2725_v62 = vmax.f32 %v4982_v25, %v5000_v15  ;;  %v2734_v25 = vld [vmem:[#allocation4 + $0x98] sm:$0xff]  ;;  %v2744_v15 = vld [vmem:[#allocation4 + $0xe8] sm:$0xff] }
 0x8ed   :  { %v2693_v7 = vpop.f32.mrf.mxu1  ;;  %5010 = vmatmul.mubr.msk.f32.vlgmr.msra.gmra.mxu1 %vm2748_vm6, %v2723_v11  ;;  %5024 = vmatmul.mubr.msk.f32.vlgmr.msra.gmra.mxu0 %vm2748_vm6, %v2723_v11 }
 0x8ee   :  { %v2724_v63 = vmax.f32 %v2581_v46, %v2693_v7  ;;  %5050 = vmatpush3.msra.mxu0 %v4299_v60  ;;  %5036 = vmatpush3.msra.mxu1 %v4290_v61  ;;  %v2733_v46 = vld [vmem:[#allocation4 + $0x90] sm:$0xff]  ;;  %v2743_v7 = vld [vmem:[#allocation4 + $0xe0] sm:$0xff] }
 0x8ef   :  { %v5003_v17 = vpop.f32.mrf.mxu1 }
 0x8f0   :  { %5012 = vmatprep.mubr.msk.f32.mxu1 %vm2748_vm6, %v2724_v63  ;;  %5026 = vmatprep.mubr.msk.f32.mxu0 %vm2748_vm6, %v2724_v63  ;;  %v2727_v21 = vmax.f32 %v4985_v49, %v5003_v17  ;;  %v2736_v49 = vld [vmem:[#allocation4 + $0xa8] sm:$0xff] }
 0x8f1   :  { %v2703_v19 = vpop.f32.mrf.mxu1  ;;  %5013 = vmatmul.mubr.msk.f32.gmra.mxu1 %vm2748_vm6, %v2725_v62  ;;  %5027 = vmatmul.mubr.msk.f32.gmra.mxu0 %vm2748_vm6, %v2725_v62 }
 0x8f2   :  { %v2726_v20 = vmax.f32 %v2591_v58, %v2703_v19  ;;  %v2735_v58 = vld [vmem:[#allocation4 + $0xa0] sm:$0xff] }
 0x8f3   :  { %v5006_v6 = vpop.f32.mrf.mxu1 }
 0x8f4   :  { %5015 = vmatprep.mubr.msk.f32.mxu1 %vm2748_vm6, %v2726_v20  ;;  %5029 = vmatprep.mubr.msk.f32.mxu0 %vm2748_vm6, %v2726_v20  ;;  %v2729_v12 = vmax.f32 %v4988_v8, %v5006_v6  ;;  %v2738_v8 = vld [vmem:[#allocation4 + $0xb8] sm:$0xff] }
 0x8f5   :  { %v2713_v9 = vpop.f32.mrf.mxu1  ;;  %5016 = vmatmul.mubr.msk.f32.gmra.mxu1 %vm2748_vm6, %v2727_v21  ;;  %5030 = vmatmul.mubr.msk.f32.gmra.mxu0 %vm2748_vm6, %v2727_v21 }
 0x8f6   :  { %v2728_v5 = vmax.f32 %v2601_v33, %v2713_v9  ;;  %v2737_v33 = vld [vmem:[#allocation4 + $0xb0] sm:$0xff] }
 0x8f8   :  { %5018 = vmatprep.mubr.msk.f32.mxu1 %vm2748_vm6, %v2728_v5  ;;  %5032 = vmatprep.mubr.msk.f32.mxu0 %vm2748_vm6, %v2728_v5 }
 0x8f9   :  { %5019 = vmatmul.mubr.msk.f32.gmra.mxu1 %vm2748_vm6, %v2729_v12  ;;  %5033 = vmatmul.mubr.msk.f32.gmra.mxu0 %vm2748_vm6, %v2729_v12 }
 0x8fa   :  { %5037 = vmatprep.mubr.msk.f32.mxu1 %vm2748_vm6, %v2722_v59  ;;  %5051 = vmatprep.mubr.msk.f32.mxu0 %vm2748_vm6, %v2722_v59  ;;  %v2742_v59 = vld [vmem:[#allocation4 + $0xd8] sm:$0xff] }
 0x8fd   :  { %5038 = vmatmul.mubr.msk.f32.vlgmr.msra.gmra.mxu1 %vm2748_vm6, %v2723_v11  ;;  %5052 = vmatmul.mubr.msk.f32.vlgmr.msra.gmra.mxu0 %vm2748_vm6, %v2723_v11  ;;  %v2741_v11 = vld [vmem:[#allocation4 + $0xd0] sm:$0xff] }
 0x8fe   :  { %5040 = vmatprep.mubr.msk.f32.mxu1 %vm2748_vm6, %v2724_v63  ;;  %5054 = vmatprep.mubr.msk.f32.mxu0 %vm2748_vm6, %v2724_v63  ;;  %v2746_v63 = vld [vmem:[#allocation4 + $0xf8] sm:$0xff] }
 0x901   :  { %5041 = vmatmul.mubr.msk.f32.gmra.mxu1 %vm2748_vm6, %v2725_v62  ;;  %5055 = vmatmul.mubr.msk.f32.gmra.mxu0 %vm2748_vm6, %v2725_v62  ;;  %v2745_v62 = vld [vmem:[#allocation4 + $0xf0] sm:$0xff] }
 0x902   :  { %5043 = vmatprep.mubr.msk.f32.mxu1 %vm2748_vm6, %v2726_v20  ;;  %5057 = vmatprep.mubr.msk.f32.mxu0 %vm2748_vm6, %v2726_v20 }
 0x905   :  { %5044 = vmatmul.mubr.msk.f32.gmra.mxu1 %vm2748_vm6, %v2727_v21  ;;  %5058 = vmatmul.mubr.msk.f32.gmra.mxu0 %vm2748_vm6, %v2727_v21 }
 0x906   :  { %5046 = vmatprep.mubr.msk.f32.mxu1 %vm2748_vm6, %v2728_v5  ;;  %5060 = vmatprep.mubr.msk.f32.mxu0 %vm2748_vm6, %v2728_v5 }
 0x909   :  { %5047 = vmatmul.mubr.msk.f32.gmra.mxu1 %vm2748_vm6, %v2729_v12  ;;  %5061 = vmatmul.mubr.msk.f32.gmra.mxu0 %vm2748_vm6, %v2729_v12 }
 0x90a   :  { %3263 = vmatprep.mubr.f32.mxu1 %v2732_v22 }
 0x9ad   :  { %v5011_v38 = vpop.f32.mrf.mxu1  ;;  %v5025_v14 = vpop.f32.mrf.mxu0 }
 0x9af   :  { %v2839_v43 = vpop.f32.mrf.mxu1  ;;  %v2946_v27 = vpop.f32.mrf.mxu0 }
 0x9b1   :  { %v5014_v13 = vpop.f32.mrf.mxu1  ;;  %v5028_v28 = vpop.f32.mrf.mxu0 }
 0x9b3   :  { %v2849_v16 = vpop.f32.mrf.mxu1  ;;  %v2956_v54 = vpop.f32.mrf.mxu0 }
 0x9b5   :  { %v5017_v57 = vpop.f32.mrf.mxu1  ;;  %v5031_v0 = vpop.f32.mrf.mxu0 }
 0x9b7   :  { %v2859_v29 = vpop.f32.mrf.mxu1  ;;  %v2966_v30 = vpop.f32.mrf.mxu0 }
 0x9b9   :  { %v5020_v18 = vpop.f32.mrf.mxu1  ;;  %v5034_v32 = vpop.f32.mrf.mxu0 }
 0x9bb   :  { %v2869_v34 = vpop.f32.mrf.mxu1  ;;  %v2976_v36 = vpop.f32.mrf.mxu0 }
 0x9bd   :  { %v5053_v26 = vpop.f32.mrf.mxu0  ;;  %v5039_v23 = vpop.f32.mrf.mxu1 }
 0x9bf   :  { %v3160_v31 = vpop.f32.mrf.mxu0  ;;  %v3053_v40 = vpop.f32.mrf.mxu1 }
 0x9c1   :  { %v5056_v35 = vpop.f32.mrf.mxu0  ;;  %v5042_v48 = vpop.f32.mrf.mxu1 }
 0x9c3   :  { %v3170_v44 = vpop.f32.mrf.mxu0  ;;  %v3063_v56 = vpop.f32.mrf.mxu1 }
 0x9c5   :  { %v5059_v47 = vpop.f32.mrf.mxu0  ;;  %v5045_v45 = vpop.f32.mrf.mxu1 }
 0x9c7   :  { %v3180_v52 = vpop.f32.mrf.mxu0  ;;  %v3073_v60 = vpop.f32.mrf.mxu1 }
 0x9c9   :  { %v5062_v55 = vpop.f32.mrf.mxu0  ;;  %v5048_v61 = vpop.f32.mrf.mxu1 }
 0x9ca   :  { %4602 = vmatprep.subr.mxu1 %v5062_v55 }
 0x9cb   :  { %v3190_v39 = vpop.f32.mrf.mxu0  ;;  %4603 = vmatpush3.msra.mxu1 %v5034_v32  ;;  %v3083_v1 = vpop.f32.mrf.mxu1 }
 0x9cc   :  { %4604 = vmatprep.subr.mxu1 %v3190_v39 }
 0x9cd   :  { %4605 = vmatpush3.msra.mxu1 %v2976_v36 }
 0x9ce   :  { %4606 = vmatprep.subr.mxu1 %v5059_v47 }
 0x9cf   :  { %4607 = vmatpush3.msra.mxu1 %v5031_v0 }
 0x9d0   :  { %4608 = vmatprep.subr.mxu1 %v3180_v52 }
 0x9d1   :  { %4609 = vmatpush3.msra.mxu1 %v2966_v30 }
 0x9d2   :  { %4610 = vmatprep.subr.mxu1 %v5056_v35 }
 0x9d3   :  { %4611 = vmatpush3.msra.mxu1 %v5028_v28 }
 0x9d4   :  { %4612 = vmatprep.subr.mxu1 %v3170_v44 }
 0x9d5   :  { %4613 = vmatpush3.msra.mxu1 %v2956_v54 }
 0x9d6   :  { %4614 = vmatprep.subr.mxu1 %v5053_v26 }
 0x9d7   :  { %4615 = vmatpush3.msra.mxu1 %v5025_v14 }
 0x9d8   :  { %4616 = vmatprep.subr.mxu1 %v3160_v31 }
 0x9d9   :  { %4617 = vmatpush3.msra.mxu1 %v2946_v27 }
 0x9da   :  { %4618 = vmatprep.subr.mxu1 %v5048_v61 }
 0x9db   :  { %4619 = vmatpush3.msra.mxu1 %v5020_v18 }
 0x9dc   :  { %4620 = vmatprep.subr.mxu1 %v3083_v1 }
 0x9dd   :  { %4621 = vmatpush3.msra.mxu1 %v2869_v34 }
 0x9de   :  { %4622 = vmatprep.subr.mxu1 %v5045_v45 }
 0x9df   :  { %4623 = vmatpush3.msra.mxu1 %v5017_v57 }
 0x9e0   :  { %4624 = vmatprep.subr.mxu1 %v3073_v60 }
 0x9e1   :  { %4625 = vmatpush3.msra.mxu1 %v2859_v29 }
 0x9e2   :  { %4626 = vmatprep.subr.mxu1 %v5042_v48 }
 0x9e3   :  { %4627 = vmatpush3.msra.mxu1 %v5014_v13 }
 0x9e4   :  { %4628 = vmatprep.subr.mxu1 %v3063_v56 }
 0x9e5   :  { %4629 = vmatpush3.msra.mxu1 %v2849_v16 }
 0x9e6   :  { %4630 = vmatprep.subr.mxu1 %v5039_v23 }
 0x9e7   :  { %4631 = vmatpush3.msra.mxu1 %v5011_v38 }
 0x9e8   :  { %4632 = vmatprep.subr.mxu1 %v3053_v40 }
 0x9e9   :  { %4633 = vmatpush3.msra.mxu1 %v2839_v43 }
 0x9ea   :  { %3264 = vmatmul.mubr.f32.vlgmr.msra.gmra.mxu1 %v2731_v4 }
 0x9eb   :  { %3268 = vmatprep.mubr.f32.mxu1 %v2734_v25 }
 0x9ee   :  { %3269 = vmatmul.mubr.f32.gmra.mxu1 %v2733_v46 }
 0x9ef   :  { %3273 = vmatprep.mubr.f32.mxu1 %v2736_v49 }
 0x9f2   :  { %3274 = vmatmul.mubr.f32.gmra.mxu1 %v2735_v58 }
 0x9f3   :  { %3278 = vmatprep.mubr.f32.mxu1 %v2738_v8 }
 0x9f6   :  { %3279 = vmatmul.mubr.f32.gmra.mxu1 %v2737_v33 }
 0x9f7   :  { %3283 = vmatprep.mubr.f32.mxu1 %v2740_v2  ;;  %v5434_v2 = vmov 4  }
 0x9f8   :  { %5163 = vset.pattern.permute.xlu1 %v5434_v2  ;;  %5162 = vset.pattern.permute.xlu0 %v5434_v2 }
 0x9fa   :  { %3284 = vmatmul.mubr.f32.gmra.mxu1 %v2739_v10 }
 0x9fb   :  { %3288 = vmatprep.mubr.f32.mxu1 %v2742_v59 }
 0x9fe   :  { %3289 = vmatmul.mubr.f32.gmra.mxu1 %v2741_v11 }
 0x9ff   :  { %3293 = vmatprep.mubr.f32.mxu1 %v2744_v15 }
 0xa02   :  { %3294 = vmatmul.mubr.f32.gmra.mxu1 %v2743_v7 }
 0xa03   :  { %3298 = vmatprep.mubr.f32.mxu1 %v2746_v63 }
 0xa06   :  { %3299 = vmatmul.mubr.f32.gmra.mxu1 %v2745_v62 }
 0xaaa   :  { %v4634_v17 = vpop.f32.mrf.mxu1 }
 0xaac   :  { %v4635_v19 = vpop.f32.mrf.mxu1 }
 0xaad   :  { %v5962_v20 = vadd.f32 %v4635_v19, %v4634_v17 }
 0xaae   :  { %v4637_v21 = vpop.f32.mrf.mxu1 }
 0xaaf   :  { %v3304_v6 = vsel %vm1635_vm12, %v5962_v20, 0.0  ;;  %v3336_v9 = vmul.f32 %v5962_v20, %v5962_v20 }
 0xab0   :  { %v4638_v5 = vpop.f32.mrf.mxu1  ;;  %3305 = vadd.xlane.f32.xlu0 %v3304_v6 }
 0xab1   :  { %v5968_v12 = vadd.f32 %v4638_v5, %v4637_v21  ;;  %v3344_v14 = vsel %vm1635_vm12, %v3336_v9, 0.0 }
 0xab2   :  { %v4640_v22 = vpop.f32.mrf.mxu1 }
 0xab3   :  { %v3307_v38 = vsel %vm1635_vm12, %v5968_v12, 0.0  ;;  %v3337_v43 = vmul.f32 %v5968_v12, %v5968_v12 }
 0xab4   :  { %v4641_v27 = vpop.f32.mrf.mxu1  ;;  %3308 = vadd.xlane.f32.xlu1 %v3307_v38  ;;  %3345 = vadd.xlane.f32.xlu0 %v3344_v14 }
 0xab5   :  { %v5975_v28 = vadd.f32 %v4641_v27, %v4640_v22  ;;  %v3347_v16 = vsel %vm1635_vm12, %v3337_v43, 0.0 }
 0xab6   :  { %v4643_v13 = vpop.f32.mrf.mxu1 }
 0xab7   :  { %v3310_v30 = vsel %vm1635_vm12, %v5975_v28, 0.0  ;;  %v3338_v32 = vmul.f32 %v5975_v28, %v5975_v28 }
 0xab8   :  { %v4644_v54 = vpop.f32.mrf.mxu1  ;;  %3348 = vadd.xlane.f32.xlu0 %v3347_v16 }
 0xab9   :  { %v5978_v57 = vadd.f32 %v4644_v54, %v4643_v13  ;;  %v3350_v31 = vsel %vm1635_vm12, %v3338_v32, 0.0 }
 0xaba   :  { %v4646_v0 = vpop.f32.mrf.mxu1 }
 0xabb   :  { %v3313_v29 = vsel %vm1635_vm12, %v5978_v57, 0.0  ;;  %v3339_v18 = vmul.f32 %v5978_v57, %v5978_v57 }
 0xabc   :  { %v4647_v34 = vpop.f32.mrf.mxu1  ;;  %3314 = vadd.xlane.f32.xlu1 %v3313_v29  ;;  %3311 = vadd.xlane.f32.xlu0 %v3310_v30 }
 0xabd   :  { %v5988_v26 = vadd.f32 %v4647_v34, %v4646_v0  ;;  %v3353_v23 = vsel %vm1635_vm12, %v3339_v18, 0.0 }
 0xabe   :  { %v4649_v36 = vpop.f32.mrf.mxu1 }
 0xabf   :  { %v3316_v48 = vsel %vm1635_vm12, %v5988_v26, 0.0  ;;  %v3340_v55 = vmul.f32 %v5988_v26, %v5988_v26 }
 0xac0   :  { %v4650_v35 = vpop.f32.mrf.mxu1  ;;  %3354 = vadd.xlane.f32.xlu1 %v3353_v23  ;;  %3351 = vadd.xlane.f32.xlu0 %v3350_v31 }
 0xac1   :  { %v5992_v40 = vadd.f32 %v4650_v35, %v4649_v36  ;;  %v3356_v61 = vsel %vm1635_vm12, %v3340_v55, 0.0 }
 0xac2   :  { %v4652_v44 = vpop.f32.mrf.mxu1 }
 0xac3   :  { %v3319_v47 = vsel %vm1635_vm12, %v5992_v40, 0.0  ;;  %v3341_v52 = vmul.f32 %v5992_v40, %v5992_v40 }
 0xac4   :  { %v4653_v56 = vpop.f32.mrf.mxu1  ;;  %3320 = vadd.xlane.f32.xlu1 %v3319_v47  ;;  %3317 = vadd.xlane.f32.xlu0 %v3316_v48 }
 0xac5   :  { %v6002_v45 = vadd.f32 %v4653_v56, %v4652_v44  ;;  %v3359_v60 = vsel %vm1635_vm12, %v3341_v52, 0.0 }
 0xac6   :  { %v4655_v39 = vpop.f32.mrf.mxu1 }
 0xac7   :  { %v3322_v46 = vsel %vm1635_vm12, %v6002_v45, 0.0  ;;  %v3342_v58 = vmul.f32 %v6002_v45, %v6002_v45 }
 0xac8   :  { %v4656_v1 = vpop.f32.mrf.mxu1  ;;  %3360 = vadd.xlane.f32.xlu1 %v3359_v60  ;;  %3357 = vadd.xlane.f32.xlu0 %v3356_v61 }
 0xac9   :  { %v6006_v4 = vadd.f32 %v4656_v1, %v4655_v39  ;;  %v3362_v33 = vsel %vm1635_vm12, %v3342_v58, 0.0 }
 0xacb   :  { %v3325_v25 = vsel %vm1635_vm12, %v6006_v4, 0.0  ;;  %v3343_v49 = vmul.f32 %v6006_v4, %v6006_v4 }
 0xacc   :  { %3326 = vadd.xlane.f32.xlu1 %v3325_v25  ;;  %3323 = vadd.xlane.f32.xlu0 %v3322_v46 }
 0xacd   :  { %v3365_v8 = vsel %vm1635_vm12, %v3343_v49, 0.0 }
 0xad0   :  { %3366 = vadd.xlane.f32.xlu1 %v3365_v8  ;;  %3363 = vadd.xlane.f32.xlu0 %v3362_v33 }
 0xb39   :  { %v3306_v10 = vpop.xlane.xlu0 %3305 }
 0xb3a   :  { %v3328_v59 = vmul.f32 0.0625, %v3306_v10 }
 0xb3c   :  { %v3376_v7 = vmul.f32 %v3328_v59, %v3328_v59 }
 0xb3d   :  { %v3309_v11 = vpop.xlane.xlu1 %3308  ;;  %v3346_v15 = vpop.xlane.xlu0 %3345 }
 0xb3e   :  { %v3329_v63 = vmul.f32 0.0625, %v3309_v11  ;;  %v3368_v62 = vmul.f32 0.0625, %v3346_v15 }
 0xb40   :  { %v3384_v17 = vsub.f32 %v3368_v62, %v3376_v7  ;;  %v3377_v21 = vmul.f32 %v3329_v63, %v3329_v63 }
 0xb41   :  { %v3349_v19 = vpop.xlane.xlu0 %3348 }
 0xb42   :  { %v3392_v6 = vadd.f32 1e-05, %v3384_v17  ;;  %v3369_v9 = vmul.f32 0.0625, %v3349_v19 }
 0xb44   :  { %5201 = vrsqrt.f32 %v3392_v6  ;;  %v3385_v5 = vsub.f32 %v3369_v9, %v3377_v21 }
 0xb45   :  { %v3315_v22 = vpop.xlane.xlu1 %3314  ;;  %v3312_v38 = vpop.xlane.xlu0 %3311 }
 0xb46   :  { %v3393_v14 = vadd.f32 1e-05, %v3385_v5  ;;  %v3331_v43 = vmul.f32 0.0625, %v3315_v22  ;;  %v3330_v27 = vmul.f32 0.0625, %v3312_v38 }
 0xb48   :  { %5203 = vrsqrt.f32 %v3393_v14  ;;  %v3379_v54 = vmul.f32 %v3331_v43, %v3331_v43  ;;  %v3378_v0 = vmul.f32 %v3330_v27, %v3330_v27 }
 0xb49   :  { %v3355_v13 = vpop.xlane.xlu1 %3354  ;;  %v3352_v16 = vpop.xlane.xlu0 %3351 }
 0xb4a   :  { %v3371_v29 = vmul.f32 0.0625, %v3355_v13  ;;  %v3370_v30 = vmul.f32 0.0625, %v3352_v16 }
 0xb4c   :  { %v3387_v18 = vsub.f32 %v3371_v29, %v3379_v54  ;;  %v3386_v32 = vsub.f32 %v3370_v30, %v3378_v0 }
 0xb4d   :  { %v3321_v34 = vpop.xlane.xlu1 %3320  ;;  %v3318_v36 = vpop.xlane.xlu0 %3317 }
 0xb4e   :  { %v3395_v23 = vadd.f32 1e-05, %v3387_v18  ;;  %v3394_v31 = vadd.f32 1e-05, %v3386_v32  ;;  %v3333_v35 = vmul.f32 0.0625, %v3321_v34  ;;  %v3332_v44 = vmul.f32 0.0625, %v3318_v36 }
 0xb50   :  { %5205 = vrsqrt.f32 %v3395_v23  ;;  %v3381_v48 = vmul.f32 %v3333_v35, %v3333_v35  ;;  %v3380_v56 = vmul.f32 %v3332_v44, %v3332_v44 }
 0xb51   :  { %v5202_v47 = vpop.eup %5201  ;;  %5207 = vrsqrt.f32 %v3394_v31  ;;  %v3361_v52 = vpop.xlane.xlu1 %3360 }
 0xb52   :  { %v3358_v55 = vpop.xlane.xlu0 %3357  ;;  %v3373_v39 = vmul.f32 0.0625, %v3361_v52  ;;  %v3408_v61 = vmul.f32 %v5865_v53, %v5202_v47 }
 0xb53   :  { %v3372_v60 = vmul.f32 0.0625, %v3358_v55 }
 0xb54   :  { %v3389_v1 = vsub.f32 %v3373_v39, %v3381_v48  ;;  %v3416_v46 = vmul.f32 %v3408_v61, %v3328_v59  ;;  %v3934_v39 = vld [vmem:[#allocation15 + $0x38] sm:$0xff] }
 0xb55   :  { %v3388_v25 = vsub.f32 %v3372_v60, %v3380_v56  ;;  %v5204_v49 = vpop.eup %5203  ;;  %v3327_v58 = vpop.xlane.xlu1 %3326  ;;  %v3586_v56 = vld [vmem:[#allocation15 + $0x8] sm:$0xff]  ;;  %5111 = vmatprep.subr.mxu1 %v3934_v39 }
 0xb56   :  { %v3324_v8 = vpop.xlane.xlu0 %3323  ;;  %v3397_v33 = vadd.f32 1e-05, %v3389_v1  ;;  %v3335_v11 = vmul.f32 0.0625, %v3327_v58  ;;  %3432 = vrot.lane.b32.xlu0 %v3416_v46, %s5430_s0  ;;  %v3409_v7 = vmul.f32 %v5870_v24, %v5204_v49  ;;  %5063 = vmatprep.subr.mxu0 %v3586_v56 }
 0xb57   :  { %v3396_v10 = vadd.f32 1e-05, %v3388_v25  ;;  %v3334_v15 = vmul.f32 0.0625, %v3324_v8  ;;  %5064 = vmatpush3.msra.mxu0 %v3586_v56  ;;  %5112 = vmatpush3.msra.mxu1 %v3934_v39  ;;  %v3933_v25 = vld [vmem:[#allocation15 + $0x30] sm:$0xff] }
 0xb58   :  { %5209 = vrsqrt.f32 %v3397_v33  ;;  %v3417_v19 = vmul.f32 %v3409_v7, %v3329_v63  ;;  %v3383_v21 = vmul.f32 %v3335_v11, %v3335_v11  ;;  %5113 = vmatprep.subr.mxu1 %v3933_v25 }
 0xb59   :  { %5211 = vrsqrt.f32 %v3396_v10  ;;  %v3367_v62 = vpop.xlane.xlu1 %3366  ;;  %v3382_v6 = vmul.f32 %v3334_v15, %v3334_v15  ;;  %5114 = vmatpush3.msra.mxu1 %v3933_v25 }
 0xb5a   :  { %v3364_v17 = vpop.xlane.xlu0 %3363  ;;  %v3375_v9 = vmul.f32 0.0625, %v3367_v62  ;;  %3434 = vrot.lane.b32.xlu1 %v3417_v19, %s5430_s0 }
 0xb5b   :  { %v3374_v59 = vmul.f32 0.0625, %v3364_v17 }
 0xb5c   :  { %v3391_v5 = vsub.f32 %v3375_v9, %v3383_v21 }
 0xb5d   :  { %v3390_v22 = vsub.f32 %v3374_v59, %v3382_v6  ;;  %v5206_v38 = vpop.eup %5205 }
 0xb5e   :  { %v5208_v14 = vpop.eup %5207  ;;  %v3399_v13 = vadd.f32 1e-05, %v3391_v5  ;;  %v3411_v29 = vmul.f32 %v5876_v42, %v5206_v38 }
 0xb5f   :  { %v3398_v16 = vadd.f32 1e-05, %v3390_v22  ;;  %v3410_v54 = vmul.f32 %v5873_v37, %v5208_v14 }
 0xb60   :  { %5213 = vrsqrt.f32 %v3399_v13  ;;  %v3419_v30 = vmul.f32 %v3411_v29, %v3331_v43  ;;  %v3717_v13 = vld [vmem:[#allocation15 + $0x10] sm:$0xff] }
 0xb61   :  { %5215 = vrsqrt.f32 %v3398_v16  ;;  %v3418_v0 = vmul.f32 %v3410_v54, %v3330_v27  ;;  %v3826_v16 = vld [vmem:[#allocation15 + $0x28] sm:$0xff] }
 0xb63   :  { %3436 = vrot.lane.b32.xlu1 %v3418_v0, %s5430_s0 }
 0xb65   :  { %v5210_v63 = vpop.eup %5209 }
 0xb66   :  { %v5212_v18 = vpop.eup %5211  ;;  %v3413_v32 = vmul.f32 %v5879_v51, %v5210_v63 }
 0xb67   :  { %3438 = vrot.lane.b32.xlu1 %v3419_v30, %s5430_s0  ;;  %v3412_v34 = vmul.f32 %v5882_v41, %v5212_v18 }
 0xb68   :  { %v3421_v36 = vmul.f32 %v3413_v32, %v3333_v35  ;;  %v5435_v35 = vmov 5  }
 0xb69   :  { %v3420_v23 = vmul.f32 %v3412_v34, %v3332_v44 }
 0xb6b   :  { %3442 = vrot.lane.b32.xlu1 %v3421_v36, %s5430_s0  ;;  %3440 = vrot.lane.b32.xlu0 %v3420_v23, %s5430_s0 }
 0xb6d   :  { %v5214_v27 = vpop.eup %5213 }
 0xb6e   :  { %v5216_v31 = vpop.eup %5215  ;;  %v3415_v47 = vmul.f32 %v5890_v3, %v5214_v27 }
 0xb6f   :  { %v3414_v48 = vmul.f32 %v5887_v50, %v5216_v31 }
 0xb70   :  { %v3423_v43 = vmul.f32 %v3415_v47, %v3335_v11  ;;  %v3718_v11 = vld [vmem:[#allocation15 + $0x18] sm:$0xff] }
 0xb71   :  { %v3422_v52 = vmul.f32 %v3414_v48, %v3334_v15 }
 0xb72   :  { %3446 = vrot.lane.b32.xlu1 %v3423_v43, %s5430_s0 }
 0xb73   :  { %3444 = vrot.lane.b32.xlu0 %v3422_v52, %s5430_s0 }
 0xb76   :  { %3471 = vperm.xlu1 %5163, %v3409_v7  }
 0xb77   :  { %3466 = vperm.xlu0 %5162, %v3408_v61   ;;  %v3585_v61 = vld [vmem:[#allocation15] sm:$0xff] }
 0xb78   :  { %5065 = vmatprep.subr.mxu0 %v3585_v61 }
 0xb79   :  { %5066 = vmatpush3.msra.mxu0 %v3585_v61 }
 0xb7a   :  { %3476 = vperm.xlu1 %5163, %v3410_v54   ;;  %5079 = vmatprep.subr.mxu0 %v3718_v11 }
 0xb7b   :  { %3486 = vperm.xlu0 %5162, %v3412_v34  }
 0xb7e   :  { %3481 = vperm.xlu1 %5163, %v3411_v29  }
 0xb7f   :  { %5165 = vset.pattern.permute.xlu0 %v5435_v35 }
 0xb82   :  { %3491 = vperm.xlu1 %5163, %v3413_v32  }
 0xb86   :  { %3496 = vperm.xlu1 %5163, %v3414_v48  }
 0xb8a   :  { %5164 = vset.pattern.permute.xlu1 %v5435_v35 }
 0xbc8   :  { %v3433_v44 = vpop.permute.xlu0 %3432 }
 0xbc9   :  { %v3456_v55 = vsub.f32 %v5865_v53, %v3433_v44 }
 0xbcb   :  { %3514 = vperm.xlu1 %5164, %v3456_v55  }
 0xbcc   :  { %v3435_v60 = vpop.permute.xlu1 %3434 }
 0xbcd   :  { %v3457_v1 = vsub.f32 %v5870_v24, %v3435_v60 }
 0xbcf   :  { %3519 = vperm.xlu0 %5165, %v3457_v1  }
 0xbd5   :  { %v3437_v46 = vpop.permute.xlu1 %3436 }
 0xbd6   :  { %v3458_v53 = vsub.f32 %v5873_v37, %v3437_v46  ;;  %v6097_v46 = vld.sshfl [vmem:[#allocation6] sm:$0x33 pattern:$0x76325410] }
 0xbd8   :  { %3524 = vperm.xlu0 %5165, %v3458_v53   ;;  %v4053_v53 = vcombine.high %v6097_v46, %v6097_v46 }
 0xbd9   :  { %v3439_v49 = vpop.permute.xlu1 %3438 }
 0xbda   :  { %v3459_v58 = vsub.f32 %v5876_v42, %v3439_v49  ;;  %v5436_v49 = vmov 6  }
 0xbdc   :  { %3529 = vperm.xlu1 %5164, %v3459_v58   ;;  %v5225_v58 = vld [vmem:[#allocation7] sm:$0xff] }
 0xbdd   :  { %v3443_v8 = vpop.permute.xlu1 %3442  ;;  %v3441_v33 = vpop.permute.xlu0 %3440 }
 0xbde   :  { %v3461_v24 = vsub.f32 %v5879_v51, %v3443_v8  ;;  %v3460_v10 = vsub.f32 %v5882_v41, %v3441_v33 }
 0xbe0   :  { %3539 = vperm.xlu0 %5165, %v3461_v24   ;;  %3534 = vperm.xlu1 %5164, %v3460_v10  }
 0xbe4   :  { %5166 = vset.pattern.permute.xlu1 %v5434_v2  ;;  %v3447_v15 = vpop.permute.xlu1 %3446 }
 0xbe5   :  { %3501 = vperm.xlu1 %5166, %v3415_v47   ;;  %v3445_v37 = vpop.permute.xlu0 %3444  ;;  %v3463_v42 = vsub.f32 %v5890_v3, %v3447_v15 }
 0xbe6   :  { %v3462_v7 = vsub.f32 %v5887_v50, %v3445_v37 }
 0xbe8   :  { %3544 = vperm.xlu0 %5165, %v3462_v7  }
 0xbe9   :  { %5167 = vset.pattern.permute.xlu1 %v5435_v35 }
 0xbea   :  { %3549 = vperm.xlu1 %5167, %v3463_v42  }
 0xbec   :  { %5168 = vset.pattern.permute.xlu0 %v5436_v49 }
 0xbed   :  { %4042 = vperm.xlu0 %5168, %v5225_v58  }
 0xbf1   :  { %v3472_v62 = vpop.permute.xlu1 %3471 }
 0xbf2   :  { %v3467_v19 = vpop.permute.xlu0 %3466  ;;  %v3505_v50 = vmul.f32 %v5968_v12, %v3472_v62 }
 0xbf3   :  { %v3504_v6 = vmul.f32 %v5962_v20, %v3467_v19 }
 0xbf5   :  { %v3477_v51 = vpop.permute.xlu1 %3476 }
 0xbf6   :  { %v3487_v2 = vpop.permute.xlu0 %3486  ;;  %v3506_v12 = vmul.f32 %v5975_v28, %v3477_v51 }
 0xbf7   :  { %v3508_v28 = vmul.f32 %v5988_v26, %v3487_v2 }
 0xbf9   :  { %v3482_v17 = vpop.permute.xlu1 %3481 }
 0xbfa   :  { %v3507_v29 = vmul.f32 %v5978_v57, %v3482_v17 }
 0xbfd   :  { %v3492_v41 = vpop.permute.xlu1 %3491 }
 0xbfe   :  { %v3509_v34 = vmul.f32 %v5992_v40, %v3492_v41 }
 0xc01   :  { %v3497_v21 = vpop.permute.xlu1 %3496 }
 0xc02   :  { %v3510_v40 = vmul.f32 %v6002_v45, %v3497_v21 }
 0xc46   :  { %v3515_v9 = vpop.permute.xlu1 %3514 }
 0xc47   :  { %v3552_v59 = vadd.f32 %v3515_v9, %v3504_v6 }
 0xc49   :  { %vm3560_vm7 = vcmp.ge.f32.partialorder %v3552_v59, 0.0  ;;  %v3568_v5 = vmul.f32 0.01, %v3552_v59 }
 0xc4a   :  { %v3520_v22 = vpop.permute.xlu0 %3519 }
 0xc4b   :  { %v6047_v3 = vsel %vm3560_vm7, %v3552_v59, %v3568_v5  ;;  %v3553_v38 = vadd.f32 %v3520_v22, %v3505_v50 }
 0xc4c   :  { %5067 = vmatprep.mubr.msk.f32.mxu0 %vm1635_vm12, %v6047_v3  ;;  %5115 = vmatprep.mubr.msk.f32.mxu1 %vm1635_vm12, %v6047_v3 }
 0xc4d   :  { %vm3561_vm8 = vcmp.ge.f32.partialorder %v3553_v38, 0.0  ;;  %v3569_v14 = vmul.f32 0.01, %v3553_v38 }
 0xc4f   :  { %v6053_v20 = vsel %vm3561_vm8, %v3553_v38, %v3569_v14 }
 0xc50   :  { %5068 = vmatmul.mubr.msk.f32.vlgmr.msra.gmra.mxu0 %vm1635_vm12, %v6053_v20  ;;  %5116 = vmatmul.mubr.msk.f32.vlgmr.msra.gmra.mxu1 %vm1635_vm12, %v6053_v20 }
 0xc51   :  { %5080 = vmatpush3.msra.mxu0 %v3718_v11 }
 0xc52   :  { %5081 = vmatprep.subr.mxu0 %v3717_v13 }
 0xc53   :  { %v3525_v54 = vpop.permute.xlu0 %3524  ;;  %5082 = vmatpush3.msra.mxu0 %v3717_v13 }
 0xc54   :  { %v3554_v0 = vadd.f32 %v3525_v54, %v3506_v12  ;;  %5095 = vmatprep.subr.mxu0 %v3826_v16 }
 0xc56   :  { %vm3562_vm9 = vcmp.ge.f32.partialorder %v3554_v0, 0.0  ;;  %v3570_v63 = vmul.f32 0.01, %v3554_v0 }
 0xc57   :  { %v3530_v30 = vpop.permute.xlu1 %3529 }
 0xc58   :  { %v3555_v18 = vadd.f32 %v3530_v30, %v3507_v29  ;;  %v3578_v32 = vsel %vm3562_vm9, %v3554_v0, %v3570_v63 }
 0xc59   :  { %5070 = vmatprep.mubr.msk.f32.mxu0 %vm1635_vm12, %v3578_v32  ;;  %5118 = vmatprep.mubr.msk.f32.mxu1 %vm1635_vm12, %v3578_v32 }
 0xc5a   :  { %vm3563_vm10 = vcmp.ge.f32.partialorder %v3555_v18, 0.0  ;;  %v3571_v36 = vmul.f32 0.01, %v3555_v18 }
 0xc5b   :  { %v3535_v23 = vpop.permute.xlu1 %3534  ;;  %v3540_v27 = vpop.permute.xlu0 %3539 }
 0xc5c   :  { %v3556_v31 = vadd.f32 %v3535_v23, %v3508_v28  ;;  %v3557_v47 = vadd.f32 %v3540_v27, %v3509_v34  ;;  %v3579_v57 = vsel %vm3563_vm10, %v3555_v18, %v3571_v36 }
 0xc5d   :  { %5071 = vmatmul.mubr.msk.f32.gmra.mxu0 %vm1635_vm12, %v3579_v57  ;;  %5119 = vmatmul.mubr.msk.f32.gmra.mxu1 %vm1635_vm12, %v3579_v57 }
 0xc5e   :  { %vm3564_vm11 = vcmp.ge.f32.partialorder %v3556_v31, 0.0  ;;  %v3572_v48 = vmul.f32 0.01, %v3556_v31  ;;  %vm3565_vm13 = vcmp.ge.f32.partialorder %v3557_v47, 0.0  ;;  %v3573_v43 = vmul.f32 0.01, %v3557_v47 }
 0xc60   :  { %v3502_v52 = vpop.permute.xlu1 %3501  ;;  %v3580_v35 = vsel %vm3564_vm11, %v3556_v31, %v3572_v48  ;;  %v3581_v26 = vsel %vm3565_vm13, %v3557_v47, %v3573_v43 }
 0xc61   :  { %5073 = vmatprep.mubr.msk.f32.mxu0 %vm1635_vm12, %v3580_v35  ;;  %5121 = vmatprep.mubr.msk.f32.mxu1 %vm1635_vm12, %v3580_v35  ;;  %v3511_v55 = vmul.f32 %v6006_v4, %v3502_v52  ;;  %v3825_v4 = vld [vmem:[#allocation15 + $0x20] sm:$0xff] }
 0xc62   :  { %5074 = vmatmul.mubr.msk.f32.gmra.mxu0 %vm1635_vm12, %v3581_v26  ;;  %5122 = vmatmul.mubr.msk.f32.gmra.mxu1 %vm1635_vm12, %v3581_v26 }
 0xc63   :  { %v3545_v44 = vpop.permute.xlu0 %3544 }
 0xc64   :  { %v3558_v56 = vadd.f32 %v3545_v44, %v3510_v40 }
 0xc65   :  { %v3550_v39 = vpop.permute.xlu1 %3549 }
 0xc66   :  { %vm3566_vm14 = vcmp.ge.f32.partialorder %v3558_v56, 0.0  ;;  %v3574_v60 = vmul.f32 0.01, %v3558_v56  ;;  %v3559_v1 = vadd.f32 %v3550_v39, %v3511_v55 }
 0xc68   :  { %vm3567_vm15 = vcmp.ge.f32.partialorder %v3559_v1, 0.0  ;;  %v3575_v61 = vmul.f32 0.01, %v3559_v1  ;;  %v3582_v25 = vsel %vm3566_vm14, %v3558_v56, %v3574_v60  ;;  %v4043_v18 = vpop.permute.xlu0 %4042 }
 0xc69   :  { %5076 = vmatprep.mubr.msk.f32.mxu0 %vm1635_vm12, %v3582_v25  ;;  %5124 = vmatprep.mubr.msk.f32.mxu1 %vm1635_vm12, %v3582_v25 }
 0xc6a   :  { %v3583_v45 = vsel %vm3567_vm15, %v3559_v1, %v3575_v61 }
 0xc6b   :  { %5077 = vmatmul.mubr.msk.f32.gmra.mxu0 %vm1635_vm12, %v3583_v45  ;;  %5125 = vmatmul.mubr.msk.f32.gmra.mxu1 %vm1635_vm12, %v3583_v45 }
 0xc6c   :  { %5083 = vmatprep.mubr.msk.f32.mxu0 %vm1635_vm12, %v6047_v3 }
 0xc6f   :  { %5084 = vmatmul.mubr.msk.f32.vlgmr.msra.gmra.mxu0 %vm1635_vm12, %v6053_v20 }
 0xc70   :  { %5096 = vmatpush3.msra.mxu0 %v3826_v16  ;;  %5086 = vmatprep.mubr.msk.f32.mxu0 %vm1635_vm12, %v3578_v32 }
 0xc71   :  { %5097 = vmatprep.subr.mxu0 %v3825_v4 }
 0xc72   :  { %5098 = vmatpush3.msra.mxu0 %v3825_v4 }
 0xc73   :  { %5087 = vmatmul.mubr.msk.f32.gmra.mxu0 %vm1635_vm12, %v3579_v57 }
 0xc74   :  { %5089 = vmatprep.mubr.msk.f32.mxu0 %vm1635_vm12, %v3580_v35 }
 0xc77   :  { %5090 = vmatmul.mubr.msk.f32.gmra.mxu0 %vm1635_vm12, %v3581_v26 }
 0xc78   :  { %5092 = vmatprep.mubr.msk.f32.mxu0 %vm1635_vm12, %v3582_v25 }
 0xc7b   :  { %5093 = vmatmul.mubr.msk.f32.gmra.mxu0 %vm1635_vm12, %v3583_v45 }
 0xc7c   :  { %5099 = vmatprep.mubr.msk.f32.mxu0 %vm1635_vm12, %v6047_v3 }
 0xc7f   :  { %5100 = vmatmul.mubr.msk.f32.vlgmr.msra.gmra.mxu0 %vm1635_vm12, %v6053_v20 }
 0xc80   :  { %5102 = vmatprep.mubr.msk.f32.mxu0 %vm1635_vm12, %v3578_v32 }
 0xc83   :  { %5103 = vmatmul.mubr.msk.f32.gmra.mxu0 %vm1635_vm12, %v3579_v57 }
 0xc84   :  { %5105 = vmatprep.mubr.msk.f32.mxu0 %vm1635_vm12, %v3580_v35 }
 0xc87   :  { %5106 = vmatmul.mubr.msk.f32.gmra.mxu0 %vm1635_vm12, %v3581_v26 }
 0xc88   :  { %5108 = vmatprep.mubr.msk.f32.mxu0 %vm1635_vm12, %v3582_v25 }
 0xc8b   :  { %5109 = vmatmul.mubr.msk.f32.gmra.mxu0 %vm1635_vm12, %v3583_v45  ;;  %vm4129_vm12 = vcmask 254976  }
 0xc8c   :  { %4120 = vmatprep.mubr.f32.mxu0 %v4053_v53 }
 0xd10   :  { %v5069_v8 = vpop.f32.mrf.mxu0  ;;  %v5117_v33 = vpop.f32.mrf.mxu1 }
 0xd12   :  { %v3677_v24 = vpop.f32.mrf.mxu0  ;;  %v4001_v10 = vpop.f32.mrf.mxu1 }
 0xd1d   :  { %v5072_v11 = vpop.f32.mrf.mxu0  ;;  %v5120_v15 = vpop.f32.mrf.mxu1 }
 0xd1f   :  { %v3687_v37 = vpop.f32.mrf.mxu0  ;;  %v4011_v7 = vpop.f32.mrf.mxu1 }
 0xd22   :  { %v5075_v42 = vpop.f32.mrf.mxu0  ;;  %v5123_v62 = vpop.f32.mrf.mxu1 }
 0xd24   :  { %v3697_v51 = vpop.f32.mrf.mxu0  ;;  %v4021_v17 = vpop.f32.mrf.mxu1 }
 0xd2b   :  { %v5078_v41 = vpop.f32.mrf.mxu0  ;;  %v5126_v19 = vpop.f32.mrf.mxu1 }
 0xd2c   :  { %4698 = vmatprep.subr.mxu0 %v5126_v19 }
 0xd2d   :  { %v3707_v21 = vpop.f32.mrf.mxu0  ;;  %v4031_v3 = vpop.f32.mrf.mxu1 }
 0xd2f   :  { %v5085_v6 = vpop.f32.mrf.mxu0 }
 0xd31   :  { %v3785_v9 = vpop.f32.mrf.mxu0 }
 0xd33   :  { %v5088_v2 = vpop.f32.mrf.mxu0 }
 0xd35   :  { %v3795_v59 = vpop.f32.mrf.mxu0 }
 0xd37   :  { %v5091_v5 = vpop.f32.mrf.mxu0 }
 0xd39   :  { %v3805_v50 = vpop.f32.mrf.mxu0 }
 0xd3b   :  { %v5094_v22 = vpop.f32.mrf.mxu0 }
 0xd3c   :  { %4699 = vmatpush3.msra.mxu0 %v5094_v22 }
 0xd3d   :  { %v3815_v38 = vpop.f32.mrf.mxu0  ;;  %4700 = vmatprep.subr.mxu0 %v4031_v3 }
 0xd3e   :  { %4701 = vmatpush3.msra.mxu0 %v3815_v38 }
 0xd3f   :  { %v5101_v14 = vpop.f32.mrf.mxu0  ;;  %4702 = vmatprep.subr.mxu0 %v5123_v62 }
 0xd40   :  { %4703 = vmatpush3.msra.mxu0 %v5091_v5 }
 0xd41   :  { %v3893_v20 = vpop.f32.mrf.mxu0  ;;  %4704 = vmatprep.subr.mxu0 %v4021_v17 }
 0xd42   :  { %4705 = vmatpush3.msra.mxu0 %v3805_v50 }
 0xd43   :  { %v5104_v13 = vpop.f32.mrf.mxu0  ;;  %4706 = vmatprep.subr.mxu0 %v5120_v15 }
 0xd44   :  { %4707 = vmatpush3.msra.mxu0 %v5088_v2 }
 0xd45   :  { %v3903_v12 = vpop.f32.mrf.mxu0  ;;  %4708 = vmatprep.subr.mxu0 %v4011_v7 }
 0xd46   :  { %4709 = vmatpush3.msra.mxu0 %v3795_v59 }
 0xd47   :  { %v5107_v16 = vpop.f32.mrf.mxu0  ;;  %4710 = vmatprep.subr.mxu0 %v5117_v33 }
 0xd48   :  { %4711 = vmatpush3.msra.mxu0 %v5085_v6 }
 0xd49   :  { %v3913_v54 = vpop.f32.mrf.mxu0  ;;  %4712 = vmatprep.subr.mxu0 %v4001_v10 }
 0xd4a   :  { %4713 = vmatpush3.msra.mxu0 %v3785_v9 }
 0xd4b   :  { %v5110_v0 = vpop.f32.mrf.mxu0 }
 0xd4c   :  { %4714 = vmatprep.subr.mxu0 %v5110_v0 }
 0xd4d   :  { %v3923_v29 = vpop.f32.mrf.mxu0  ;;  %4715 = vmatpush3.msra.mxu0 %v5078_v41 }
 0xd4e   :  { %4716 = vmatprep.subr.mxu0 %v3923_v29 }
 0xd4f   :  { %4717 = vmatpush3.msra.mxu0 %v3707_v21 }
 0xd50   :  { %4718 = vmatprep.subr.mxu0 %v5107_v16 }
 0xd51   :  { %4719 = vmatpush3.msra.mxu0 %v5075_v42 }
 0xd52   :  { %4720 = vmatprep.subr.mxu0 %v3913_v54 }
 0xd53   :  { %4721 = vmatpush3.msra.mxu0 %v3697_v51 }
 0xd54   :  { %4722 = vmatprep.subr.mxu0 %v5104_v13 }
 0xd55   :  { %4723 = vmatpush3.msra.mxu0 %v5072_v11 }
 0xd56   :  { %4724 = vmatprep.subr.mxu0 %v3903_v12 }
 0xd57   :  { %4725 = vmatpush3.msra.mxu0 %v3687_v37 }
 0xd58   :  { %4726 = vmatprep.subr.mxu0 %v5101_v14 }
 0xd59   :  { %4727 = vmatpush3.msra.mxu0 %v5069_v8 }
 0xd5a   :  { %4728 = vmatprep.subr.mxu0 %v3893_v20 }
 0xd5b   :  { %4729 = vmatpush3.msra.mxu0 %v3677_v24 }
 0xd5c   :  { %4121 = vmatmul.mubr.f32.vlgmr.msra.gmra.mxu0 %v6097_v46 }
 0xe1c   :  { %v4730_v63 = vpop.f32.mrf.mxu0 }
 0xe1e   :  { %v4731_v30 = vpop.f32.mrf.mxu0 }
 0xe1f   :  { %v4732_v32 = vadd.f32 %v4731_v30, %v4730_v63 }
 0xe21   :  { %v4123_v28 = vadd.f32 %v4732_v32, %v4043_v18 }
 0xe23   :  { %vm4126_vm1 = vcmp.ge.f32.partialorder %v4123_v28, 0.0  ;;  %v4127_v34 = vmul.f32 0.01, %v4123_v28 }
 0xe25   :  { %v4128_v36 = vsel %vm4126_vm1, %v4123_v28, %v4127_v34 }
 0xe26   :  { %4130 = vst.msk [vmem:[%s6116_s11] sm:$0x3] %vm4129_vm12, %v4128_v36 }
 0xe27   :  { %4135 = vsyncpa [#allocation3], 1 }
 0xe28   :  { %4136 = vsyncpa [#allocation5], 1 }
 0xe29   :  { %4137 = vsyncpa [#allocation8], 1 }
 0xe2a   :  { %4138 = vsyncpa [#allocation11], 1 }
 0xe2b   :  { %4139 = vsyncpa [#allocation14], 1 }

</bundles_post_ra>
